<compile_context>
chip_gen: v6e
topology: v6e:2x2x1
jax: 0.10.0
libtpu: 0.0.40
codegen_flags: <defaults>
</compile_context>

<pallas_src>
import functools

import jax
import jax.numpy as jnp
from jax.experimental import pallas as pl
from jax.experimental.pallas import tpu as pltpu

KSIZE = 3
POOL_OUT = 4
NUM_CHANNELS = (32, 64, 64)
HIDDEN = 64
EPS = 1e-5
LANE = 64          # uniform lane width for activations / weight-slab columns


# ----------------------------------------------------------------------------
# Fused Pallas kernel
# ----------------------------------------------------------------------------
def fused_tcn_kernel(x_ref, w_ref, b_ref, o_ref, *, L, dilations, pool_out,
                     nc, woff, boff):
    R = x_ref.shape[0]                      # rows = (batch, time) flattened
    B = R // L
    C = w_ref.shape[-1]                     # = LANE
    f32 = jnp.float32

    def brow(i):                            # (1, C) f32 bias / scale / cin==1-weight row
        return b_ref[i:i + 1, :]

    def wtap(name, j=0):                    # (C, C) bf16 weight matrix (tap j of a conv)
        s = woff[name] + j * C
        return w_ref[s:s + C, :]

    # ---- causal-shift machinery: one narrow mask column per distinct shift ----
    t_idx = jax.lax.broadcasted_iota(jnp.int32, (R, 1), 0)
    t_idx = jnp.bitwise_and(t_idx, L - 1) if (L & (L - 1)) == 0 else t_idx % L
    shifts = sorted({m * d for d in dilations for m in range(1, KSIZE)})
    masks = {s: t_idx >= s for s in shifts}

    def shift_rows(y, s):
        # out[t] <- y[t - s] within each length-L sequence, zero for t < s (causal pad).
        # Rolling the flat (B*L) row dim is safe: rows that would leak across sequences
        # are exactly the rows masked to zero.
        return jnp.where(masks[s], pltpu.roll(y, s, axis=0), 0.0)

    def conv(x, name, bias_idx, dil):
        # Causal dilated conv on the MXU: per-tap bf16 dot, roll+mask, f32 accumulate,
        # BN already folded into weights/bias, fused ReLU.
        xb = x.astype(jnp.bfloat16)
        acc = jnp.dot(xb, wtap(name, KSIZE - 1), preferred_element_type=f32)
        for j in range(KSIZE - 1):
            acc = acc + shift_rows(
                jnp.dot(xb, wtap(name, j), preferred_element_type=f32),
                (KSIZE - 1 - j) * dil)
        return jnp.maximum(acc + brow(bias_idx), 0.0)

    def conv_cin1(xb, tap0, bias_idx, dil):
        # Cin == 1 conv: pure VPU broadcast multiply-accumulate (rows live in f32 slab).
        acc = xb * brow(tap0 + KSIZE - 1)
        for j in range(KSIZE - 1):
            acc = acc + shift_rows(xb * brow(tap0 + j), (KSIZE - 1 - j) * dil)
        return jnp.maximum(acc + brow(bias_idx), 0.0)

    d0, d1, d2 = dilations

    # ---- input unsqueeze + BatchNorm1d(1) (inference), broadcast to all lanes ----
    xb = jnp.broadcast_to(x_ref[...].astype(f32), (R, C))
    xn = xb * brow(boff["in_s"]) + brow(boff["in_t"])

    # ---- block 0: 1 -> 32, dilation 1, 1x1-conv residual (VPU) ----
    h = conv_cin1(xn, boff["b0w1"], boff["b0b1"], d0)
    h = conv(h, "b0w2", boff["b0b2"], d0)
    y0 = jnp.maximum(h + xn * brow(boff["b0dw"]) + brow(boff["b0db"]), 0.0)

    # ---- block 1: 32 -> 64, dilation 2, 1x1-conv residual ----
    h = conv(y0, "b1w1", boff["b1b1"], d1)
    h = conv(h, "b1w2", boff["b1b2"], d1)
    res = jnp.dot(y0.astype(jnp.bfloat16), wtap("b1dw"),
                  preferred_element_type=f32) + brow(boff["b1db"])
    y1 = jnp.maximum(h + res, 0.0)

    # ---- block 2: 64 -> 64, dilation 4, identity residual ----
    h = conv(y1, "b2w1", boff["b2b1"], d2)
    h = conv(h, "b2w2", boff["b2b2"], d2)
    y2 = jnp.maximum(h + y1, 0.0)

    # ---- head: AdaptiveMaxPool1d(pool_out) -> fc1 (+BN, ReLU) -> fc2 ----
    # TODO(synk): L % pool_out != 0 (ragged adaptive windows) is not supported here.
    Lp = L // pool_out
    y2r = y2.reshape(B, pool_out, Lp, C)                     # leading-dim split only
    pooled = [jnp.max(y2r[:, p], axis=1) for p in range(pool_out)]   # pool x (B, C)
    lhs = jnp.concatenate(pooled, axis=-1).astype(jnp.bfloat16)      # (B, pool*C)
    f1 = w_ref[woff["f1w"]:woff["f1w"] + pool_out * C, :]
    hid = jnp.maximum(jnp.dot(lhs, f1, preferred_element_type=f32)
                      + brow(boff["f1b"]), 0.0)
    logits = jnp.dot(hid.astype(jnp.bfloat16), wtap("f2w"),
                     preferred_element_type=f32) + brow(boff["f2b"])
    o_ref[...] = logits[:, :nc]


# ----------------------------------------------------------------------------
# Wrapper (single pallas_call; one grid step by default)
# ----------------------------------------------------------------------------
def tcn_encoder_forward(x, packed, *, n_chunks=1):
    """x: (B, L) float32 -> (B, num_classes) float32."""
    B, L = x.shape
    nc = packed["nc"]
    assert L % 8 == 0 and L % POOL_OUT == 0, "kernel assumes L % 8 == 0 and L % pool == 0"
    if B % n_chunks != 0:
        n_chunks = 1
    Bc = B // n_chunks
    R = Bc * L
    xr = x.astype(jnp.float32).reshape(n_chunks, R, 1)       # rows = (b, t), channels-last
    w_slab, b_slab = packed["w"], packed["b"]

    kern = functools.partial(
        fused_tcn_kernel, L=L, dilations=(1, 2, 4), pool_out=POOL_OUT,
        nc=nc, woff=packed["woff"], boff=packed["boff"])

    out = pl.pallas_call(
        kern,
        grid=(n_chunks,),
        in_specs=[pl.BlockSpec((None, R, 1), lambda g: (g, 0, 0)),
                  pl.BlockSpec(w_slab.shape, lambda g: (0, 0)),
                  pl.BlockSpec(b_slab.shape, lambda g: (0, 0))],
        out_specs=pl.BlockSpec((None, Bc, nc), lambda g: (g, 0, 0)),
        out_shape=jax.ShapeDtypeStruct((n_chunks, Bc, nc), jnp.float32),
        compiler_params=pltpu.CompilerParams(
            # n_chunks=1 by default (single TC on v5e/v6e).  On v7x, only enable
            # n_chunks=2 after verifying in a trace that the axis core-shards
            # (e.g. via pltpu.CORE_PARALLEL); otherwise it is pure serial overhead.
            dimension_semantics=("arbitrary",) if n_chunks == 1 else ("parallel",)),
    )(xr, w_slab, b_slab)
    return out.reshape(B, nc)


# ----------------------------------------------------------------------------
# Deterministic synthetic parameters (shapes/semantics match the PyTorch module)
# ----------------------------------------------------------------------------
def make_params(key, num_classes, num_channels=NUM_CHANNELS, ksize=KSIZE):
    keys = iter(jax.random.split(key, 64))

    def kaiming(shape, fan_in):
        return jax.random.normal(next(keys), shape, jnp.float32) * jnp.sqrt(2.0 / fan_in)

    def uniform_bias(shape, fan_in):
        bound = 1.0 / jnp.sqrt(float(fan_in))
        return jax.random.uniform(next(keys), shape, jnp.float32, -bound, bound)

    def bn_stats(c):
        # non-trivial gamma/beta/running stats so mean/var folding is exercised
        return {"gamma": 1.0 + 0.1 * jax.random.normal(next(keys), (c,), jnp.float32),
                "beta": 0.1 * jax.random.normal(next(keys), (c,), jnp.float32),
                "mean": 0.1 * jax.random.normal(next(keys), (c,), jnp.float32),
                "var": jax.random.uniform(next(keys), (c,), jnp.float32, 0.5, 1.5)}

    raw = {"blocks": []}
    cin = 1
    for cout in num_channels:
        blk = {"w1": kaiming((cout, cin, ksize), cin * ksize),      # torch (Cout,Cin,K)
               "b1": uniform_bias((cout,), cin * ksize),
               "w2": kaiming((cout, cout, ksize), cout * ksize),
               "b2": uniform_bias((cout,), cout * ksize),
               "bn1": bn_stats(cout), "bn2": bn_stats(cout)}
        if cin != cout:
            blk["wd"] = kaiming((cout, cin, 1), cin)                # 1x1 downsample
            blk["bd"] = uniform_bias((cout,), cin)
        raw["blocks"].append(blk)
        cin = cout

    C = num_channels[-1]
    raw["fc1_w"] = kaiming((HIDDEN, C * POOL_OUT), C * POOL_OUT)    # torch (out, in)
    raw["fc1_b"] = jnp.zeros((HIDDEN,), jnp.float32)
    raw["bn_fc"] = bn_stats(HIDDEN)
    raw["fc2_w"] = kaiming((num_classes, HIDDEN), HIDDEN)
    raw["fc2_b"] = jnp.zeros((num_classes,), jnp.float32)
    raw["in_bn"] = bn_stats(1)
    return raw


def _bn_fold(bn):
    # inference BN:  y = scale * x + shift,  shift = beta - scale * running_mean
    s = bn["gamma"] / jnp.sqrt(bn["var"] + EPS)
    return s, bn["beta"] - s * bn["mean"]


def pack_params(raw, num_classes):
    """Fold inference BN into weights/shifts, pack all MXU weights into one bf16
    (rows, 64) slab (real channel widths) and all bias/scale/1-channel rows into one
    small f32 slab; return static row offsets for in-kernel slicing."""
    assert max(NUM_CHANNELS) <= LANE and HIDDEN <= LANE and num_classes <= LANE
    w_segs, w_off = [], {}
    b_rows, b_off = [], {}

    def pad_cols(a):
        return jnp.pad(a, ((0, 0), (0, LANE - a.shape[1])))

    def add_w(name, mat, rows):
        # `rows` = exact sublane extent the kernel reads back for this segment.
        w_off[name] = sum(m.shape[0] for m in w_segs)
        m = pad_cols(mat)
        w_segs.append(jnp.pad(m, ((0, rows - m.shape[0]), (0, 0))))

    def add_b(name, vec):
        b_off[name] = len(b_rows)
        b_rows.append(jnp.pad(vec, (0, LANE - vec.shape[0])))

    def conv_mat(w, scale):
        # torch (Cout, Cin, K) -> rows [j*LANE + ci], cols [co]; BN scale folded in.
        k = w.shape[-1]
        wt = jnp.transpose(w, (2, 1, 0)) * scale[None, None, :]         # (K, Cin, Cout)
        wt = jnp.pad(wt, ((0, 0), (0, LANE - wt.shape[1]), (0, 0)))
        return wt.reshape(k * LANE, wt.shape[-1])

    s0, t0 = _bn_fold(raw["in_bn"])
    add_b("in_s", jnp.full((LANE,), s0[0], jnp.float32))
    add_b("in_t", jnp.full((LANE,), t0[0], jnp.float32))

    for i, blk in enumerate(raw["blocks"]):
        s1, t1 = _bn_fold(blk["bn1"])
        s2, t2 = _bn_fold(blk["bn2"])
        if i == 0:
            # Cin == 1: first conv taps and the 1x1 downsample are VPU rows (f32 slab)
            w1 = blk["w1"] * s1[:, None, None]                          # (Cout, 1, K)
            b_off["b0w1"] = len(b_rows)
            for j in range(KSIZE):
                add_b(f"_b0w1_{j}", w1[:, 0, j])
            add_b("b0dw", blk["wd"][:, 0, 0])
        else:
            add_w(f"b{i}w1", conv_mat(blk["w1"], s1), KSIZE * LANE)
            if "wd" in blk:
                add_w(f"b{i}dw", jnp.transpose(blk["wd"][:, :, 0], (1, 0)), LANE)
        add_w(f"b{i}w2", conv_mat(blk["w2"], s2), KSIZE * LANE)
        add_b(f"b{i}b1", s1 * blk["b1"] + t1)
        add_b(f"b{i}b2", s2 * blk["b2"] + t2)
        if "wd" in blk:
            add_b(f"b{i}db", blk["bd"])

    C = NUM_CHANNELS[-1]
    sh, th = _bn_fold(raw["bn_fc"])
    # torch flatten index = c*POOL_OUT + p  ->  rows ordered (p, c)
    f1 = raw["fc1_w"].reshape(HIDDEN, C, POOL_OUT).transpose(2, 1, 0) * sh[None, None, :]
    f1 = jnp.pad(f1, ((0, 0), (0, LANE - C), (0, 0)))
    add_w("f1w", f1.reshape(POOL_OUT * LANE, HIDDEN), POOL_OUT * LANE)
    add_b("f1b", sh * raw["fc1_b"] + th)
    add_w("f2w", raw["fc2_w"].T, LANE)
    add_b("f2b", raw["fc2_b"])

    w_slab = jnp.concatenate(w_segs, axis=0).astype(jnp.bfloat16)
    nb = -(-len(b_rows) // 8) * 8
    b_slab = jnp.pad(jnp.stack(b_rows, axis=0),
                     ((0, nb - len(b_rows)), (0, 0))).astype(jnp.float32)
    return {"w": w_slab, "b": b_slab, "woff": w_off, "boff": b_off, "nc": num_classes}


# ----------------------------------------------------------------------------
# Pure-JAX reference (f32, torch-layout params) for validation
# ----------------------------------------------------------------------------
def tcn_reference(x, raw):
    B, L = x.shape
    s0, t0 = _bn_fold(raw["in_bn"])
    h = x[:, None, :] * s0[0] + t0[0]                                  # (B, 1, L)
    for i, blk in enumerate(raw["blocks"]):
        d = 2 ** i

        def conv(z, w, b):
            pad = (w.shape[-1] - 1) * d
            zp = jnp.pad(z, ((0, 0), (0, 0), (pad, 0)))
            out = jax.lax.conv_general_dilated(
                zp, w, window_strides=(1,), padding="VALID", rhs_dilation=(d,),
                dimension_numbers=("NCH", "OIH", "NCH"))
            return out + b[None, :, None]

        s1, t1 = _bn_fold(blk["bn1"])
        s2, t2 = _bn_fold(blk["bn2"])
        a = jax.nn.relu(conv(h, blk["w1"], blk["b1"]) * s1[None, :, None] + t1[None, :, None])
        a = jax.nn.relu(conv(a, blk["w2"], blk["b2"]) * s2[None, :, None] + t2[None, :, None])
        if "wd" in blk:
            res = jnp.einsum("bcl,oc->bol", h, blk["wd"][:, :, 0]) + blk["bd"][None, :, None]
        else:
            res = h
        h = jax.nn.relu(a + res)
    C = h.shape[1]
    pooled = h.reshape(B, C, POOL_OUT, L // POOL_OUT).max(axis=-1)      # (B, C, 4)
    flat = pooled.reshape(B, C * POOL_OUT)
    sh, th = _bn_fold(raw["bn_fc"])
    hid = jax.nn.relu((flat @ raw["fc1_w"].T + raw["fc1_b"]) * sh + th)
    return hid @ raw["fc2_w"].T + raw["fc2_b"]


if __name__ == "__main__":
    key = jax.random.PRNGKey(0)
    kx, kparam = jax.random.split(key)
    B, L, num_classes = 4, 64, 8
    x = jax.random.normal(kx, (B, L), jnp.float32)
    raw = make_params(kparam, num_classes)
    packed = pack_params(raw, num_classes)

    fwd = jax.jit(lambda inp: tcn_encoder_forward(inp, packed))
    out = fwd(x)
    jax.block_until_ready(out)
    assert out.shape == (B, num_classes), out.shape
    assert bool(jnp.all(jnp.isfinite(out)))

    # validate against the f32 reference (bf16 weights/dot operands -> loose tolerance)
    ref = tcn_reference(x, raw)
    err = float(jnp.max(jnp.abs(out - ref)))
    scale = float(jnp.max(jnp.abs(ref))) + 1e-6
    assert err <= 0.08 * scale + 0.08, (err, scale)
    print("KERNEL_OK")
</pallas_src>

<mosaic_0001>
module attributes {stable_mosaic.version = 11 : i64} {
  func.func @fused_tcn_kernel(%arg0: i32, %arg1: memref<1x256x1xf32, #tpu.memory_space<vmem>>, %arg2: memref<1344x64xbf16, #tpu.memory_space<vmem>>, %arg3: memref<16x64xf32, #tpu.memory_space<vmem>>, %arg4: memref<1x4x8xf32, #tpu.memory_space<vmem>>) attributes {dimension_semantics = [#tpu.dimension_semantics<arbitrary>], iteration_bounds = array<i64: 1>, scalar_prefetch = 0 : i64, scratch_operands = 0 : i64, tpu.core_type = #tpu.core_type<tc>, window_params = [{transform_indices = @transform_0, window_bounds = array<i64: 1, 256, 1>}, {pipeline_mode = #tpu.pipeline_mode<synchronous>, transform_indices = @transform_1, window_bounds = array<i64: 1344, 64>}, {pipeline_mode = #tpu.pipeline_mode<synchronous>, transform_indices = @transform_2, window_bounds = array<i64: 16, 64>}, {transform_indices = @transform_3, window_bounds = array<i64: 1, 4, 8>}]} {
    %0 = tpu.iota {dimensions = array<i32: 0>} : vector<256x1xi32>
    %c63_i32 = arith.constant 63 : i32
    %1 = vector.broadcast %c63_i32 : i32 to vector<256x1xi32>
    %2 = arith.andi %0, %1 : vector<256x1xi32>
    %c1_i32 = arith.constant 1 : i32
    %3 = vector.broadcast %c1_i32 : i32 to vector<256x1xi32>
    %4 = arith.cmpi sge, %2, %3 : vector<256x1xi32>
    %c2_i32 = arith.constant 2 : i32
    %5 = vector.broadcast %c2_i32 : i32 to vector<256x1xi32>
    %6 = arith.cmpi sge, %2, %5 : vector<256x1xi32>
    %c4_i32 = arith.constant 4 : i32
    %7 = vector.broadcast %c4_i32 : i32 to vector<256x1xi32>
    %8 = arith.cmpi sge, %2, %7 : vector<256x1xi32>
    %c8_i32 = arith.constant 8 : i32
    %9 = vector.broadcast %c8_i32 : i32 to vector<256x1xi32>
    %10 = arith.cmpi sge, %2, %9 : vector<256x1xi32>
    %c0 = arith.constant 0 : index
    %c0_0 = arith.constant 0 : index
    %c0_1 = arith.constant 0 : index
    %11 = vector.load %arg1[%c0, %c0_0, %c0_1] : memref<1x256x1xf32, #tpu.memory_space<vmem>>, vector<1x256x1xf32>
    %12 = vector.shape_cast %11 : vector<1x256x1xf32> to vector<256x1xf32>
    %13 = vector.shape_cast %12 : vector<256x1xf32> to vector<256x1xf32>
    %14 = vector.broadcast %13 : vector<256x1xf32> to vector<256x64xf32>
    %c0_2 = arith.constant 0 : index
    %c0_3 = arith.constant 0 : index
    %15 = vector.load %arg3[%c0_2, %c0_3] : memref<16x64xf32, #tpu.memory_space<vmem>>, vector<1x64xf32>
    %16 = vector.broadcast %15 : vector<1x64xf32> to vector<256x64xf32>
    %17 = arith.mulf %14, %16 : vector<256x64xf32>
    %c1 = arith.constant 1 : index
    %c0_4 = arith.constant 0 : index
    %18 = vector.load %arg3[%c1, %c0_4] : memref<16x64xf32, #tpu.memory_space<vmem>>, vector<1x64xf32>
    %19 = vector.broadcast %18 : vector<1x64xf32> to vector<256x64xf32>
    %20 = arith.addf %17, %19 : vector<256x64xf32>
    %c4 = arith.constant 4 : index
    %c0_5 = arith.constant 0 : index
    %21 = vector.load %arg3[%c4, %c0_5] : memref<16x64xf32, #tpu.memory_space<vmem>>, vector<1x64xf32>
    %22 = vector.broadcast %21 : vector<1x64xf32> to vector<256x64xf32>
    %23 = arith.mulf %20, %22 : vector<256x64xf32>
    %c2 = arith.constant 2 : index
    %c0_6 = arith.constant 0 : index
    %24 = vector.load %arg3[%c2, %c0_6] : memref<16x64xf32, #tpu.memory_space<vmem>>, vector<1x64xf32>
    %25 = vector.broadcast %24 : vector<1x64xf32> to vector<256x64xf32>
    %26 = arith.mulf %20, %25 : vector<256x64xf32>
    %c2_i32_7 = arith.constant 2 : i32
    %27 = tpu.dynamic_rotate %26 by %c2_i32_7 dim 0 : vector<256x64xf32>, i32 -> vector<256x64xf32>
    %cst = arith.constant 0.000000e+00 : f32
    %28 = vector.shape_cast %6 : vector<256x1xi1> to vector<256x1xi1>
    %29 = vector.broadcast %28 : vector<256x1xi1> to vector<256x64xi1>
    %30 = vector.broadcast %cst : f32 to vector<256x64xf32>
    %31 = arith.select %29, %27, %30 : vector<256x64xi1>, vector<256x64xf32>
    %32 = arith.addf %23, %31 : vector<256x64xf32>
    %c3 = arith.constant 3 : index
    %c0_8 = arith.constant 0 : index
    %33 = vector.load %arg3[%c3, %c0_8] : memref<16x64xf32, #tpu.memory_space<vmem>>, vector<1x64xf32>
    %34 = vector.broadcast %33 : vector<1x64xf32> to vector<256x64xf32>
    %35 = arith.mulf %20, %34 : vector<256x64xf32>
    %c1_i32_9 = arith.constant 1 : i32
    %36 = tpu.dynamic_rotate %35 by %c1_i32_9 dim 0 : vector<256x64xf32>, i32 -> vector<256x64xf32>
    %cst_10 = arith.constant 0.000000e+00 : f32
    %37 = vector.shape_cast %4 : vector<256x1xi1> to vector<256x1xi1>
    %38 = vector.broadcast %37 : vector<256x1xi1> to vector<256x64xi1>
    %39 = vector.broadcast %cst_10 : f32 to vector<256x64xf32>
    %40 = arith.select %38, %36, %39 : vector<256x64xi1>, vector<256x64xf32>
    %41 = arith.addf %32, %40 : vector<256x64xf32>
    %c6 = arith.constant 6 : index
    %c0_11 = arith.constant 0 : index
    %42 = vector.load %arg3[%c6, %c0_11] : memref<16x64xf32, #tpu.memory_space<vmem>>, vector<1x64xf32>
    %43 = vector.broadcast %42 : vector<1x64xf32> to vector<256x64xf32>
    %44 = arith.addf %41, %43 : vector<256x64xf32>
    %cst_12 = arith.constant 0.000000e+00 : f32
    %45 = vector.broadcast %cst_12 : f32 to vector<256x64xf32>
    %46 = arith.maximumf %44, %45 : vector<256x64xf32>
    %47 = arith.truncf %46 : vector<256x64xf32> to vector<256x64xbf16>
    %c128 = arith.constant 128 : index
    %c0_13 = arith.constant 0 : index
    %48 = vector.load %arg2[%c128, %c0_13] : memref<1344x64xbf16, #tpu.memory_space<vmem>>, vector<64x64xbf16>
    %cst_14 = arith.constant dense<0.000000e+00> : vector<256x64xf32>
    %49 = tpu.matmul %47, %48, %cst_14 {dimension_numbers = #tpu.dot_dimension_numbers<[1], [0], [0], [1], [0, 0, 1, 1], [], []>} : vector<256x64xbf16>, vector<64x64xbf16>, vector<256x64xf32> -> vector<256x64xf32>
    %c0_15 = arith.constant 0 : index
    %c0_16 = arith.constant 0 : index
    %50 = vector.load %arg2[%c0_15, %c0_16] : memref<1344x64xbf16, #tpu.memory_space<vmem>>, vector<64x64xbf16>
    %cst_17 = arith.constant dense<0.000000e+00> : vector<256x64xf32>
    %51 = tpu.matmul %47, %50, %cst_17 {dimension_numbers = #tpu.dot_dimension_numbers<[1], [0], [0], [1], [0, 0, 1, 1], [], []>} : vector<256x64xbf16>, vector<64x64xbf16>, vector<256x64xf32> -> vector<256x64xf32>
    %c2_i32_18 = arith.constant 2 : i32
    %52 = tpu.dynamic_rotate %51 by %c2_i32_18 dim 0 : vector<256x64xf32>, i32 -> vector<256x64xf32>
    %cst_19 = arith.constant 0.000000e+00 : f32
    %53 = vector.shape_cast %6 : vector<256x1xi1> to vector<256x1xi1>
    %54 = vector.broadcast %53 : vector<256x1xi1> to vector<256x64xi1>
    %55 = vector.broadcast %cst_19 : f32 to vector<256x64xf32>
    %56 = arith.select %54, %52, %55 : vector<256x64xi1>, vector<256x64xf32>
    %57 = arith.addf %49, %56 : vector<256x64xf32>
    %c64 = arith.constant 64 : index
    %c0_20 = arith.constant 0 : index
    %58 = vector.load %arg2[%c64, %c0_20] : memref<1344x64xbf16, #tpu.memory_space<vmem>>, vector<64x64xbf16>
    %cst_21 = arith.constant dense<0.000000e+00> : vector<256x64xf32>
    %59 = tpu.matmul %47, %58, %cst_21 {dimension_numbers = #tpu.dot_dimension_numbers<[1], [0], [0], [1], [0, 0, 1, 1], [], []>} : vector<256x64xbf16>, vector<64x64xbf16>, vector<256x64xf32> -> vector<256x64xf32>
    %c1_i32_22 = arith.constant 1 : i32
    %60 = tpu.dynamic_rotate %59 by %c1_i32_22 dim 0 : vector<256x64xf32>, i32 -> vector<256x64xf32>
    %cst_23 = arith.constant 0.000000e+00 : f32
    %61 = vector.shape_cast %4 : vector<256x1xi1> to vector<256x1xi1>
    %62 = vector.broadcast %61 : vector<256x1xi1> to vector<256x64xi1>
    %63 = vector.broadcast %cst_23 : f32 to vector<256x64xf32>
    %64 = arith.select %62, %60, %63 : vector<256x64xi1>, vector<256x64xf32>
    %65 = arith.addf %57, %64 : vector<256x64xf32>
    %c7 = arith.constant 7 : index
    %c0_24 = arith.constant 0 : index
    %66 = vector.load %arg3[%c7, %c0_24] : memref<16x64xf32, #tpu.memory_space<vmem>>, vector<1x64xf32>
    %67 = vector.broadcast %66 : vector<1x64xf32> to vector<256x64xf32>
    %68 = arith.addf %65, %67 : vector<256x64xf32>
    %cst_25 = arith.constant 0.000000e+00 : f32
    %69 = vector.broadcast %cst_25 : f32 to vector<256x64xf32>
    %70 = arith.maximumf %68, %69 : vector<256x64xf32>
    %c5 = arith.constant 5 : index
    %c0_26 = arith.constant 0 : index
    %71 = vector.load %arg3[%c5, %c0_26] : memref<16x64xf32, #tpu.memory_space<vmem>>, vector<1x64xf32>
    %72 = vector.broadcast %71 : vector<1x64xf32> to vector<256x64xf32>
    %73 = arith.mulf %20, %72 : vector<256x64xf32>
    %74 = arith.addf %70, %73 : vector<256x64xf32>
    %c8 = arith.constant 8 : index
    %c0_27 = arith.constant 0 : index
    %75 = vector.load %arg3[%c8, %c0_27] : memref<16x64xf32, #tpu.memory_space<vmem>>, vector<1x64xf32>
    %76 = vector.broadcast %75 : vector<1x64xf32> to vector<256x64xf32>
    %77 = arith.addf %74, %76 : vector<256x64xf32>
    %cst_28 = arith.constant 0.000000e+00 : f32
    %78 = vector.broadcast %cst_28 : f32 to vector<256x64xf32>
    %79 = arith.maximumf %77, %78 : vector<256x64xf32>
    %80 = arith.truncf %79 : vector<256x64xf32> to vector<256x64xbf16>
    %c320 = arith.constant 320 : index
    %c0_29 = arith.constant 0 : index
    %81 = vector.load %arg2[%c320, %c0_29] : memref<1344x64xbf16, #tpu.memory_space<vmem>>, vector<64x64xbf16>
    %cst_30 = arith.constant dense<0.000000e+00> : vector<256x64xf32>
    %82 = tpu.matmul %80, %81, %cst_30 {dimension_numbers = #tpu.dot_dimension_numbers<[1], [0], [0], [1], [0, 0, 1, 1], [], []>} : vector<256x64xbf16>, vector<64x64xbf16>, vector<256x64xf32> -> vector<256x64xf32>
    %c192 = arith.constant 192 : index
    %c0_31 = arith.constant 0 : index
    %83 = vector.load %arg2[%c192, %c0_31] : memref<1344x64xbf16, #tpu.memory_space<vmem>>, vector<64x64xbf16>
    %cst_32 = arith.constant dense<0.000000e+00> : vector<256x64xf32>
    %84 = tpu.matmul %80, %83, %cst_32 {dimension_numbers = #tpu.dot_dimension_numbers<[1], [0], [0], [1], [0, 0, 1, 1], [], []>} : vector<256x64xbf16>, vector<64x64xbf16>, vector<256x64xf32> -> vector<256x64xf32>
    %c4_i32_33 = arith.constant 4 : i32
    %85 = tpu.dynamic_rotate %84 by %c4_i32_33 dim 0 : vector<256x64xf32>, i32 -> vector<256x64xf32>
    %cst_34 = arith.constant 0.000000e+00 : f32
    %86 = vector.shape_cast %8 : vector<256x1xi1> to vector<256x1xi1>
    %87 = vector.broadcast %86 : vector<256x1xi1> to vector<256x64xi1>
    %88 = vector.broadcast %cst_34 : f32 to vector<256x64xf32>
    %89 = arith.select %87, %85, %88 : vector<256x64xi1>, vector<256x64xf32>
    %90 = arith.addf %82, %89 : vector<256x64xf32>
    %c256 = arith.constant 256 : index
    %c0_35 = arith.constant 0 : index
    %91 = vector.load %arg2[%c256, %c0_35] : memref<1344x64xbf16, #tpu.memory_space<vmem>>, vector<64x64xbf16>
    %cst_36 = arith.constant dense<0.000000e+00> : vector<256x64xf32>
    %92 = tpu.matmul %80, %91, %cst_36 {dimension_numbers = #tpu.dot_dimension_numbers<[1], [0], [0], [1], [0, 0, 1, 1], [], []>} : vector<256x64xbf16>, vector<64x64xbf16>, vector<256x64xf32> -> vector<256x64xf32>
    %c2_i32_37 = arith.constant 2 : i32
    %93 = tpu.dynamic_rotate %92 by %c2_i32_37 dim 0 : vector<256x64xf32>, i32 -> vector<256x64xf32>
    %cst_38 = arith.constant 0.000000e+00 : f32
    %94 = vector.shape_cast %6 : vector<256x1xi1> to vector<256x1xi1>
    %95 = vector.broadcast %94 : vector<256x1xi1> to vector<256x64xi1>
    %96 = vector.broadcast %cst_38 : f32 to vector<256x64xf32>
    %97 = arith.select %95, %93, %96 : vector<256x64xi1>, vector<256x64xf32>
    %98 = arith.addf %90, %97 : vector<256x64xf32>
    %c9 = arith.constant 9 : index
    %c0_39 = arith.constant 0 : index
    %99 = vector.load %arg3[%c9, %c0_39] : memref<16x64xf32, #tpu.memory_space<vmem>>, vector<1x64xf32>
    %100 = vector.broadcast %99 : vector<1x64xf32> to vector<256x64xf32>
    %101 = arith.addf %98, %100 : vector<256x64xf32>
    %cst_40 = arith.constant 0.000000e+00 : f32
    %102 = vector.broadcast %cst_40 : f32 to vector<256x64xf32>
    %103 = arith.maximumf %101, %102 : vector<256x64xf32>
    %104 = arith.truncf %103 : vector<256x64xf32> to vector<256x64xbf16>
    %c576 = arith.constant 576 : index
    %c0_41 = arith.constant 0 : index
    %105 = vector.load %arg2[%c576, %c0_41] : memref<1344x64xbf16, #tpu.memory_space<vmem>>, vector<64x64xbf16>
    %cst_42 = arith.constant dense<0.000000e+00> : vector<256x64xf32>
    %106 = tpu.matmul %104, %105, %cst_42 {dimension_numbers = #tpu.dot_dimension_numbers<[1], [0], [0], [1], [0, 0, 1, 1], [], []>} : vector<256x64xbf16>, vector<64x64xbf16>, vector<256x64xf32> -> vector<256x64xf32>
    %c448 = arith.constant 448 : index
    %c0_43 = arith.constant 0 : index
    %107 = vector.load %arg2[%c448, %c0_43] : memref<1344x64xbf16, #tpu.memory_space<vmem>>, vector<64x64xbf16>
    %cst_44 = arith.constant dense<0.000000e+00> : vector<256x64xf32>
    %108 = tpu.matmul %104, %107, %cst_44 {dimension_numbers = #tpu.dot_dimension_numbers<[1], [0], [0], [1], [0, 0, 1, 1], [], []>} : vector<256x64xbf16>, vector<64x64xbf16>, vector<256x64xf32> -> vector<256x64xf32>
    %c4_i32_45 = arith.constant 4 : i32
    %109 = tpu.dynamic_rotate %108 by %c4_i32_45 dim 0 : vector<256x64xf32>, i32 -> vector<256x64xf32>
    %cst_46 = arith.constant 0.000000e+00 : f32
    %110 = vector.shape_cast %8 : vector<256x1xi1> to vector<256x1xi1>
    %111 = vector.broadcast %110 : vector<256x1xi1> to vector<256x64xi1>
    %112 = vector.broadcast %cst_46 : f32 to vector<256x64xf32>
    %113 = arith.select %111, %109, %112 : vector<256x64xi1>, vector<256x64xf32>
    %114 = arith.addf %106, %113 : vector<256x64xf32>
    %c512 = arith.constant 512 : index
    %c0_47 = arith.constant 0 : index
    %115 = vector.load %arg2[%c512, %c0_47] : memref<1344x64xbf16, #tpu.memory_space<vmem>>, vector<64x64xbf16>
    %cst_48 = arith.constant dense<0.000000e+00> : vector<256x64xf32>
    %116 = tpu.matmul %104, %115, %cst_48 {dimension_numbers = #tpu.dot_dimension_numbers<[1], [0], [0], [1], [0, 0, 1, 1], [], []>} : vector<256x64xbf16>, vector<64x64xbf16>, vector<256x64xf32> -> vector<256x64xf32>
    %c2_i32_49 = arith.constant 2 : i32
    %117 = tpu.dynamic_rotate %116 by %c2_i32_49 dim 0 : vector<256x64xf32>, i32 -> vector<256x64xf32>
    %cst_50 = arith.constant 0.000000e+00 : f32
    %118 = vector.shape_cast %6 : vector<256x1xi1> to vector<256x1xi1>
    %119 = vector.broadcast %118 : vector<256x1xi1> to vector<256x64xi1>
    %120 = vector.broadcast %cst_50 : f32 to vector<256x64xf32>
    %121 = arith.select %119, %117, %120 : vector<256x64xi1>, vector<256x64xf32>
    %122 = arith.addf %114, %121 : vector<256x64xf32>
    %c10 = arith.constant 10 : index
    %c0_51 = arith.constant 0 : index
    %123 = vector.load %arg3[%c10, %c0_51] : memref<16x64xf32, #tpu.memory_space<vmem>>, vector<1x64xf32>
    %124 = vector.broadcast %123 : vector<1x64xf32> to vector<256x64xf32>
    %125 = arith.addf %122, %124 : vector<256x64xf32>
    %cst_52 = arith.constant 0.000000e+00 : f32
    %126 = vector.broadcast %cst_52 : f32 to vector<256x64xf32>
    %127 = arith.maximumf %125, %126 : vector<256x64xf32>
    %128 = arith.truncf %79 : vector<256x64xf32> to vector<256x64xbf16>
    %c384 = arith.constant 384 : index
    %c0_53 = arith.constant 0 : index
    %129 = vector.load %arg2[%c384, %c0_53] : memref<1344x64xbf16, #tpu.memory_space<vmem>>, vector<64x64xbf16>
    %cst_54 = arith.constant dense<0.000000e+00> : vector<256x64xf32>
    %130 = tpu.matmul %128, %129, %cst_54 {dimension_numbers = #tpu.dot_dimension_numbers<[1], [0], [0], [1], [0, 0, 1, 1], [], []>} : vector<256x64xbf16>, vector<64x64xbf16>, vector<256x64xf32> -> vector<256x64xf32>
    %c11 = arith.constant 11 : index
    %c0_55 = arith.constant 0 : index
    %131 = vector.load %arg3[%c11, %c0_55] : memref<16x64xf32, #tpu.memory_space<vmem>>, vector<1x64xf32>
    %132 = vector.broadcast %131 : vector<1x64xf32> to vector<256x64xf32>
    %133 = arith.addf %130, %132 : vector<256x64xf32>
    %134 = arith.addf %127, %133 : vector<256x64xf32>
    %cst_56 = arith.constant 0.000000e+00 : f32
    %135 = vector.broadcast %cst_56 : f32 to vector<256x64xf32>
    %136 = arith.maximumf %134, %135 : vector<256x64xf32>
    %137 = arith.truncf %136 : vector<256x64xf32> to vector<256x64xbf16>
    %c768 = arith.constant 768 : index
    %c0_57 = arith.constant 0 : index
    %138 = vector.load %arg2[%c768, %c0_57] : memref<1344x64xbf16, #tpu.memory_space<vmem>>, vector<64x64xbf16>
    %cst_58 = arith.constant dense<0.000000e+00> : vector<256x64xf32>
    %139 = tpu.matmul %137, %138, %cst_58 {dimension_numbers = #tpu.dot_dimension_numbers<[1], [0], [0], [1], [0, 0, 1, 1], [], []>} : vector<256x64xbf16>, vector<64x64xbf16>, vector<256x64xf32> -> vector<256x64xf32>
    %c640 = arith.constant 640 : index
    %c0_59 = arith.constant 0 : index
    %140 = vector.load %arg2[%c640, %c0_59] : memref<1344x64xbf16, #tpu.memory_space<vmem>>, vector<64x64xbf16>
    %cst_60 = arith.constant dense<0.000000e+00> : vector<256x64xf32>
    %141 = tpu.matmul %137, %140, %cst_60 {dimension_numbers = #tpu.dot_dimension_numbers<[1], [0], [0], [1], [0, 0, 1, 1], [], []>} : vector<256x64xbf16>, vector<64x64xbf16>, vector<256x64xf32> -> vector<256x64xf32>
    %c8_i32_61 = arith.constant 8 : i32
    %142 = tpu.dynamic_rotate %141 by %c8_i32_61 dim 0 : vector<256x64xf32>, i32 -> vector<256x64xf32>
    %cst_62 = arith.constant 0.000000e+00 : f32
    %143 = vector.shape_cast %10 : vector<256x1xi1> to vector<256x1xi1>
    %144 = vector.broadcast %143 : vector<256x1xi1> to vector<256x64xi1>
    %145 = vector.broadcast %cst_62 : f32 to vector<256x64xf32>
    %146 = arith.select %144, %142, %145 : vector<256x64xi1>, vector<256x64xf32>
    %147 = arith.addf %139, %146 : vector<256x64xf32>
    %c704 = arith.constant 704 : index
    %c0_63 = arith.constant 0 : index
    %148 = vector.load %arg2[%c704, %c0_63] : memref<1344x64xbf16, #tpu.memory_space<vmem>>, vector<64x64xbf16>
    %cst_64 = arith.constant dense<0.000000e+00> : vector<256x64xf32>
    %149 = tpu.matmul %137, %148, %cst_64 {dimension_numbers = #tpu.dot_dimension_numbers<[1], [0], [0], [1], [0, 0, 1, 1], [], []>} : vector<256x64xbf16>, vector<64x64xbf16>, vector<256x64xf32> -> vector<256x64xf32>
    %c4_i32_65 = arith.constant 4 : i32
    %150 = tpu.dynamic_rotate %149 by %c4_i32_65 dim 0 : vector<256x64xf32>, i32 -> vector<256x64xf32>
    %cst_66 = arith.constant 0.000000e+00 : f32
    %151 = vector.shape_cast %8 : vector<256x1xi1> to vector<256x1xi1>
    %152 = vector.broadcast %151 : vector<256x1xi1> to vector<256x64xi1>
    %153 = vector.broadcast %cst_66 : f32 to vector<256x64xf32>
    %154 = arith.select %152, %150, %153 : vector<256x64xi1>, vector<256x64xf32>
    %155 = arith.addf %147, %154 : vector<256x64xf32>
    %c12 = arith.constant 12 : index
    %c0_67 = arith.constant 0 : index
    %156 = vector.load %arg3[%c12, %c0_67] : memref<16x64xf32, #tpu.memory_space<vmem>>, vector<1x64xf32>
    %157 = vector.broadcast %156 : vector<1x64xf32> to vector<256x64xf32>
    %158 = arith.addf %155, %157 : vector<256x64xf32>
    %cst_68 = arith.constant 0.000000e+00 : f32
    %159 = vector.broadcast %cst_68 : f32 to vector<256x64xf32>
    %160 = arith.maximumf %158, %159 : vector<256x64xf32>
    %161 = arith.truncf %160 : vector<256x64xf32> to vector<256x64xbf16>
    %c960 = arith.constant 960 : index
    %c0_69 = arith.constant 0 : index
    %162 = vector.load %arg2[%c960, %c0_69] : memref<1344x64xbf16, #tpu.memory_space<vmem>>, vector<64x64xbf16>
    %cst_70 = arith.constant dense<0.000000e+00> : vector<256x64xf32>
    %163 = tpu.matmul %161, %162, %cst_70 {dimension_numbers = #tpu.dot_dimension_numbers<[1], [0], [0], [1], [0, 0, 1, 1], [], []>} : vector<256x64xbf16>, vector<64x64xbf16>, vector<256x64xf32> -> vector<256x64xf32>
    %c832 = arith.constant 832 : index
    %c0_71 = arith.constant 0 : index
    %164 = vector.load %arg2[%c832, %c0_71] : memref<1344x64xbf16, #tpu.memory_space<vmem>>, vector<64x64xbf16>
    %cst_72 = arith.constant dense<0.000000e+00> : vector<256x64xf32>
    %165 = tpu.matmul %161, %164, %cst_72 {dimension_numbers = #tpu.dot_dimension_numbers<[1], [0], [0], [1], [0, 0, 1, 1], [], []>} : vector<256x64xbf16>, vector<64x64xbf16>, vector<256x64xf32> -> vector<256x64xf32>
    %c8_i32_73 = arith.constant 8 : i32
    %166 = tpu.dynamic_rotate %165 by %c8_i32_73 dim 0 : vector<256x64xf32>, i32 -> vector<256x64xf32>
    %cst_74 = arith.constant 0.000000e+00 : f32
    %167 = vector.shape_cast %10 : vector<256x1xi1> to vector<256x1xi1>
    %168 = vector.broadcast %167 : vector<256x1xi1> to vector<256x64xi1>
    %169 = vector.broadcast %cst_74 : f32 to vector<256x64xf32>
    %170 = arith.select %168, %166, %169 : vector<256x64xi1>, vector<256x64xf32>
    %171 = arith.addf %163, %170 : vector<256x64xf32>
    %c896 = arith.constant 896 : index
    %c0_75 = arith.constant 0 : index
    %172 = vector.load %arg2[%c896, %c0_75] : memref<1344x64xbf16, #tpu.memory_space<vmem>>, vector<64x64xbf16>
    %cst_76 = arith.constant dense<0.000000e+00> : vector<256x64xf32>
    %173 = tpu.matmul %161, %172, %cst_76 {dimension_numbers = #tpu.dot_dimension_numbers<[1], [0], [0], [1], [0, 0, 1, 1], [], []>} : vector<256x64xbf16>, vector<64x64xbf16>, vector<256x64xf32> -> vector<256x64xf32>
    %c4_i32_77 = arith.constant 4 : i32
    %174 = tpu.dynamic_rotate %173 by %c4_i32_77 dim 0 : vector<256x64xf32>, i32 -> vector<256x64xf32>
    %cst_78 = arith.constant 0.000000e+00 : f32
    %175 = vector.shape_cast %8 : vector<256x1xi1> to vector<256x1xi1>
    %176 = vector.broadcast %175 : vector<256x1xi1> to vector<256x64xi1>
    %177 = vector.broadcast %cst_78 : f32 to vector<256x64xf32>
    %178 = arith.select %176, %174, %177 : vector<256x64xi1>, vector<256x64xf32>
    %179 = arith.addf %171, %178 : vector<256x64xf32>
    %c13 = arith.constant 13 : index
    %c0_79 = arith.constant 0 : index
    %180 = vector.load %arg3[%c13, %c0_79] : memref<16x64xf32, #tpu.memory_space<vmem>>, vector<1x64xf32>
    %181 = vector.broadcast %180 : vector<1x64xf32> to vector<256x64xf32>
    %182 = arith.addf %179, %181 : vector<256x64xf32>
    %cst_80 = arith.constant 0.000000e+00 : f32
    %183 = vector.broadcast %cst_80 : f32 to vector<256x64xf32>
    %184 = arith.maximumf %182, %183 : vector<256x64xf32>
    %185 = arith.addf %184, %136 : vector<256x64xf32>
    %cst_81 = arith.constant 0.000000e+00 : f32
    %186 = vector.broadcast %cst_81 : f32 to vector<256x64xf32>
    %187 = arith.maximumf %185, %186 : vector<256x64xf32>
    %188 = vector.shape_cast %187 : vector<256x64xf32> to vector<4x4x16x64xf32>
    %189 = vector.extract_strided_slice %188 {offsets = [0, 0, 0, 0], sizes = [4, 1, 16, 64], strides = [1, 1, 1, 1]} : vector<4x4x16x64xf32> to vector<4x1x16x64xf32>
    %190 = vector.shape_cast %189 : vector<4x1x16x64xf32> to vector<4x16x64xf32>
    %cst_82 = arith.constant dense<0xFF800000> : vector<4x64xf32>
    %191 = vector.multi_reduction <maximumf>, %190, %cst_82 [1] : vector<4x16x64xf32> to vector<4x64xf32>
    %192 = vector.extract_strided_slice %188 {offsets = [0, 1, 0, 0], sizes = [4, 1, 16, 64], strides = [1, 1, 1, 1]} : vector<4x4x16x64xf32> to vector<4x1x16x64xf32>
    %193 = vector.shape_cast %192 : vector<4x1x16x64xf32> to vector<4x16x64xf32>
    %cst_83 = arith.constant dense<0xFF800000> : vector<4x64xf32>
    %194 = vector.multi_reduction <maximumf>, %193, %cst_83 [1] : vector<4x16x64xf32> to vector<4x64xf32>
    %195 = vector.extract_strided_slice %188 {offsets = [0, 2, 0, 0], sizes = [4, 1, 16, 64], strides = [1, 1, 1, 1]} : vector<4x4x16x64xf32> to vector<4x1x16x64xf32>
    %196 = vector.shape_cast %195 : vector<4x1x16x64xf32> to vector<4x16x64xf32>
    %cst_84 = arith.constant dense<0xFF800000> : vector<4x64xf32>
    %197 = vector.multi_reduction <maximumf>, %196, %cst_84 [1] : vector<4x16x64xf32> to vector<4x64xf32>
    %198 = vector.extract_strided_slice %188 {offsets = [0, 3, 0, 0], sizes = [4, 1, 16, 64], strides = [1, 1, 1, 1]} : vector<4x4x16x64xf32> to vector<4x1x16x64xf32>
    %199 = vector.shape_cast %198 : vector<4x1x16x64xf32> to vector<4x16x64xf32>
    %cst_85 = arith.constant dense<0xFF800000> : vector<4x64xf32>
    %200 = vector.multi_reduction <maximumf>, %199, %cst_85 [1] : vector<4x16x64xf32> to vector<4x64xf32>
    %201 = tpu.concatenate %191, %194, %197, %200 in 1 : vector<4x64xf32>, vector<4x64xf32>, vector<4x64xf32>, vector<4x64xf32> -> vector<4x256xf32>
    %202 = arith.truncf %201 : vector<4x256xf32> to vector<4x256xbf16>
    %c1024 = arith.constant 1024 : index
    %c0_86 = arith.constant 0 : index
    %203 = vector.load %arg2[%c1024, %c0_86] : memref<1344x64xbf16, #tpu.memory_space<vmem>>, vector<256x64xbf16>
    %cst_87 = arith.constant dense<0.000000e+00> : vector<4x64xf32>
    %204 = tpu.matmul %202, %203, %cst_87 {dimension_numbers = #tpu.dot_dimension_numbers<[1], [0], [0], [1], [0, 0, 1, 1], [], []>} : vector<4x256xbf16>, vector<256x64xbf16>, vector<4x64xf32> -> vector<4x64xf32>
    %c14 = arith.constant 14 : index
    %c0_88 = arith.constant 0 : index
    %205 = vector.load %arg3[%c14, %c0_88] : memref<16x64xf32, #tpu.memory_space<vmem>>, vector<1x64xf32>
    %206 = vector.broadcast %205 : vector<1x64xf32> to vector<4x64xf32>
    %207 = arith.addf %204, %206 : vector<4x64xf32>
    %cst_89 = arith.constant 0.000000e+00 : f32
    %208 = vector.broadcast %cst_89 : f32 to vector<4x64xf32>
    %209 = arith.maximumf %207, %208 : vector<4x64xf32>
    %210 = arith.truncf %209 : vector<4x64xf32> to vector<4x64xbf16>
    %c1280 = arith.constant 1280 : index
    %c0_90 = arith.constant 0 : index
    %211 = vector.load %arg2[%c1280, %c0_90] : memref<1344x64xbf16, #tpu.memory_space<vmem>>, vector<64x64xbf16>
    %cst_91 = arith.constant dense<0.000000e+00> : vector<4x64xf32>
    %212 = tpu.matmul %210, %211, %cst_91 {dimension_numbers = #tpu.dot_dimension_numbers<[1], [0], [0], [1], [0, 0, 1, 1], [], []>} : vector<4x64xbf16>, vector<64x64xbf16>, vector<4x64xf32> -> vector<4x64xf32>
    %c15 = arith.constant 15 : index
    %c0_92 = arith.constant 0 : index
    %213 = vector.load %arg3[%c15, %c0_92] : memref<16x64xf32, #tpu.memory_space<vmem>>, vector<1x64xf32>
    %214 = vector.broadcast %213 : vector<1x64xf32> to vector<4x64xf32>
    %215 = arith.addf %212, %214 : vector<4x64xf32>
    %216 = vector.extract_strided_slice %215 {offsets = [0, 0], sizes = [4, 8], strides = [1, 1]} : vector<4x64xf32> to vector<4x8xf32>
    %c0_93 = arith.constant 0 : index
    %c0_94 = arith.constant 0 : index
    %c0_95 = arith.constant 0 : index
    %217 = vector.load %arg4[%c0_93, %c0_94, %c0_95] : memref<1x4x8xf32, #tpu.memory_space<vmem>>, vector<1x4x8xf32>
    %218 = vector.shape_cast %217 : vector<1x4x8xf32> to vector<4x8xf32>
    %219 = vector.shape_cast %216 : vector<4x8xf32> to vector<1x4x8xf32>
    tpu.vector_store %arg4[%c0_93, %c0_94, %c0_95], %219 {strides = array<i32>} : memref<1x4x8xf32, #tpu.memory_space<vmem>>, vector<1x4x8xf32>,
    return
  }
  func.func @transform_0(%arg0: i32) -> (i32, i32, i32) {
    %c0_i32 = arith.constant 0 : i32
    %c0_i32_0 = arith.constant 0 : i32
    %c0_i32_1 = arith.constant 0 : i32
    return %arg0, %c0_i32, %c0_i32_0 : i32, i32, i32
  }
  func.func @transform_1(%arg0: i32) -> (i32, i32) {
    %c0_i32 = arith.constant 0 : i32
    %c0_i32_0 = arith.constant 0 : i32
    %c0_i32_1 = arith.constant 0 : i32
    return %c0_i32, %c0_i32_0 : i32, i32
  }
  func.func @transform_2(%arg0: i32) -> (i32, i32) {
    %c0_i32 = arith.constant 0 : i32
    %c0_i32_0 = arith.constant 0 : i32
    %c0_i32_1 = arith.constant 0 : i32
    return %c0_i32, %c0_i32_0 : i32, i32
  }
  func.func @transform_3(%arg0: i32) -> (i32, i32, i32) {
    %c0_i32 = arith.constant 0 : i32
    %c0_i32_0 = arith.constant 0 : i32
    %c0_i32_1 = arith.constant 0 : i32
    return %arg0, %c0_i32, %c0_i32_0 : i32, i32, i32
  }
}

</mosaic_0001>

<bundles_post_ra>
// kernel: _lambda_.1
= control target key start
LH: loop header
LB: loop body
LE: loop exit
PB: predicated region body
PF: predicated region fallthrough
CT: control target
= control target key end

     0   :  { %8 = vsyncpa [#allocation3], 0  ;;  %s12787_s0 = inlined_call_operand.vmem [shape: f32[1,256,1], index: 0, kind: input, shape index: {}]   ;;  %s12788_s1 = inlined_call_operand.hbm [shape: bf16[1344,64], index: 1, kind: input, shape index: {}]   ;;  %s12789_s2 = inlined_call_operand.vmem [shape: f32[16,64], index: 2, kind: input, shape index: {}]   ;;  %s12790_s3 = inlined_call_operand.hbm [shape: f32[1,4,8], index: 3, kind: output, shape index: {}]  }
   0x1   :  { %9 = vsyncpa [#allocation4], 0  ;;  %s8158_s12 = smov [#allocation2]  }
   0x2   :  { %s17_s13 = sshll.u32 %s8158_s12, 4  ;;  %s18_s13 = int_to_ptr.vmem [resolvable:$true] %s17_s13 }
   0x3   :  { %s8122_s14 = scalar_lea.vmem %s18_s13, 10752  ;;  %p8127_p1 = scmp.lt.s32.totalorder %s18_s13, %s18_s13 }
   0x4   :  { %p8123_p0 = scmp.ne.s32.totalorder %s18_s13, %s8122_s14  ;;  %p8128_p2 = scmp.lt.s32.totalorder %s8122_s14, %s8122_s14 }
   0x6   :  { %p8129_p3 = por %p8128_p2, %p8127_p1 }
   0x8   :  { %p8130_p4 = pnand %p8129_p3, %p8123_p0 }
   0xa   :  { %8133 = shalt.err (!%p8130_p4)
}
   0xb   :  { %s8159_s15 = smov 64   ;;  %s8160_s16 = smov 4  }
   0xc   :  { %23 = dma.hbm_to_vmem [thread:$0]  %s12788_s1, 10752, %s18_s13, [#allocation3], %s8159_s15, %s8159_s15, %s8160_s16  }
   0xd   :  { %8154 = dma.done.wait [#allocation3], 10752  }
   0xe   :  { %8155 = vsyncadd [#allocation3], 4294956544  ;;  %v8161_v0 = vmov 0   ;;  %v224_v1 = vld [vmem:[%s12787_s0 + $0x8] sm:$0xff]  ;;  %v223_v2 = vld [vmem:[%s12787_s0] sm:$0xff]  ;;  %v30_v50 = vlaneseq  ;;  %vm1111_vm4 = vcmask 523264  }
   0xf   :  { %8024 = vset.pattern.permute.xlu1 %v8161_v0  ;;  %8023 = vset.pattern.permute.xlu0 %v8161_v0  ;;  %v225_v3 = vld [vmem:[%s12787_s0 + $0x10] sm:$0xff]  ;;  %v254_v4 = vld [vmem:[%s12787_s0 + $0xf8] sm:$0xff]  ;;  %v227_v5 = vld [vmem:[%s12787_s0 + $0x20] sm:$0xff]  ;;  %s8164_s4 = smov [#allocation5]  }
  0x10   :  { %262 = vperm.xlu1 %8024, %v224_v1   ;;  %257 = vperm.xlu0 %8023, %v223_v2   ;;  %v226_v6 = vld [vmem:[%s12787_s0 + $0x18] sm:$0xff]  ;;  %v229_v7 = vld [vmem:[%s12787_s0 + $0x30] sm:$0xff]  ;;  %v228_v8 = vld [vmem:[%s12787_s0 + $0x28] sm:$0xff]  ;;  %v8314_v58 = vshrl.u32 %v30_v50, 7 }
  0x11   :  { %v231_v9 = vld [vmem:[%s12787_s0 + $0x40] sm:$0xff]  ;;  %v230_v10 = vld [vmem:[%s12787_s0 + $0x38] sm:$0xff]  ;;  %v8032_v13 = vld [vmem:[#allocation2 + $0x10] sm:$0xff]  }
  0x12   :  { %v8030_v11 = vld [vmem:[#allocation2 + $0x18] sm:$0xff]   ;;  %v233_v14 = vld [vmem:[%s12787_s0 + $0x50] sm:$0xff]  ;;  %v232_v15 = vld [vmem:[%s12787_s0 + $0x48] sm:$0xff]  ;;  %v8329_v1 = vand.u32 63, %v8314_v58  ;;  %vm595_vm0 = vcmp.lt.s32.totalorder %v8314_v58, 2  ;;  %vm825_vm2 = vcmp.lt.s32.totalorder %v8314_v58, 1 }
  0x13   :  { %v8031_v12 = vld [vmem:[#allocation2 + $0x58] sm:$0xff]   ;;  %7364 = vmatprep.subr.bf16.mxu0 %v8030_v11  ;;  %v8033_v16 = vld [vmem:[#allocation2 + $0x50] sm:$0xff]   ;;  %v235_v17 = vld [vmem:[%s12787_s0 + $0x60] sm:$0xff]  ;;  %vm2427_vm11 = vcmp.lt.s32.totalorder %v8314_v58, 4 }
  0x14   :  { %267 = vperm.xlu1 %8024, %v225_v3   ;;  %412 = vperm.xlu0 %8023, %v254_v4   ;;  %v234_v18 = vld [vmem:[%s12787_s0 + $0x58] sm:$0xff]  ;;  %v8034_v19 = vld [vmem:[#allocation2 + $0x8] sm:$0xff]   ;;  %v237_v21 = vld [vmem:[%s12787_s0 + $0x70] sm:$0xff]  ;;  %12977 = vst [vmem:[#allocation12_spill] sm:$0xff] %v8329_v1  ;;  %v39_v3 = vadd.s32 64, %v8314_v58  ;;  %v47_v4 = vadd.s32 128, %v8314_v58 }
  0x15   :  { %7365 = vmatpush3.bf16.msra.mxu0 %v8030_v11  ;;  %7404 = vmatprep.subr.bf16.mxu1 %v8031_v12  ;;  %v8035_v20 = vld [vmem:[#allocation2 + $0x48] sm:$0xff]   ;;  %v8036_v23 = vld [vmem:[#allocation2] sm:$0xff]   ;;  %v238_v26 = vld [vmem:[%s12787_s0 + $0x78] sm:$0xff]  ;;  %vm127_vm1 = vcmp.ge.s32.totalorder %v8329_v1, 2  ;;  %vm95_vm3 = vcmp.ge.s32.totalorder %v8329_v1, 1 }
  0x16   :  { %7405 = vmatpush3.bf16.msra.mxu1 %v8031_v12  ;;  %7366 = vmatprep.subr.bf16.mxu0 %v8032_v13  ;;  %v236_v22 = vld [vmem:[%s12787_s0 + $0x68] sm:$0xff]  ;;  %v8037_v24 = vld [vmem:[#allocation2 + $0x40] sm:$0xff]   ;;  %v241_v27 = vld [vmem:[%s12787_s0 + $0x90] sm:$0xff] }
  0x17   :  { %7406 = vmatprep.subr.bf16.mxu1 %v8033_v16  ;;  %v239_v25 = vld [vmem:[%s12787_s0 + $0x80] sm:$0xff]  ;;  %v240_v28 = vld [vmem:[%s12787_s0 + $0x88] sm:$0xff]  ;;  %v242_v30 = vld [vmem:[%s12787_s0 + $0x98] sm:$0xff] }
  0x18   :  { %277 = vperm.xlu1 %8024, %v227_v5   ;;  %272 = vperm.xlu0 %8023, %v226_v6   ;;  %v243_v29 = vld [vmem:[%s12787_s0 + $0xa0] sm:$0xff]  ;;  %v245_v31 = vld [vmem:[%s12787_s0 + $0xb0] sm:$0xff]  ;;  %v244_v32 = vld [vmem:[%s12787_s0 + $0xa8] sm:$0xff] }
  0x19   :  { %7367 = vmatpush3.bf16.msra.mxu0 %v8032_v13  ;;  %v8262_v33 = vld [vmem:[#allocation2 + $0x38] sm:$0xff]   ;;  %v247_v34 = vld [vmem:[%s12787_s0 + $0xc0] sm:$0xff]  ;;  %v249_v36 = vld [vmem:[%s12787_s0 + $0xd0] sm:$0xff] }
  0x1a   :  { %7407 = vmatpush3.bf16.msra.mxu1 %v8033_v16  ;;  %7368 = vmatprep.subr.bf16.mxu0 %v8034_v19  ;;  %v246_v35 = vld [vmem:[%s12787_s0 + $0xb8] sm:$0xff]  ;;  %v248_v37 = vld [vmem:[%s12787_s0 + $0xc8] sm:$0xff]  ;;  %v251_v38 = vld [vmem:[%s12787_s0 + $0xe0] sm:$0xff]  ;;  %v8360_v16 = vand.u32 63, %v39_v3 }
  0x1b   :  { %7408 = vmatprep.subr.bf16.mxu1 %v8035_v20  ;;  %v250_v39 = vld [vmem:[%s12787_s0 + $0xd8] sm:$0xff]  ;;  %v253_v40 = vld [vmem:[%s12787_s0 + $0xf0] sm:$0xff]  ;;  %v252_v41 = vld [vmem:[%s12787_s0 + $0xe8] sm:$0xff]  ;;  %s6651_s0 = sshll.u32 %s8164_s4, 4  ;;  %s6652_s0 = int_to_ptr.vmem [resolvable:$true] %s6651_s0 }
  0x1c   :  { %287 = vperm.xlu1 %8024, %v229_v7   ;;  %282 = vperm.xlu0 %8023, %v228_v8   ;;  %v8292_v44 = vld [vmem:[%s12789_s2] ss:$0 sm:$0xff]  ;;  %v8298_v48 = vld [vmem:[%s12789_s2 + $0x1] ss:$0 sm:$0xff]  ;;  %v8309_v56 = vld [vmem:[%s12789_s2 + $0x2] ss:$0 sm:$0xff]  ;;  %p8139_p6 = scmp.lt.s32.totalorder %s6652_s0, %s6652_s0 }
  0x1d   :  { %7369 = vmatpush3.bf16.msra.mxu0 %v8034_v19  ;;  %v8319_v59 = vld [vmem:[%s12789_s2 + $0x3] ss:$0 sm:$0xff]  ;;  %12979 = vst [vmem:[#allocation14_spill] sm:$0xff] %v8360_v16  ;;  %vm135_vm5 = vcmp.ge.s32.totalorder %v8360_v16, 2  ;;  %vm103_vm6 = vcmp.ge.s32.totalorder %v8360_v16, 1  ;;  %s8134_s5 = scalar_lea.vmem %s6652_s0, 64 }
  0x1e   :  { %7409 = vmatpush3.bf16.msra.mxu1 %v8035_v20  ;;  %7370 = vmatprep.subr.bf16.mxu0 %v8036_v23  ;;  %p8135_p5 = scmp.ne.s32.totalorder %s6652_s0, %s8134_s5  ;;  %p8140_p7 = scmp.lt.s32.totalorder %s8134_s5, %s8134_s5 }
  0x1f   :  { %7410 = vmatprep.subr.bf16.mxu1 %v8037_v24 }
  0x20   :  { %297 = vperm.xlu1 %8024, %v231_v9   ;;  %292 = vperm.xlu0 %8023, %v230_v10   ;;  %v55_v10 = vadd.s32 192, %v8314_v58  ;;  %p8141_p8 = por %p8140_p7, %p8139_p6 }
  0x21   :  { %7371 = vmatpush3.bf16.msra.mxu0 %v8036_v23 }
  0x22   :  { %7411 = vmatpush3.bf16.msra.mxu1 %v8037_v24  ;;  %7444 = vmatprep.subr.bf16.mxu0 %v8262_v33  ;;  %p8142_p9 = pnand %p8141_p8, %p8135_p5 }
  0x24   :  { %307 = vperm.xlu1 %8024, %v233_v14   ;;  %302 = vperm.xlu0 %8023, %v232_v15  }
  0x28   :  { %317 = vperm.xlu1 %8024, %v235_v17   ;;  %312 = vperm.xlu0 %8023, %v234_v18   ;;  %v8362_v17 = vand.u32 63, %v47_v4  ;;  %v8367_v18 = vld [vmem:[%s12789_s2 + $0x4] ss:$0 sm:$0xff] }
  0x2a   :  { %12980 = vst [vmem:[#allocation15_spill] sm:$0xff] %v8362_v17  ;;  %vm143_vm7 = vcmp.ge.s32.totalorder %v8362_v17, 2  ;;  %vm111_vm8 = vcmp.ge.s32.totalorder %v8362_v17, 1 }
  0x2c   :  { %327 = vperm.xlu1 %8024, %v237_v21   ;;  %322 = vperm.xlu0 %8023, %v236_v22  }
  0x30   :  { %337 = vperm.xlu1 %8024, %v239_v25   ;;  %332 = vperm.xlu0 %8023, %v238_v26  }
  0x34   :  { %347 = vperm.xlu1 %8024, %v241_v27   ;;  %342 = vperm.xlu0 %8023, %v240_v28   ;;  %v8377_v27 = vand.u32 63, %v55_v10 }
  0x36   :  { %12982 = vst [vmem:[#allocation17_spill] sm:$0xff] %v8377_v27  ;;  %vm151_vm9 = vcmp.ge.s32.totalorder %v8377_v27, 2  ;;  %vm119_vm10 = vcmp.ge.s32.totalorder %v8377_v27, 1 }
  0x38   :  { %357 = vperm.xlu1 %8024, %v243_v29   ;;  %352 = vperm.xlu0 %8023, %v242_v30  }
  0x3c   :  { %367 = vperm.xlu1 %8024, %v245_v31   ;;  %362 = vperm.xlu0 %8023, %v244_v32  }
  0x40   :  { %377 = vperm.xlu1 %8024, %v247_v34   ;;  %372 = vperm.xlu0 %8023, %v246_v35  }
  0x44   :  { %387 = vperm.xlu1 %8024, %v249_v36   ;;  %382 = vperm.xlu0 %8023, %v248_v37  }
  0x48   :  { %397 = vperm.xlu1 %8024, %v251_v38   ;;  %392 = vperm.xlu0 %8023, %v250_v39  }
  0x4c   :  { %407 = vperm.xlu1 %8024, %v253_v40   ;;  %402 = vperm.xlu0 %8023, %v252_v41  }
  0x8b   :  { %v263_v42 = vpop.permute.xlu1 %262  ;;  %v258_v43 = vpop.permute.xlu0 %257 }
  0x8c   :  { %v421_v47 = vmul.f32 %v8292_v44, %v263_v42  ;;  %v420_v49 = vmul.f32 %v8292_v44, %v258_v43 }
  0x8e   :  { %v8304_v55 = vadd.f32 %v8298_v48, %v421_v47  ;;  %v8312_v57 = vadd.f32 %v8298_v48, %v420_v49 }
  0x8f   :  { %v268_v45 = vpop.permute.xlu1 %267  ;;  %v413_v46 = vpop.permute.xlu0 %412 }
  0x90   :  { %v422_v51 = vmul.f32 %v8292_v44, %v268_v45  ;;  %v451_v52 = vmul.f32 %v8292_v44, %v413_v46  ;;  %12973 = vst [vmem:[#allocation8_spill] sm:$0xff] %v8304_v55  ;;  %12974 = vst [vmem:[#allocation9_spill] sm:$0xff] %v8312_v57  ;;  %v532_v2 = vmul.f32 %v8309_v56, %v8304_v55 }
  0x91   :  { %v8337_v5 = vmul.f32 %v8319_v59, %v8304_v55  ;;  %v531_v6 = vmul.f32 %v8309_v56, %v8312_v57  ;;  %v8343_v7 = vmul.f32 %v8319_v59, %v8312_v57  ;;  %v495_v24 = vmul.f32 %v8367_v18, %v8304_v55 }
  0x92   :  { %v8322_v60 = vadd.f32 %v8298_v48, %v422_v51  ;;  %v8325_v61 = vadd.f32 %v8298_v48, %v451_v52  ;;  %v564_v15 = vrot.slane %v532_v2, 6  ;;  %v494_v32 = vmul.f32 %v8367_v18, %v8312_v57 }
  0x93   :  { %v278_v53 = vpop.permute.xlu1 %277  ;;  %v273_v54 = vpop.permute.xlu0 %272  ;;  %v12797_v19 = vrot.slane %v8337_v5, 7  ;;  %v563_v20 = vrot.slane %v531_v6, 6  ;;  %v793_v21 = vrot.slane %v8343_v7, 7 }
  0x94   :  { %12975 = vst [vmem:[#allocation10_spill] sm:$0xff] %v8322_v60  ;;  %12976 = vst [vmem:[#allocation11_spill] sm:$0xff] %v8325_v61  ;;  %v423_v62 = vmul.f32 %v8292_v44, %v273_v54  ;;  %v424_v8 = vmul.f32 %v8292_v44, %v278_v53  ;;  %v533_v9 = vmul.f32 %v8309_v56, %v8322_v60 }
  0x95   :  { %v8352_v11 = vmul.f32 %v8309_v56, %v8325_v61  ;;  %v8392_v34 = vmul.f32 %v8319_v59, %v8322_v60  ;;  %v8396_v35 = vmul.f32 %v8319_v59, %v8325_v61  ;;  %v496_v37 = vmul.f32 %v8367_v18, %v8322_v60 }
  0x96   :  { %v8355_v12 = vadd.f32 %v8298_v48, %v423_v62  ;;  %v8372_v22 = vadd.f32 %v8298_v48, %v424_v8  ;;  %v565_v25 = vrot.slane %v533_v9, 6  ;;  %v626_v39 = vsel %vm595_vm0, %v563_v20, %v564_v15 }
  0x97   :  { %v288_v63 = vpop.permute.xlu1 %287  ;;  %v283_v0 = vpop.permute.xlu0 %282  ;;  %v12791_v28 = vrot.slane %v8352_v11, 6  ;;  %v856_v40 = vsel %vm825_vm2, %v793_v21, %v12797_v19  ;;  %v8440_v53 = vmul.f32 %v8367_v18, %v8325_v61  ;;  %v12792_v54 = vrot.slane %v8396_v35, 7 }
  0x98   :  { %12978 = vst [vmem:[#allocation13_spill] sm:$0xff] %v8355_v12  ;;  %v425_v13 = vmul.f32 %v8292_v44, %v283_v0  ;;  %12981 = vst [vmem:[#allocation16_spill] sm:$0xff] %v8372_v22  ;;  %v8382_v29 = vmul.f32 %v8309_v56, %v8355_v12  ;;  %v426_v30 = vmul.f32 %v8292_v44, %v288_v63 }
  0x99   :  { %v8403_v38 = vmul.f32 %v8309_v56, %v8372_v22  ;;  %v625_v41 = vsel %vm595_vm0, %v564_v15, %v565_v25  ;;  %v8416_v42 = vmul.f32 %v8319_v59, %v8372_v22  ;;  %v8420_v43 = vmul.f32 %v8319_v59, %v8355_v12 }
  0x9a   :  { %v8386_v31 = vadd.f32 %v8298_v48, %v425_v13  ;;  %v12794_v46 = vrot.slane %v8382_v29, 6  ;;  %v8427_v47 = vadd.f32 %v8298_v48, %v426_v30  ;;  %v627_v51 = vsel %vm595_vm0, %v12791_v28, %v563_v20 }
  0x9b   :  { %v293_v14 = vpop.permute.xlu0 %292  ;;  %v298_v23 = vpop.permute.xlu1 %297  ;;  %v8446_v0 = vadd.f32 %v625_v41, %v496_v37  ;;  %v8450_v2 = vmul.f32 %v8367_v18, %v8372_v22  ;;  %v12795_v3 = vrot.slane %v8403_v38, 6  ;;  %v497_v4 = vmul.f32 %v8367_v18, %v8355_v12 }
  0x9c   :  { %v427_v26 = vmul.f32 %v8292_v44, %v293_v14  ;;  %12983 = vst [vmem:[#allocation18_spill] sm:$0xff] %v8386_v31  ;;  %v428_v36 = vmul.f32 %v8292_v44, %v298_v23  ;;  %12985 = vst [vmem:[#allocation20_spill] sm:$0xff] %v8427_v47  ;;  %v8431_v49 = vmul.f32 %v8309_v56, %v8386_v31  ;;  %v692_v9 = vsel %vm127_vm1, %v627_v51, 0.0 }
  0x9d   :  { %v624_v10 = vsel %vm595_vm0, %v565_v25, %v12794_v46  ;;  %v8468_v14 = vmul.f32 %v8309_v56, %v8427_v47  ;;  %v8473_v20 = vmul.f32 %v8367_v18, %v8427_v47  ;;  %v725_v30 = vadd.f32 %v626_v39, %v495_v24 }
  0x9e   :  { %v8423_v45 = vadd.f32 %v8298_v48, %v427_v26  ;;  %v8444_v62 = vadd.f32 %v8298_v48, %v428_v36  ;;  %v12793_v15 = vrot.slane %v8431_v49, 6  ;;  %v8482_v25 = vmul.f32 %v8319_v59, %v8427_v47 }
  0x9f   :  { %v303_v50 = vpop.permute.xlu0 %302  ;;  %v308_v63 = vpop.permute.xlu1 %307  ;;  %v8486_v36 = vmul.f32 %v8319_v59, %v8386_v31  ;;  %v724_v41 = vadd.f32 %v692_v9, %v494_v32  ;;  %v727_v51 = vadd.f32 %v624_v10, %v497_v4  ;;  %v12796_v6 = vrot.slane %v8468_v14, 6 }
  0xa0   :  { %12984 = vst [vmem:[#allocation19_spill] sm:$0xff] %v8423_v45  ;;  %12986 = vst [vmem:[#allocation21_spill] sm:$0xff] %v8444_v62  ;;  %v538_v7 = vmul.f32 %v8309_v56, %v8423_v45  ;;  %v429_v8 = vmul.f32 %v8292_v44, %v303_v50  ;;  %v8477_v23 = vmul.f32 %v8309_v56, %v8444_v62 }
  0xa1   :  { %v430_v26 = vmul.f32 %v8292_v44, %v308_v63  ;;  %v857_v50 = vsel %vm825_vm2, %v12792_v54, %v793_v21  ;;  %v499_v63 = vmul.f32 %v8367_v18, %v8386_v31  ;;  %v622_v32 = vsel %vm595_vm0, %v12795_v3, %v12793_v15 }
  0xa2   :  { %v570_v24 = vrot.slane %v538_v7, 6  ;;  %v8495_v39 = vadd.f32 %v8298_v48, %v429_v8  ;;  %v8506_v21 = vmul.f32 %v8319_v59, %v8444_v62  ;;  %v8510_v4 = vmul.f32 %v8319_v59, %v8423_v45 }
  0xa3   :  { %v313_v37 = vpop.permute.xlu0 %312  ;;  %v318_v28 = vpop.permute.xlu1 %317  ;;  %v571_v7 = vrot.slane %v8477_v23, 6  ;;  %v8514_v8 = vadd.f32 %v8298_v48, %v430_v26  ;;  %v922_v10 = vsel %vm95_vm3, %v857_v50, 0.0  ;;  %v955_v3 = vadd.f32 %v856_v40, %v725_v30 }
  0xa4   :  { %12987 = vst [vmem:[#allocation22_spill] sm:$0xff] %v8495_v39  ;;  %v431_v9 = vmul.f32 %v8292_v44, %v313_v37  ;;  %v954_v46 = vadd.f32 %v922_v10, %v724_v41  ;;  %v8523_v13 = vmul.f32 %v8367_v18, %v8444_v62  ;;  %v620_v23 = vsel %vm595_vm0, %v12796_v6, %v570_v24  ;;  %v8537_v41 = vld [vmem:[%s12789_s2 + $0x6] ss:$0 sm:$0xff] }
  0xa5   :  { %12988 = vst [vmem:[#allocation23_spill] sm:$0xff] %v8514_v8  ;;  %v8531_v26 = vmul.f32 %v8309_v56, %v8495_v39  ;;  %v432_v37 = vmul.f32 %v8292_v44, %v318_v28  ;;  %v729_v40 = vadd.f32 %v622_v32, %v499_v63  ;;  %v501_v50 = vmul.f32 %v8367_v18, %v8423_v45 }
  0xa6   :  { %v8545_v54 = vsel %vm595_vm0, %v570_v24, %v571_v7  ;;  %v8549_v28 = vmul.f32 %v8367_v18, %v8514_v8  ;;  %v8553_v6 = vmul.f32 %v8309_v56, %v8514_v8  ;;  %v8556_v63 = vadd.f32 %v8298_v48, %v431_v9 }
  0xa7   :  { %v328_v32 = vpop.permute.xlu1 %327  ;;  %v323_v30 = vpop.permute.xlu0 %322  ;;  %v8558_v15 = vadd.f32 %v620_v23, %v501_v50  ;;  %v8562_v10 = vmul.f32 %v8319_v59, %v8514_v8  ;;  %v991_v24 = vadd.f32 %v8537_v41, %v954_v46  ;;  %v992_v19 = vadd.f32 %v8537_v41, %v955_v3 }
  0xa8   :  { %12989 = vst [vmem:[#allocation24_spill] sm:$0xff] %v8556_v63  ;;  %v8569_v1 = vmul.f32 %v8319_v59, %v8495_v39  ;;  %v8572_v9 = vadd.f32 %v8298_v48, %v432_v37  ;;  %v12991_v23 = vrot.slane %v8392_v34, 7  ;;  %v12992_v50 = vrot.slane %v8337_v5, 7 }
  0xa9   :  { %v1023_v45 = vmax.f32 %v991_v24, 0.0  ;;  %v1024_v46 = vmax.f32 %v992_v19, 0.0  ;;  %v433_v52 = vmul.f32 %v8292_v44, %v323_v30  ;;  %v503_v62 = vmul.f32 %v8367_v18, %v8495_v39 }
  0xaa   :  { %12990 = vst [vmem:[#allocation25_spill] sm:$0xff] %v8572_v9  ;;  %v855_v8 = vsel %vm825_vm2, %v12992_v50, %v12991_v23  ;;  %v8586_v37 = vmul.f32 %v8309_v56, %v8556_v63  ;;  %v434_v31 = vmul.f32 %v8292_v44, %v328_v32  ;;  %v12993_v5 = vrot.slane %v8420_v43, 7 }
  0xab   :  { %v956_v3 = vadd.f32 %v855_v8, %v8446_v0  ;;  %v12994_v47 = vmov %v12991_v23  ;;  %v8596_v8 = vpack.c.bf16 %v1024_v46, %v1023_v45  ;;  %v12995_v50 = vrot.slane %v8531_v26, 6  ;;  %v338_v45 = vpop.permute.xlu1 %337 }
  0xac   :  { %v854_v19 = vsel %vm825_vm2, %v12994_v47, %v12993_v5  ;;  %v8606_v34 = vmul.f32 %v8367_v18, %v8572_v9  ;;  %v8610_v47 = vmul.f32 %v8309_v56, %v8572_v9  ;;  %v12998_v5 = vrot.slane %v8382_v29, 6 }
  0xad   :  { %v957_v30 = vadd.f32 %v854_v19, %v727_v51  ;;  %v993_v24 = vadd.f32 %v8537_v41, %v956_v3  ;;  %v618_v32 = vsel %vm595_vm0, %v571_v7, %v12995_v50  ;;  %7372 = vmatprep.mubr.msk.bf16.mxu0 %vm1111_vm4, %v8596_v8  ;;  %7412 = vmatprep.mubr.msk.bf16.mxu1 %vm1111_vm4, %v8596_v8  ;;  %v12997_v3 = vrot.slane %v8403_v38, 6 }
  0xae   :  { %v8619_v7 = vadd.f32 %v8298_v48, %v433_v52  ;;  %v8629_v50 = vmul.f32 %v8319_v59, %v8572_v9  ;;  %v8634_v51 = vmul.f32 %v8319_v59, %v8556_v63  ;;  %v8637_v52 = vadd.f32 %v8298_v48, %v434_v31  ;;  %v333_v9 = vpop.permute.xlu0 %332 }
  0xaf   :  { %v994_v46 = vadd.f32 %v8537_v41, %v957_v30  ;;  %v623_v19 = vsel %vm595_vm0, %v12998_v5, %v12997_v3  ;;  %v1025_v30 = vmax.f32 %v993_v24, 0.0  ;;  %v13000_v0 = vrot.slane %v8486_v36, 7 }
  0xb0   :  { %12996 = vst [vmem:[#allocation26_spill] sm:$0xff] %v8619_v7  ;;  %12999 = vst [vmem:[#allocation27_spill] sm:$0xff] %v8637_v52  ;;  %v728_v29 = vadd.f32 %v623_v19, %v8450_v2  ;;  %v13001_v3 = vrot.slane %v8416_v42, 7  ;;  %v8646_v23 = vadd.f32 %v618_v32, %v503_v62  ;;  %v505_v39 = vmul.f32 %v8367_v18, %v8556_v63  ;;  %v8039_v19 = vld [vmem:[#allocation2 + $0x30] sm:$0xff]   ;;  %v348_v2 = vpop.permute.xlu1 %347 }
  0xb1   :  { %v1026_v38 = vmax.f32 %v994_v46, 0.0  ;;  %v436_v31 = vmul.f32 %v8292_v44, %v338_v45  ;;  %v8657_v46 = vmul.f32 %v8309_v56, %v8619_v7  ;;  %v13003_v62 = vrot.slane %v8420_v43, 7 }
  0xb2   :  { %v852_v5 = vsel %vm825_vm2, %v13001_v3, %v13000_v0  ;;  %v13002_v0 = vmov %v13001_v3  ;;  %v13005_v45 = vrot.slane %v8553_v6, 6  ;;  %v8703_v43 = vmul.f32 %v8367_v18, %v8637_v52 }
  0xb3   :  { %v959_v12 = vadd.f32 %v852_v5, %v729_v40  ;;  %v8653_v24 = vpack.c.bf16 %v1026_v38, %v1025_v30  ;;  %v853_v32 = vsel %vm825_vm2, %v13003_v62, %v13002_v0  ;;  %v13004_v40 = vrot.slane %v8586_v37, 6 }
  0xb4   :  { %v958_v38 = vadd.f32 %v853_v32, %v728_v29  ;;  %v435_v5 = vmul.f32 %v8292_v44, %v333_v9  ;;  %v8678_v0 = vmul.f32 %v8309_v56, %v8637_v52  ;;  %v8682_v62 = vmul.f32 %v8319_v59, %v8637_v52  ;;  %v358_v52 = vpop.permute.xlu1 %357 }
  0xb5   :  { %v616_v30 = vsel %vm595_vm0, %v13005_v45, %v13004_v40  ;;  %v996_v3 = vadd.f32 %v8537_v41, %v959_v12  ;;  %7373 = vmatmul.mubr.msk.bf16.vlgmr.msra.gmra.mxu0 %vm1111_vm4, %v8653_v24  ;;  %7413 = vmatmul.mubr.msk.bf16.vlgmr.msra.gmra.mxu1 %vm1111_vm4, %v8653_v24  ;;  %v8690_v12 = vadd.f32 %v8298_v48, %v436_v31  ;;  %v13007_v32 = vrot.slane %v8468_v14, 6  ;;  %v8040_v14 = vld [vmem:[#allocation2 + $0x28] sm:$0xff]  }
  0xb6   :  { %7445 = vmatpush3.bf16.msra.mxu0 %v8262_v33  ;;  %v995_v9 = vadd.f32 %v8537_v41, %v958_v38  ;;  %v13008_v40 = vrot.slane %v8431_v49, 6  ;;  %v8699_v42 = vadd.f32 %v616_v30, %v505_v39  ;;  %v8708_v31 = vmul.f32 %v8319_v59, %v8619_v7  ;;  %v343_v38 = vpop.permute.xlu0 %342 }
  0xb7   :  { %13006 = vst [vmem:[#allocation28_spill] sm:$0xff] %v8690_v12  ;;  %v1028_v29 = vmax.f32 %v996_v3, 0.0  ;;  %7446 = vmatprep.subr.bf16.mxu0 %v8039_v19  ;;  %v8711_v49 = vadd.f32 %v8298_v48, %v435_v5  ;;  %v13010_v30 = vrot.slane %v8510_v4, 7  ;;  %v507_v63 = vmul.f32 %v8367_v18, %v8619_v7 }
  0xb8   :  { %v621_v45 = vsel %vm595_vm0, %v13008_v40, %v13007_v32  ;;  %v1027_v3 = vmax.f32 %v995_v9, 0.0  ;;  %v13011_v32 = vrot.slane %v8482_v25, 7  ;;  %v8727_v5 = vmul.f32 %v8367_v18, %v8690_v12 }
  0xb9   :  { %13009 = vst [vmem:[#allocation29_spill] sm:$0xff] %v8711_v49  ;;  %v730_v39 = vadd.f32 %v621_v45, %v8473_v20  ;;  %v438_v45 = vmul.f32 %v8292_v44, %v348_v2  ;;  %v13014_v33 = vrot.slane %v8657_v46, 6  ;;  %v8750_v25 = vmul.f32 %v8319_v59, %v8690_v12 }
  0xba   :  { %v850_v40 = vsel %vm825_vm2, %v13011_v32, %v13010_v30  ;;  %v8729_v20 = vpack.c.bf16 %v1028_v29, %v1027_v3  ;;  %v13012_v22 = vmov %v13011_v32  ;;  %v13013_v30 = vrot.slane %v8486_v36, 7  ;;  %7447 = vmatpush3.bf16.msra.mxu0 %v8039_v19  ;;  %v353_v2 = vpop.permute.xlu0 %352 }
  0xbb   :  { %v961_v9 = vadd.f32 %v850_v40, %v8558_v15  ;;  %v13015_v15 = vrot.slane %v8610_v47, 6  ;;  %v8746_v29 = vmul.f32 %v8309_v56, %v8690_v12  ;;  %7448 = vmatprep.subr.bf16.mxu0 %v8040_v14  ;;  %v546_v19 = vmul.f32 %v8309_v56, %v8711_v49 }
  0xbc   :  { %v851_v32 = vsel %vm825_vm2, %v13013_v30, %v13012_v22  ;;  %v8041_v22 = vld [vmem:[#allocation2 + $0x20] sm:$0xff]   ;;  %7376 = vmatprep.mubr.msk.bf16.mxu0 %vm1111_vm4, %v8729_v20  ;;  %7416 = vmatprep.mubr.msk.bf16.mxu1 %vm1111_vm4, %v8729_v20  ;;  %v437_v30 = vmul.f32 %v8292_v44, %v343_v38  ;;  %v8771_v12 = vadd.f32 %v8298_v48, %v438_v45  ;;  %v13017_v60 = vrot.slane %v8506_v21, 7 }
  0xbd   :  { %v614_v40 = vsel %vm595_vm0, %v13015_v15, %v13014_v33  ;;  %v960_v36 = vadd.f32 %v851_v32, %v730_v39  ;;  %v8761_v33 = vmul.f32 %v8319_v59, %v8711_v49  ;;  %v998_v3 = vadd.f32 %v8537_v41, %v961_v9 }
  0xbe   :  { %v440_v32 = vmul.f32 %v8292_v44, %v358_v52  ;;  %v700_v15 = vsel %vm135_vm5, %v8545_v54, 0.0  ;;  %13016 = vst [vmem:[#allocation30_spill] sm:$0xff] %v8771_v12  ;;  %v13018_v9 = vrot.slane %v8510_v4, 7  ;;  %7449 = vmatpush3.bf16.msra.mxu0 %v8040_v14  ;;  %v13020_v54 = vrot.slane %v8569_v1, 7  ;;  %v363_v16 = vpop.permute.xlu0 %362 }
  0xbf   :  { %v997_v39 = vadd.f32 %v8537_v41, %v960_v36  ;;  %v1030_v7 = vmax.f32 %v998_v3, 0.0  ;;  %v732_v61 = vadd.f32 %v700_v15, %v8523_v13  ;;  %v8781_v36 = vadd.f32 %v8298_v48, %v437_v30  ;;  %7450 = vmatprep.subr.bf16.mxu0 %v8041_v22 }
  0xc0   :  { %v849_v38 = vsel %vm825_vm2, %v13018_v9, %v13017_v60  ;;  %v13021_v45 = vmov %v13017_v60  ;;  %v578_v4 = vrot.slane %v546_v19, 6  ;;  %v439_v14 = vmul.f32 %v8292_v44, %v353_v2 }
  0xc1   :  { %v1029_v52 = vmax.f32 %v997_v39, 0.0  ;;  %13019 = vst [vmem:[#allocation31_spill] sm:$0xff] %v8781_v36  ;;  %v848_v3 = vsel %vm825_vm2, %v13021_v45, %v13020_v54  ;;  %v930_v13 = vsel %vm103_vm6, %v849_v38, 0.0  ;;  %v579_v39 = vrot.slane %v8746_v29, 6  ;;  %v368_v29 = vpop.permute.xlu1 %367 }
  0xc2   :  { %v962_v15 = vadd.f32 %v930_v13, %v732_v61  ;;  %v963_v60 = vadd.f32 %v848_v3, %v8646_v23  ;;  %v8798_v21 = vmul.f32 %v8309_v56, %v8781_v36  ;;  %v8801_v9 = vadd.f32 %v8298_v48, %v440_v32  ;;  %7451 = vmatpush3.bf16.msra.mxu0 %v8041_v22 }
  0xc3   :  { %v8794_v30 = vpack.c.bf16 %v1030_v7, %v1029_v52  ;;  %v737_v54 = vadd.f32 %v614_v40, %v507_v63  ;;  %v509_v61 = vmul.f32 %v8367_v18, %v8711_v49  ;;  %v8808_v23 = vmul.f32 %v8367_v18, %v8771_v12 }
  0xc4   :  { %13023 = vst [vmem:[#allocation33_spill] sm:$0xff] %v8801_v9  ;;  %v8813_v2 = vmul.f32 %v8309_v56, %v8771_v12  ;;  %v8817_v63 = vmul.f32 %v8319_v59, %v8771_v12  ;;  %v999_v40 = vadd.f32 %v8537_v41, %v962_v15  ;;  %v13024_v22 = vrot.slane %v8678_v0, 6 }
  0xc5   :  { %13022 = vst [vmem:[#allocation32_spill] sm:$0xff] %v8794_v30  ;;  %7377 = vmatmul.mubr.msk.bf16.gmra.mxu0 %vm1111_vm4, %v8794_v30  ;;  %7417 = vmatmul.mubr.msk.bf16.gmra.mxu1 %vm1111_vm4, %v8794_v30  ;;  %v1000_v52 = vadd.f32 %v8537_v41, %v963_v60  ;;  %v8831_v45 = vadd.f32 %v8298_v48, %v439_v14  ;;  %v13026_v7 = vrot.slane %v8553_v6, 6 }
  0xc6   :  { %v612_v19 = vsel %vm595_vm0, %v13024_v22, %v578_v4  ;;  %v8835_v3 = vsel %vm595_vm0, %v578_v4, %v579_v39  ;;  %v8839_v13 = vmul.f32 %v8319_v59, %v8781_v36  ;;  %v8843_v15 = vmul.f32 %v8309_v56, %v8801_v9 }
  0xc7   :  { %13025 = vst [vmem:[#allocation34_spill] sm:$0xff] %v8831_v45  ;;  %v442_v22 = vmul.f32 %v8292_v44, %v368_v29  ;;  %v8848_v60 = vmul.f32 %v8319_v59, %v8801_v9  ;;  %v1031_v14 = vmax.f32 %v999_v40, 0.0  ;;  %v1032_v38 = vmax.f32 %v1000_v52, 0.0 }
  0xc8   :  { %v13027_v4 = vrot.slane %v8531_v26, 6  ;;  %v8856_v12 = vadd.f32 %v612_v19, %v509_v61  ;;  %v511_v57 = vmul.f32 %v8367_v18, %v8781_v36  ;;  %v13028_v40 = vrot.slane %v8798_v21, 6  ;;  %v378_v19 = vpop.permute.xlu1 %377 }
  0xc9   :  { %v8868_v26 = vmul.f32 %v8367_v18, %v8801_v9  ;;  %v8874_v61 = vmul.f32 %v8309_v56, %v8831_v45  ;;  %v441_v49 = vmul.f32 %v8292_v44, %v363_v16  ;;  %v8907_v36 = vmul.f32 %v8319_v59, %v8831_v45 }
  0xca   :  { %v617_v32 = vsel %vm595_vm0, %v13027_v4, %v13026_v7  ;;  %v610_v6 = vsel %vm595_vm0, %v579_v39, %v13028_v40  ;;  %v8870_v7 = vpack.c.bf16 %v1032_v38, %v1031_v14  ;;  %v8878_v4 = vadd.f32 %v8298_v48, %v442_v22 }
  0xcb   :  { %v734_v29 = vadd.f32 %v617_v32, %v8549_v28  ;;  %v13031_v39 = vrot.slane %v8634_v51, 7  ;;  %v13032_v40 = vrot.slane %v8562_v10, 7  ;;  %v13034_v28 = vrot.slane %v8569_v1, 7 }
  0xcc   :  { %13029 = vst [vmem:[#allocation35_spill] sm:$0xff] %v8870_v7  ;;  %13030 = vst [vmem:[#allocation36_spill] sm:$0xff] %v8878_v4  ;;  %7380 = vmatprep.mubr.msk.bf16.mxu0 %vm1111_vm4, %v8870_v7  ;;  %7420 = vmatprep.mubr.msk.bf16.mxu1 %vm1111_vm4, %v8870_v7  ;;  %v444_v14 = vmul.f32 %v8292_v44, %v378_v19  ;;  %v13035_v10 = vrot.slane %v8610_v47, 6  ;;  %v8918_v16 = vmul.f32 %v8309_v56, %v8878_v4 }
  0xcd   :  { %v846_v38 = vsel %vm825_vm2, %v13032_v40, %v13031_v39  ;;  %v13033_v22 = vmov %v13032_v40  ;;  %v8900_v39 = vadd.f32 %v610_v6, %v511_v57  ;;  %v8922_v6 = vadd.f32 %v8298_v48, %v441_v49 }
  0xce   :  { %v847_v32 = vsel %vm825_vm2, %v13034_v28, %v13033_v22  ;;  %v965_v52 = vadd.f32 %v846_v38, %v8699_v42  ;;  %v13036_v22 = vrot.slane %v8586_v37, 6  ;;  %v373_v42 = vpop.permute.xlu0 %372  ;;  %v13038_v19 = vrot.slane %v8708_v31, 7 }
  0xcf   :  { %v964_v40 = vadd.f32 %v847_v32, %v734_v29  ;;  %13037 = vst [vmem:[#allocation37_spill] sm:$0xff] %v8922_v6  ;;  %v8931_v38 = vadd.f32 %v8298_v48, %v444_v14  ;;  %v443_v9 = vmul.f32 %v8292_v44, %v373_v42  ;;  %v513_v14 = vmul.f32 %v8367_v18, %v8831_v45 }
  0xd0   :  { %v1002_v1 = vadd.f32 %v8537_v41, %v965_v52  ;;  %v615_v57 = vsel %vm595_vm0, %v13036_v22, %v13035_v10  ;;  %v13039_v52 = vrot.slane %v8629_v50, 7  ;;  %v388_v10 = vpop.permute.xlu1 %387  ;;  %v8940_v22 = vmul.f32 %v8309_v56, %v8922_v6 }
  0xd1   :  { %v1001_v29 = vadd.f32 %v8537_v41, %v964_v40  ;;  %13040 = vst [vmem:[#allocation38_spill] sm:$0xff] %v8931_v38  ;;  %v736_v28 = vadd.f32 %v615_v57, %v8606_v34  ;;  %v8936_v40 = vmul.f32 %v8319_v59, %v8878_v4  ;;  %v13041_v34 = vrot.slane %v8874_v61, 6 }
  0xd2   :  { %v844_v37 = vsel %vm825_vm2, %v13039_v52, %v13038_v19  ;;  %v1034_v47 = vmax.f32 %v1002_v1, 0.0  ;;  %v12826_v42 = vrot.slane %v8940_v22, 6  ;;  %v446_v55 = vmul.f32 %v8292_v44, %v388_v10 }
  0xd3   :  { %v967_v32 = vadd.f32 %v844_v37, %v737_v54  ;;  %v1033_v49 = vmax.f32 %v1001_v29, 0.0  ;;  %v13042_v54 = vrot.slane %v8813_v2, 6  ;;  %v8955_v29 = vmul.f32 %v8367_v18, %v8878_v4 }
  0xd4   :  { %v13044_v37 = vrot.slane %v8634_v51, 7  ;;  %v8984_v10 = vmul.f32 %v8319_v59, %v8931_v38  ;;  %v13047_v51 = vrot.slane %v8657_v46, 6  ;;  %v515_v50 = vmul.f32 %v8367_v18, %v8922_v6 }
  0xd5   :  { %v608_v1 = vsel %vm595_vm0, %v13042_v54, %v13041_v34  ;;  %v8957_v19 = vpack.c.bf16 %v1034_v47, %v1033_v49  ;;  %v8969_v34 = vmul.f32 %v8319_v59, %v8922_v6  ;;  %v8973_v54 = vmul.f32 %v8309_v56, %v8931_v38  ;;  %v398_v6 = vpop.permute.xlu1 %397 }
  0xd6   :  { %v845_v45 = vsel %vm825_vm2, %v13044_v37, %v13039_v52  ;;  %v1004_v49 = vadd.f32 %v8537_v41, %v967_v32  ;;  %v8987_v52 = vadd.f32 %v8298_v48, %v443_v9  ;;  %v13046_v37 = vrot.slane %v8678_v0, 6 }
  0xd7   :  { %13043 = vst [vmem:[#allocation39_spill] sm:$0xff] %v8957_v19  ;;  %v966_v47 = vadd.f32 %v845_v45, %v736_v28  ;;  %7381 = vmatmul.mubr.msk.bf16.gmra.mxu0 %vm1111_vm4, %v8957_v19  ;;  %7421 = vmatmul.mubr.msk.bf16.gmra.mxu1 %vm1111_vm4, %v8957_v19  ;;  %v8989_v45 = vadd.f32 %v608_v1, %v513_v14  ;;  %v13048_v9 = vrot.slane %v8843_v15, 6  ;;  %v383_v1 = vpop.permute.xlu0 %382 }
  0xd8   :  { %13045 = vst [vmem:[#allocation40_spill] sm:$0xff] %v8987_v52  ;;  %v1036_v32 = vmax.f32 %v1004_v49, 0.0  ;;  %v613_v57 = vsel %vm595_vm0, %v13047_v51, %v13046_v37  ;;  %v554_v0 = vmul.f32 %v8309_v56, %v8987_v52  ;;  %v9010_v46 = vadd.f32 %v8298_v48, %v446_v55 }
  0xd9   :  { %v1003_v28 = vadd.f32 %v8537_v41, %v966_v47  ;;  %v606_v14 = vsel %vm595_vm0, %v13048_v9, %v12826_v42  ;;  %v9015_v49 = vmul.f32 %v8367_v18, %v8931_v38  ;;  %v587_v51 = vrot.slane %v8973_v54, 6 }
  0xda   :  { %13049 = vst [vmem:[#allocation41_spill] sm:$0xff] %v9010_v46  ;;  %v586_v4 = vrot.slane %v554_v0, 6  ;;  %v9021_v9 = vmul.f32 %v8319_v59, %v8987_v52  ;;  %v738_v55 = vadd.f32 %v613_v57, %v8703_v43  ;;  %v9025_v42 = vadd.f32 %v606_v14, %v515_v50 }
  0xdb   :  { %v1035_v37 = vmax.f32 %v1003_v28, 0.0  ;;  %v517_v38 = vmul.f32 %v8367_v18, %v8987_v52  ;;  %v13051_v54 = vrot.slane %v8761_v33, 7  ;;  %v13052_v28 = vrot.slane %v8682_v62, 7 }
  0xdc   :  { %v9039_v43 = vmul.f32 %v8367_v18, %v9010_v46  ;;  %v9043_v57 = vmul.f32 %v8309_v56, %v9010_v46  ;;  %v445_v62 = vmul.f32 %v8292_v44, %v383_v1  ;;  %v448_v52 = vmul.f32 %v8292_v44, %v398_v6 }
  0xdd   :  { %v9027_v47 = vpack.c.bf16 %v1036_v32, %v1035_v37  ;;  %v842_v0 = vsel %vm825_vm2, %v13052_v28, %v13051_v54  ;;  %v13053_v50 = vmov %v13052_v28  ;;  %v13054_v32 = vrot.slane %v8708_v31, 7 }
  0xde   :  { %v969_v37 = vadd.f32 %v842_v0, %v8856_v12  ;;  %v9058_v54 = vmul.f32 %v8319_v59, %v9010_v46  ;;  %v708_v31 = vsel %vm143_vm7, %v8835_v3, 0.0  ;;  %v393_v46 = vpop.permute.xlu0 %392  ;;  %v9073_v1 = vadd.f32 %v8298_v48, %v445_v62 }
  0xdf   :  { %13050 = vst [vmem:[#allocation42_spill] sm:$0xff] %v9027_v47  ;;  %v843_v14 = vsel %vm825_vm2, %v13054_v32, %v13053_v50  ;;  %7384 = vmatprep.mubr.msk.bf16.mxu0 %vm1111_vm4, %v9027_v47  ;;  %7424 = vmatprep.mubr.msk.bf16.mxu1 %vm1111_vm4, %v9027_v47  ;;  %v13055_v50 = vrot.slane %v8918_v16, 6  ;;  %v13057_v3 = vrot.slane %v8750_v25, 7  ;;  %v13059_v0 = vrot.slane %v8761_v33, 7 }
  0xe0   :  { %v968_v28 = vadd.f32 %v843_v14, %v738_v55  ;;  %v1006_v32 = vadd.f32 %v8537_v41, %v969_v37  ;;  %v13056_v14 = vrot.slane %v8839_v13, 7  ;;  %v740_v62 = vadd.f32 %v708_v31, %v8727_v5 }
  0xe1   :  { %v604_v12 = vsel %vm595_vm0, %v13055_v50, %v586_v4  ;;  %v13058_v50 = vmov %v13057_v3  ;;  %v447_v25 = vmul.f32 %v8292_v44, %v393_v46  ;;  %v603_v33 = vsel %vm595_vm0, %v586_v4, %v587_v51 }
  0xe2   :  { %v1005_v55 = vadd.f32 %v8537_v41, %v968_v28  ;;  %v840_v47 = vsel %vm825_vm2, %v13057_v3, %v13056_v14  ;;  %v841_v6 = vsel %vm825_vm2, %v13059_v0, %v13058_v50  ;;  %v1038_v37 = vmax.f32 %v1006_v32, 0.0 }
  0xe3   :  { %v9088_v28 = vadd.f32 %v8298_v48, %v448_v52  ;;  %v971_v19 = vadd.f32 %v840_v47, %v8900_v39  ;;  %v9095_v14 = vmul.f32 %v8309_v56, %v9073_v1  ;;  %v9100_v0 = vadd.f32 %v604_v12, %v517_v38  ;;  %v408_v39 = vpop.permute.xlu1 %407 }
  0xe4   :  { %v1037_v30 = vmax.f32 %v1005_v55, 0.0  ;;  %v938_v5 = vsel %vm111_vm8, %v841_v6, 0.0  ;;  %v9110_v32 = vmul.f32 %v8319_v59, %v9073_v1  ;;  %v519_v4 = vmul.f32 %v8367_v18, %v9073_v1 }
  0xe5   :  { %13060 = vst [vmem:[#allocation43_spill] sm:$0xff] %v9088_v28  ;;  %v12834_v31 = vrot.slane %v9095_v14, 6  ;;  %v9114_v46 = vmul.f32 %v8309_v56, %v9088_v28  ;;  %v9120_v38 = vmul.f32 %v8367_v18, %v9088_v28  ;;  %v970_v12 = vadd.f32 %v938_v5, %v740_v62 }
  0xe6   :  { %v9105_v47 = vpack.c.bf16 %v1038_v37, %v1037_v30  ;;  %v1008_v30 = vadd.f32 %v8537_v41, %v971_v19  ;;  %v9129_v55 = vmul.f32 %v8319_v59, %v9088_v28  ;;  %v9132_v3 = vadd.f32 %v8298_v48, %v447_v25 }
  0xe7   :  { %v450_v50 = vmul.f32 %v8292_v44, %v408_v39  ;;  %v716_v6 = vsel %vm151_vm9, %v603_v33, 0.0  ;;  %v602_v19 = vsel %vm595_vm0, %v587_v51, %v12834_v31  ;;  %v1007_v37 = vadd.f32 %v8537_v41, %v970_v12 }
  0xe8   :  { %7385 = vmatmul.mubr.msk.bf16.gmra.mxu0 %vm1111_vm4, %v9105_v47  ;;  %7425 = vmatmul.mubr.msk.bf16.gmra.mxu1 %vm1111_vm4, %v9105_v47  ;;  %v1040_v62 = vmax.f32 %v1008_v30, 0.0  ;;  %v13061_v5 = vrot.slane %v8813_v2, 6  ;;  %v13062_v52 = vrot.slane %v8798_v21, 6  ;;  %v9152_v33 = vmul.f32 %v8309_v56, %v9132_v3 }
  0xe9   :  { %v9156_v51 = vmul.f32 %v8319_v59, %v9132_v3  ;;  %v1039_v12 = vmax.f32 %v1007_v37, 0.0  ;;  %v9159_v2 = vadd.f32 %v8298_v48, %v450_v50  ;;  %v13064_v30 = vrot.slane %v8817_v63, 7  ;;  %v403_v37 = vpop.permute.xlu0 %402 }
  0xea   :  { %v609_v25 = vsel %vm595_vm0, %v13062_v52, %v13061_v5  ;;  %v13063_v52 = vrot.slane %v8907_v36, 7  ;;  %v749_v31 = vadd.f32 %v602_v19, %v519_v4  ;;  %v12838_v39 = vrot.slane %v9152_v33, 6 }
  0xeb   :  { %v742_v21 = vadd.f32 %v609_v25, %v8808_v23  ;;  %v9171_v28 = vpack.c.bf16 %v1040_v62, %v1039_v12  ;;  %v521_v23 = vmul.f32 %v8367_v18, %v9132_v3  ;;  %v9177_v50 = vmul.f32 %v8309_v56, %v9159_v2 }
  0xec   :  { %v838_v5 = vsel %vm825_vm2, %v13064_v30, %v13063_v52  ;;  %v13065_v25 = vmov %v13064_v30  ;;  %v13066_v4 = vrot.slane %v8839_v13, 7  ;;  %v9194_v12 = vmul.f32 %v8367_v18, %v9159_v2 }
  0xed   :  { %v973_v17 = vadd.f32 %v838_v5, %v8989_v45  ;;  %v13067_v45 = vrot.slane %v9043_v57, 6  ;;  %7388 = vmatprep.mubr.msk.bf16.mxu0 %vm1111_vm4, %v9171_v28  ;;  %7428 = vmatprep.mubr.msk.bf16.mxu1 %vm1111_vm4, %v9171_v28  ;;  %v820_v30 = vrot.slane %v9156_v51, 7  ;;  %v9204_v5 = vmul.f32 %v8319_v59, %v9159_v2 }
  0xee   :  { %v839_v19 = vsel %vm825_vm2, %v13066_v4, %v13065_v25  ;;  %v449_v25 = vmul.f32 %v8292_v44, %v403_v37 }
  0xef   :  { %v600_v62 = vsel %vm595_vm0, %v13067_v45, %v12838_v39  ;;  %v972_v52 = vadd.f32 %v839_v19, %v742_v21  ;;  %v1010_v63 = vadd.f32 %v8537_v41, %v973_v17  ;;  %v13068_v17 = vrot.slane %v8843_v15, 6 }
  0xf0   :  { %v751_v13 = vadd.f32 %v600_v62, %v521_v23  ;;  %v13069_v19 = vrot.slane %v8874_v61, 6  ;;  %v13070_v23 = vrot.slane %v8969_v34, 7  ;;  %v13071_v62 = vrot.slane %v8848_v60, 7 }
  0xf1   :  { %v1009_v4 = vadd.f32 %v8537_v41, %v972_v52  ;;  %v1042_v21 = vmax.f32 %v1010_v63, 0.0  ;;  %v593_v39 = vrot.slane %v9177_v50, 6  ;;  %v9222_v44 = vadd.f32 %v8298_v48, %v449_v25 }
  0xf2   :  { %v607_v45 = vsel %vm595_vm0, %v13069_v19, %v13068_v17  ;;  %v836_v7 = vsel %vm825_vm2, %v13071_v62, %v13070_v23  ;;  %v13072_v52 = vmov %v13071_v62  ;;  %v13073_v63 = vrot.slane %v8907_v36, 7 }
  0xf3   :  { %v744_v37 = vadd.f32 %v607_v45, %v8868_v26  ;;  %v975_v15 = vadd.f32 %v836_v7, %v9025_v42  ;;  %v1041_v61 = vmax.f32 %v1009_v4, 0.0  ;;  %v13074_v19 = vrot.slane %v8918_v16, 6 }
  0xf4   :  { %v837_v17 = vsel %vm825_vm2, %v13073_v63, %v13072_v52  ;;  %v13075_v23 = vrot.slane %v8940_v22, 6  ;;  %v13076_v25 = vrot.slane %v9021_v9, 7  ;;  %v13077_v26 = vrot.slane %v8936_v40, 7 }
  0xf5   :  { %v523_v36 = vmul.f32 %v8367_v18, %v9222_v44  ;;  %v560_v60 = vmul.f32 %v8309_v56, %v9222_v44  ;;  %v9250_v16 = vmul.f32 %v8319_v59, %v9222_v44  ;;  %v13079_v42 = vrot.slane %v8969_v34, 7 }
  0xf6   :  { %v605_v48 = vsel %vm595_vm0, %v13075_v23, %v13074_v19  ;;  %v834_v7 = vsel %vm825_vm2, %v13077_v26, %v13076_v25  ;;  %v13078_v22 = vmov %v13077_v26  ;;  %v9258_v45 = vpack.c.bf16 %v1042_v21, %v1041_v61 }
  0xf7   :  { %v835_v4 = vsel %vm825_vm2, %v13079_v42, %v13078_v22  ;;  %v974_v62 = vadd.f32 %v837_v17, %v744_v37  ;;  %v1012_v52 = vadd.f32 %v8537_v41, %v975_v15  ;;  %v746_v18 = vadd.f32 %v605_v48, %v8955_v29 }
  0xf8   :  { %v592_v63 = vrot.slane %v560_v60, 6  ;;  %v822_v56 = vrot.slane %v9250_v16, 7  ;;  %v977_v59 = vadd.f32 %v834_v7, %v9100_v0  ;;  %v748_v19 = vadd.f32 %v716_v6, %v9015_v49  ;;  %7389 = vmatmul.mubr.msk.bf16.gmra.mxu0 %vm1111_vm4, %v9258_v45  ;;  %7429 = vmatmul.mubr.msk.bf16.gmra.mxu1 %vm1111_vm4, %v9258_v45 }
  0xf9   :  { %v1011_v40 = vadd.f32 %v8537_v41, %v974_v62  ;;  %v1044_v34 = vmax.f32 %v1012_v52, 0.0  ;;  %v976_v21 = vadd.f32 %v835_v4, %v746_v18  ;;  %v13080_v37 = vrot.slane %v9110_v32, 7 }
  0xfa   :  { %v13081_v29 = vrot.slane %v8984_v10, 7  ;;  %v13082_v0 = vrot.slane %v9114_v46, 6  ;;  %v1014_v6 = vadd.f32 %v8537_v41, %v977_v59  ;;  %v13084_v17 = vmov %v13076_v25 }
  0xfb   :  { %v1043_v26 = vmax.f32 %v1011_v40, 0.0  ;;  %v1013_v7 = vadd.f32 %v8537_v41, %v976_v21  ;;  %v13085_v4 = vrot.slane %v9043_v57, 6  ;;  %v13086_v10 = vrot.slane %v9095_v14, 6 }
  0xfc   :  { %v832_v15 = vsel %vm825_vm2, %v13081_v29, %v13080_v37  ;;  %v598_v49 = vsel %vm595_vm0, %v13082_v0, %v592_v63  ;;  %v13083_v61 = vmov %v13081_v29  ;;  %v1046_v16 = vmax.f32 %v1014_v6, 0.0 }
  0xfd   :  { %v833_v23 = vsel %vm825_vm2, %v13084_v17, %v13083_v61  ;;  %v979_v48 = vadd.f32 %v832_v15, %v749_v31  ;;  %v753_v25 = vadd.f32 %v598_v49, %v523_v36  ;;  %v601_v9 = vsel %vm595_vm0, %v13086_v10, %v13085_v4 }
  0xfe   :  { %v946_v60 = vsel %vm119_vm10, %v833_v23, 0.0  ;;  %v9297_v62 = vpack.c.bf16 %v1044_v34, %v1043_v26  ;;  %v1045_v31 = vmax.f32 %v1013_v7, 0.0  ;;  %v750_v36 = vadd.f32 %v601_v9, %v9039_v43 }
  0xff   :  { %v978_v22 = vadd.f32 %v946_v60, %v748_v19  ;;  %v1016_v42 = vadd.f32 %v8537_v41, %v979_v48  ;;  %v13087_v52 = vrot.slane %v9058_v54, 7  ;;  %v13089_v19 = vmov %v13080_v37 }
 0x100   :  { %v823_v43 = vrot.slane %v9204_v5, 7  ;;  %7392 = vmatprep.mubr.msk.bf16.mxu0 %vm1111_vm4, %v9297_v62  ;;  %7432 = vmatprep.mubr.msk.bf16.mxu1 %vm1111_vm4, %v9297_v62  ;;  %v1066_v21 = vpack.c.bf16 %v1046_v16, %v1045_v31  ;;  %v13090_v29 = vmov %v13082_v0  ;;  %v13091_v54 = vrot.slane %v9152_v33, 6 }
 0x101   :  { %v830_v18 = vsel %vm825_vm2, %v13087_v52, %v820_v30  ;;  %v1015_v59 = vadd.f32 %v8537_v41, %v978_v22  ;;  %v1048_v57 = vmax.f32 %v1016_v42, 0.0  ;;  %v13088_v14 = vmov %v13087_v52  ;;  %v13099_v52 = vld [vmem:[#allocation42_spill] sm:$0xff] }
 0x102   :  { %v831_v40 = vsel %vm825_vm2, %v13089_v19, %v13088_v14  ;;  %v981_v34 = vadd.f32 %v830_v18, %v751_v13  ;;  %v599_v32 = vsel %vm595_vm0, %v13091_v54, %v13090_v29  ;;  %v13092_v0 = vrot.slane %v9129_v55, 7  ;;  %7393 = vmatmul.mubr.msk.bf16.gmra.mxu0 %vm1111_vm4, %v1066_v21  ;;  %7433 = vmatmul.mubr.msk.bf16.gmra.mxu1 %vm1111_vm4, %v1066_v21 }
 0x103   :  { %v980_v37 = vadd.f32 %v831_v40, %v750_v36  ;;  %v1047_v15 = vmax.f32 %v1015_v59, 0.0  ;;  %v752_v5 = vadd.f32 %v599_v32, %v9120_v38  ;;  %v13094_v48 = vrot.slane %v8352_v11, 6  ;;  %v13098_v36 = vld [vmem:[#allocation39_spill] sm:$0xff] }
 0x104   :  { %v1018_v13 = vadd.f32 %v8537_v41, %v981_v34  ;;  %v828_v49 = vsel %vm825_vm2, %v13092_v0, %v822_v56  ;;  %v13093_v33 = vmov %v13092_v0  ;;  %v597_v55 = vsel %vm595_vm0, %v592_v63, %v593_v39 }
 0x105   :  { %v1017_v46 = vadd.f32 %v8537_v41, %v980_v37  ;;  %v829_v6 = vsel %vm825_vm2, %v820_v30, %v13093_v33  ;;  %v983_v61 = vadd.f32 %v828_v49, %v753_v25  ;;  %v1067_v38 = vpack.c.bf16 %v1048_v57, %v1047_v15 }
 0x106   :  { %v1050_v17 = vmax.f32 %v1018_v13, 0.0  ;;  %v982_v23 = vadd.f32 %v829_v6, %v752_v5  ;;  %v596_v26 = vsel %vm595_vm0, %v593_v39, %v13094_v48  ;;  %v754_v30 = vadd.f32 %v597_v55, %v9194_v12  ;;  %v8044_v5 = vld [vmem:[#allocation2 + $0x68] sm:$0xff]  }
 0x107   :  { %v1049_v7 = vmax.f32 %v1017_v46, 0.0  ;;  %v1020_v60 = vadd.f32 %v8537_v41, %v983_v61  ;;  %v755_v51 = vadd.f32 %v596_v26, %v8440_v53  ;;  %7396 = vmatprep.mubr.msk.bf16.mxu0 %vm1111_vm4, %v1067_v38  ;;  %7436 = vmatprep.mubr.msk.bf16.mxu1 %vm1111_vm4, %v1067_v38  ;;  %v13095_v25 = vrot.slane %v8396_v35, 7 }
 0x108   :  { %v1019_v11 = vadd.f32 %v8537_v41, %v982_v23  ;;  %v827_v39 = vsel %vm825_vm2, %v822_v56, %v823_v43  ;;  %v13097_v56 = vld [vmem:[#allocation35_spill] sm:$0xff] }
 0x109   :  { %v826_v16 = vsel %vm825_vm2, %v823_v43, %v13095_v25  ;;  %v1068_v22 = vpack.c.bf16 %v1050_v17, %v1049_v7  ;;  %v1052_v50 = vmax.f32 %v1020_v60, 0.0  ;;  %v984_v42 = vadd.f32 %v827_v39, %v754_v30  ;;  %v8048_v30 = vld [vmem:[#allocation2 + $0xa8] sm:$0xff]  }
 0x10a   :  { %v985_v63 = vadd.f32 %v826_v16, %v755_v51  ;;  %v1051_v53 = vmax.f32 %v1019_v11, 0.0  ;;  %v8047_v51 = vld [vmem:[#allocation2 + $0xb0] sm:$0xff]   ;;  %v8045_v11 = vld [vmem:[#allocation2 + $0x60] sm:$0xff]  }
 0x10b   :  { %v1021_v9 = vadd.f32 %v8537_v41, %v984_v42  ;;  %7397 = vmatmul.mubr.msk.bf16.gmra.mxu0 %vm1111_vm4, %v1068_v22  ;;  %7437 = vmatmul.mubr.msk.bf16.gmra.mxu1 %vm1111_vm4, %v1068_v22 }
 0x10c   :  { %v1022_v4 = vadd.f32 %v8537_v41, %v985_v63  ;;  %v1069_v10 = vpack.c.bf16 %v1052_v50, %v1051_v53  ;;  %v13096_v41 = vld [vmem:[#allocation32_spill] sm:$0xff]  ;;  %v9473_v63 = vld [vmem:[#allocation2 + $0x98] sm:$0xff]  }
 0x10d   :  { %v1053_v35 = vmax.f32 %v1021_v9, 0.0  ;;  %13101 = vst [vmem:[#allocation35_spill] sm:$0xff] %v9473_v63 }
 0x10e   :  { %7400 = vmatprep.mubr.msk.bf16.mxu0 %vm1111_vm4, %v1069_v10  ;;  %7440 = vmatprep.mubr.msk.bf16.mxu1 %vm1111_vm4, %v1069_v10  ;;  %v1054_v12 = vmax.f32 %v1022_v4, 0.0 }
 0x110   :  { %v1070_v31 = vpack.c.bf16 %v1054_v12, %v1053_v35 }
 0x113   :  { %7401 = vmatmul.mubr.msk.bf16.gmra.mxu0 %vm1111_vm4, %v1070_v31  ;;  %7441 = vmatmul.mubr.msk.bf16.gmra.mxu1 %vm1111_vm4, %v1070_v31 }
 0x114   :  { %7452 = vmatprep.mubr.msk.bf16.mxu0 %vm1111_vm4, %v8596_v8  ;;  %v8042_v8 = vld [vmem:[#allocation2 + $0x78] sm:$0xff]  }
 0x115   :  { %7484 = vmatprep.subr.bf16.mxu1 %v8042_v8 }
 0x116   :  { %7485 = vmatpush3.bf16.msra.mxu1 %v8042_v8 }
 0x11b   :  { %7453 = vmatmul.mubr.msk.bf16.vlgmr.msra.gmra.mxu0 %vm1111_vm4, %v8653_v24 }
 0x11c   :  { %7456 = vmatprep.mubr.msk.bf16.mxu0 %vm1111_vm4, %v8729_v20 }
 0x123   :  { %7457 = vmatmul.mubr.msk.bf16.gmra.mxu0 %vm1111_vm4, %v13096_v41 }
 0x124   :  { %7460 = vmatprep.mubr.msk.bf16.mxu0 %vm1111_vm4, %v13097_v56 }
 0x12b   :  { %7461 = vmatmul.mubr.msk.bf16.gmra.mxu0 %vm1111_vm4, %v13098_v36 }
 0x12c   :  { %7464 = vmatprep.mubr.msk.bf16.mxu0 %vm1111_vm4, %v13099_v52 }
 0x133   :  { %7465 = vmatmul.mubr.msk.bf16.gmra.mxu0 %vm1111_vm4, %v9105_v47 }
 0x134   :  { %7468 = vmatprep.mubr.msk.bf16.mxu0 %vm1111_vm4, %v9171_v28 }
 0x13b   :  { %7469 = vmatmul.mubr.msk.bf16.gmra.mxu0 %vm1111_vm4, %v9258_v45 }
 0x13c   :  { %7472 = vmatprep.mubr.msk.bf16.mxu0 %vm1111_vm4, %v9297_v62  ;;  %v8043_v62 = vld [vmem:[#allocation2 + $0x70] sm:$0xff]  }
 0x13d   :  { %7486 = vmatprep.subr.bf16.mxu1 %v8043_v62 }
 0x13e   :  { %7487 = vmatpush3.bf16.msra.mxu1 %v8043_v62 }
 0x13f   :  { %7488 = vmatprep.subr.bf16.mxu1 %v8044_v5 }
 0x142   :  { %7489 = vmatpush3.bf16.msra.mxu1 %v8044_v5 }
 0x143   :  { %7473 = vmatmul.mubr.msk.bf16.gmra.mxu0 %vm1111_vm4, %v1066_v21  ;;  %7490 = vmatprep.subr.bf16.mxu1 %v8045_v11 }
 0x144   :  { %7476 = vmatprep.mubr.msk.bf16.mxu0 %vm1111_vm4, %v1067_v38  ;;  %v8046_v38 = vld [vmem:[#allocation2 + $0xb8] sm:$0xff]  }
 0x145   :  { %7524 = vmatprep.subr.bf16.mxu0 %v8046_v38 }
 0x146   :  { %7525 = vmatpush3.bf16.msra.mxu0 %v8046_v38  ;;  %7491 = vmatpush3.bf16.msra.mxu1 %v8045_v11 }
 0x147   :  { %7526 = vmatprep.subr.bf16.mxu0 %v8047_v51  ;;  %7564 = vmatprep.subr.bf16.mxu1 %v9473_v63 }
 0x14a   :  { %7527 = vmatpush3.bf16.msra.mxu0 %v8047_v51 }
 0x14b   :  { %7477 = vmatmul.mubr.msk.bf16.gmra.mxu0 %vm1111_vm4, %v1068_v22  ;;  %7528 = vmatprep.subr.bf16.mxu0 %v8048_v30  ;;  %v8049_v22 = vld [vmem:[#allocation2 + $0xa0] sm:$0xff]  }
 0x14c   :  { %7480 = vmatprep.mubr.msk.bf16.mxu0 %vm1111_vm4, %v1069_v10 }
 0x14e   :  { %7529 = vmatpush3.bf16.msra.mxu0 %v8048_v30 }
 0x14f   :  { %7530 = vmatprep.subr.bf16.mxu0 %v8049_v22 }
 0x152   :  { %7531 = vmatpush3.bf16.msra.mxu0 %v8049_v22 }
 0x153   :  { %7481 = vmatmul.mubr.msk.bf16.gmra.mxu0 %vm1111_vm4, %v1070_v31 }
 0x175   :  { %v9396_v24 = vpop.f32.mrf.mxu0  ;;  %v9398_v20 = vpop.f32.mrf.mxu1 }
 0x176   :  { %v12847_v18 = vrot.slane %v9396_v24, 6 }
 0x177   :  { %v9400_v28 = vpop.f32.mrf.mxu0  ;;  %v9402_v47 = vpop.f32.mrf.mxu1 }
 0x178   :  { %13100 = vst [vmem:[#allocation32_spill] sm:$0xff] %v9402_v47 }
 0x179   :  { %v7375_v45 = vpop.f32.mrf.mxu0  ;;  %v9405_v57 = vpop.f32.mrf.mxu1 }
 0x17a   :  { %v1324_v59 = vrot.slane %v7375_v45, 6 }
 0x17b   :  { %v9413_v19 = vpop.f32.mrf.mxu0  ;;  %v9415_v40 = vpop.f32.mrf.mxu1 }
 0x17c   :  { %v9411_v14 = vsel %vm595_vm0, %v12847_v18, %v1324_v59 }
 0x185   :  { %v9417_v34 = vpop.f32.mrf.mxu0  ;;  %v9419_v43 = vpop.f32.mrf.mxu1 }
 0x186   :  { %v12846_v32 = vrot.slane %v9417_v34, 6 }
 0x187   :  { %v9421_v21 = vpop.f32.mrf.mxu0  ;;  %v9424_v29 = vpop.f32.mrf.mxu1 }
 0x188   :  { %v12845_v37 = vrot.slane %v9421_v21, 6 }
 0x189   :  { %v7379_v54 = vpop.f32.mrf.mxu0  ;;  %v9439_v49 = vpop.f32.mrf.mxu1 }
 0x18a   :  { %v9431_v15 = vsel %vm595_vm0, %v1324_v59, %v12845_v37  ;;  %v1328_v13 = vrot.slane %v7379_v54, 6 }
 0x18b   :  { %v9441_v46 = vpop.f32.mrf.mxu0  ;;  %v9443_v33 = vpop.f32.mrf.mxu1 }
 0x18c   :  { %v9437_v0 = vsel %vm595_vm0, %v12846_v32, %v1328_v13 }
 0x197   :  { %v9445_v6 = vpop.f32.mrf.mxu0  ;;  %v9447_v61 = vpop.f32.mrf.mxu1 }
 0x198   :  { %v12843_v7 = vrot.slane %v9445_v6, 6 }
 0x199   :  { %v9449_v17 = vpop.f32.mrf.mxu0  ;;  %v9452_v48 = vpop.f32.mrf.mxu1 }
 0x19a   :  { %v12841_v23 = vrot.slane %v9449_v17, 6 }
 0x19b   :  { %v7383_v26 = vpop.f32.mrf.mxu0  ;;  %v9467_v16 = vpop.f32.mrf.mxu1 }
 0x19c   :  { %v9459_v60 = vsel %vm595_vm0, %v1328_v13, %v12841_v23  ;;  %v1332_v55 = vrot.slane %v7383_v26, 6 }
 0x19d   :  { %v9469_v50 = vpop.f32.mrf.mxu0  ;;  %v9471_v39 = vpop.f32.mrf.mxu1 }
 0x19e   :  { %v9465_v25 = vsel %vm595_vm0, %v12843_v7, %v1332_v55  ;;  %v6727_v7 = vld [vmem:[%s12789_s2 + $0x5] ss:$0 sm:$0xff] }
 0x1a8   :  { %v9475_v53 = vpop.f32.mrf.mxu0  ;;  %v9477_v42 = vpop.f32.mrf.mxu1 }
 0x1a9   :  { %v12840_v12 = vrot.slane %v9475_v53, 6 }
 0x1aa   :  { %v9480_v4 = vpop.f32.mrf.mxu0  ;;  %v9482_v10 = vpop.f32.mrf.mxu1 }
 0x1ab   :  { %v12839_v9 = vrot.slane %v9480_v4, 6 }
 0x1ac   :  { %v7387_v35 = vpop.f32.mrf.mxu0  ;;  %v9492_v56 = vpop.f32.mrf.mxu1 }
 0x1ad   :  { %v9490_v31 = vsel %vm595_vm0, %v1332_v55, %v12839_v9  ;;  %v1336_v41 = vrot.slane %v7387_v35, 6 }
 0x1ae   :  { %v9500_v52 = vpop.f32.mrf.mxu0  ;;  %v9502_v8 = vpop.f32.mrf.mxu1 }
 0x1af   :  { %v9498_v36 = vsel %vm595_vm0, %v12840_v12, %v1336_v41 }
 0x1b8   :  { %v9504_v45 = vpop.f32.mrf.mxu0  ;;  %v9506_v62 = vpop.f32.mrf.mxu1 }
 0x1b9   :  { %13102 = vst [vmem:[#allocation39_spill] sm:$0xff] %v9506_v62  ;;  %v12844_v26 = vrot.slane %v9504_v45, 6  ;;  %v13117_v62 = vld [vmem:[#allocation10_spill] sm:$0xff] }
 0x1ba   :  { %v9508_v59 = vpop.f32.mrf.mxu0  ;;  %v9510_v54 = vpop.f32.mrf.mxu1 }
 0x1bb   :  { %v12842_v13 = vrot.slane %v9508_v59, 6 }
 0x1bc   :  { %v7391_v5 = vpop.f32.mrf.mxu0  ;;  %v9513_v38 = vpop.f32.mrf.mxu1 }
 0x1bd   :  { %13103 = vst [vmem:[#allocation42_spill] sm:$0xff] %v9513_v38  ;;  %v9520_v55 = vsel %vm595_vm0, %v1336_v41, %v12842_v13  ;;  %v1340_v51 = vrot.slane %v7391_v5, 6 }
 0x1be   :  { %v9522_v11 = vpop.f32.mrf.mxu0  ;;  %v9524_v30 = vpop.f32.mrf.mxu1 }
 0x1bf   :  { %13104 = vst [vmem:[#allocation44_spill] sm:$0xff] %v9524_v30  ;;  %v9530_v22 = vsel %vm595_vm0, %v12844_v26, %v1340_v51 }
 0x1c0   :  { %13105 = vst [vmem:[#allocation45_spill] sm:$0xff] %v9530_v22  ;;  %v13149_v22 = vld [vmem:[#allocation29_spill] sm:$0xff] }
 0x1c2   :  { %v9532_v35 = vpop.f32.mrf.mxu0  ;;  %v9534_v9 = vpop.f32.mrf.mxu1 }
 0x1c3   :  { %13106 = vst [vmem:[#allocation46_spill] sm:$0xff] %v9534_v9  ;;  %v12853_v26 = vrot.slane %v9532_v35, 6  ;;  %v13113_v9 = vld [vmem:[#allocation8_spill] sm:$0xff] }
 0x1c4   :  { %v9536_v12 = vpop.f32.mrf.mxu0  ;;  %v9538_v23 = vpop.f32.mrf.mxu1 }
 0x1c5   :  { %13107 = vst [vmem:[#allocation47_spill] sm:$0xff] %v9536_v12  ;;  %13108 = vst [vmem:[#allocation48_spill] sm:$0xff] %v9538_v23  ;;  %v12849_v41 = vrot.slane %v9536_v12, 6  ;;  %v13115_v23 = vld [vmem:[#allocation9_spill] sm:$0xff] }
 0x1c6   :  { %v7395_v5 = vpop.f32.mrf.mxu0  ;;  %v9541_v13 = vpop.f32.mrf.mxu1  ;;  %v9567_v30 = vmul.f32 %v6727_v7, %v13115_v23  ;;  %v13123_v12 = vld [vmem:[#allocation13_spill] sm:$0xff] }
 0x1c7   :  { %13109 = vst [vmem:[#allocation49_spill] sm:$0xff] %v9541_v13  ;;  %v9551_v37 = vsel %vm595_vm0, %v1340_v51, %v12849_v41  ;;  %v1344_v32 = vrot.slane %v7395_v5, 6  ;;  %v9564_v13 = vmul.f32 %v6727_v7, %v13113_v9  ;;  %v9570_v51 = vmul.f32 %v6727_v7, %v13117_v62  ;;  %v13119_v41 = vld [vmem:[#allocation11_spill] sm:$0xff] }
 0x1c8   :  { %13110 = vst [vmem:[#allocation50_spill] sm:$0xff] %v9551_v37  ;;  %v9553_v18 = vpop.f32.mrf.mxu0  ;;  %v9555_v63 = vpop.f32.mrf.mxu1  ;;  %13116 = vst [vmem:[#allocation9_spill] sm:$0xff] %v9567_v30  ;;  %v9575_v37 = vmul.f32 %v6727_v7, %v13119_v41  ;;  %v13129_v30 = vld [vmem:[#allocation21_spill] sm:$0xff]  ;;  %v13133_v41 = vld [vmem:[#allocation23_spill] sm:$0xff] }
 0x1c9   :  { %13111 = vst [vmem:[#allocation51_spill] sm:$0xff] %v9555_v63  ;;  %v9561_v47 = vsel %vm595_vm0, %v12853_v26, %v1344_v32  ;;  %13114 = vst [vmem:[#allocation8_spill] sm:$0xff] %v9564_v13  ;;  %v13121_v63 = vld [vmem:[#allocation16_spill] sm:$0xff]  ;;  %v9581_v26 = vmul.f32 %v6727_v7, %v13123_v12  ;;  %v13127_v13 = vld [vmem:[#allocation18_spill] sm:$0xff]  ;;  %v9590_v62 = vmul.f32 %v6727_v7, %v13129_v30 }
 0x1ca   :  { %13112 = vst [vmem:[#allocation52_spill] sm:$0xff] %v9561_v47  ;;  %13118 = vst [vmem:[#allocation10_spill] sm:$0xff] %v9570_v51  ;;  %v9578_v27 = vmul.f32 %v6727_v7, %v13121_v63  ;;  %v13125_v47 = vld [vmem:[#allocation20_spill] sm:$0xff]  ;;  %v9587_v23 = vmul.f32 %v6727_v7, %v13127_v13  ;;  %v13131_v51 = vld [vmem:[#allocation19_spill] sm:$0xff] }
 0x1cb   :  { %v9572_v5 = vpop.f32.mrf.mxu0  ;;  %13120 = vst [vmem:[#allocation11_spill] sm:$0xff] %v9575_v37  ;;  %13124 = vst [vmem:[#allocation13_spill] sm:$0xff] %v9581_v26  ;;  %v9584_v9 = vmul.f32 %v6727_v7, %v13125_v47  ;;  %v9593_v38 = vmul.f32 %v6727_v7, %v13131_v51  ;;  %v9596_v37 = vmul.f32 %v6727_v7, %v13133_v41  ;;  %v9598_v63 = vpop.f32.mrf.mxu1  ;;  %v13137_v12 = vld [vmem:[#allocation22_spill] sm:$0xff]  ;;  %v13139_v47 = vld [vmem:[#allocation25_spill] sm:$0xff] }
 0x1cc   :  { %13122 = vst [vmem:[#allocation16_spill] sm:$0xff] %v9578_v27  ;;  %13128 = vst [vmem:[#allocation18_spill] sm:$0xff] %v9587_v23  ;;  %v9603_v26 = vmul.f32 %v6727_v7, %v13137_v12  ;;  %v13141_v13 = vld [vmem:[#allocation24_spill] sm:$0xff]  ;;  %v13143_v51 = vld [vmem:[#allocation27_spill] sm:$0xff]  ;;  %v9622_v12 = vmul.f32 %v6727_v7, %v13149_v22 }
 0x1cd   :  { %13126 = vst [vmem:[#allocation20_spill] sm:$0xff] %v9584_v9  ;;  %13130 = vst [vmem:[#allocation21_spill] sm:$0xff] %v9590_v62  ;;  %v9600_v27 = vpop.f32.mrf.mxu0  ;;  %v9606_v9 = vmul.f32 %v6727_v7, %v13139_v47  ;;  %v9609_v23 = vmul.f32 %v6727_v7, %v13141_v13  ;;  %v9613_v62 = vmul.f32 %v6727_v7, %v13143_v51  ;;  %v13145_v41 = vld [vmem:[#allocation26_spill] sm:$0xff]  ;;  %v1322_v47 = vrot.slane %v9413_v19, 6  ;;  %v13155_v22 = vld [vmem:[#allocation33_spill] sm:$0xff]  ;;  %v9644_v13 = vpop.f32.mrf.mxu1 }
 0x1ce   :  { %13132 = vst [vmem:[#allocation19_spill] sm:$0xff] %v9593_v38  ;;  %13134 = vst [vmem:[#allocation23_spill] sm:$0xff] %v9596_v37  ;;  %v12855_v30 = vrot.slane %v9600_v27, 6  ;;  %v9616_v37 = vmul.f32 %v6727_v7, %v13145_v41  ;;  %v13147_v38 = vld [vmem:[#allocation28_spill] sm:$0xff]  ;;  %v13151_v41 = vld [vmem:[#allocation30_spill] sm:$0xff] }
 0x1cf   :  { %13135 = vst [vmem:[#allocation53_spill] sm:$0xff] %v9598_v63  ;;  %13136 = vst [vmem:[#allocation54_spill] sm:$0xff] %v9600_v27  ;;  %v9619_v63 = vmul.f32 %v6727_v7, %v13147_v38  ;;  %v13153_v38 = vld [vmem:[#allocation31_spill] sm:$0xff]  ;;  %v13159_v27 = vld [vmem:[#allocation36_spill] sm:$0xff] }
 0x1d0   :  { %13138 = vst [vmem:[#allocation22_spill] sm:$0xff] %v9603_v26  ;;  %13140 = vst [vmem:[#allocation25_spill] sm:$0xff] %v9606_v9  ;;  %v7399_v26 = vpop.f32.mrf.mxu0  ;;  %v9630_v51 = vsel %vm595_vm0, %v1344_v32, %v12855_v30  ;;  %v13157_v9 = vld [vmem:[#allocation34_spill] sm:$0xff]  ;;  %v9649_v32 = vmul.f32 %v6727_v7, %v13159_v27  ;;  %v13162_v30 = vld [vmem:[#allocation37_spill] sm:$0xff] }
 0x1d1   :  { %13142 = vst [vmem:[#allocation24_spill] sm:$0xff] %v9609_v23  ;;  %13144 = vst [vmem:[#allocation27_spill] sm:$0xff] %v9613_v62  ;;  %v1348_v62 = vrot.slane %v7399_v26, 6  ;;  %v9642_v19 = vmul.f32 %v6727_v7, %v13157_v9  ;;  %v9660_v9 = vmul.f32 %v6727_v7, %v13162_v30  ;;  %v13167_v27 = vld [vmem:[#allocation41_spill] sm:$0xff] }
 0x1d2   :  { %13146 = vst [vmem:[#allocation26_spill] sm:$0xff] %v9616_v37  ;;  %13148 = vst [vmem:[#allocation28_spill] sm:$0xff] %v9619_v63  ;;  %v9633_v37 = vmul.f32 %v6727_v7, %v13151_v41  ;;  %v9636_v63 = vmul.f32 %v6727_v7, %v13153_v38  ;;  %v9646_v23 = vpop.f32.mrf.mxu0  ;;  %v1326_v41 = vrot.slane %v9441_v46, 6  ;;  %v13161_v38 = vrot.slane %v9572_v5, 6 }
 0x1d3   :  { %13150 = vst [vmem:[#allocation29_spill] sm:$0xff] %v9622_v12  ;;  %v9639_v12 = vmul.f32 %v6727_v7, %v13155_v22  ;;  %13158 = vst [vmem:[#allocation34_spill] sm:$0xff] %v9642_v19  ;;  %v9674_v46 = vmul.f32 %v6727_v7, %v9073_v1  ;;  %v9692_v1 = vmul.f32 %v6727_v7, %v9159_v2 }
 0x1d4   :  { %13152 = vst [vmem:[#allocation30_spill] sm:$0xff] %v9633_v37  ;;  %13154 = vst [vmem:[#allocation31_spill] sm:$0xff] %v9636_v63  ;;  %v9657_v22 = vsel %vm595_vm0, %v13161_v38, %v1348_v62  ;;  %v13166_v63 = vld [vmem:[#allocation40_spill] sm:$0xff]  ;;  %v9671_v26 = vpop.f32.mrf.mxu0  ;;  %v13170_v38 = vrot.slane %v9396_v24, 6  ;;  %v9695_v24 = vmul.f32 %v6727_v7, %v9222_v44 }
 0x1d5   :  { %13156 = vst [vmem:[#allocation33_spill] sm:$0xff] %v9639_v12  ;;  %13160 = vst [vmem:[#allocation36_spill] sm:$0xff] %v9649_v32  ;;  %v13164_v12 = vld [vmem:[#allocation38_spill] sm:$0xff]  ;;  %v9666_v19 = vmul.f32 %v6727_v7, %v13166_v63  ;;  %v9669_v32 = vmul.f32 %v6727_v7, %v13167_v27  ;;  %v1330_v63 = vrot.slane %v9469_v50, 6  ;;  %v1334_v50 = vrot.slane %v9500_v52, 6 }
 0x1d6   :  { %13163 = vst [vmem:[#allocation37_spill] sm:$0xff] %v9660_v9  ;;  %v9663_v37 = vmul.f32 %v6727_v7, %v13164_v12  ;;  %13169 = vst [vmem:[#allocation41_spill] sm:$0xff] %v9674_v46  ;;  %v1382_v30 = vsel %vm595_vm0, %v1322_v47, %v13170_v38  ;;  %v13171_v9 = vrot.slane %v9400_v28, 6  ;;  %v9697_v38 = vpop.f32.mrf.mxu1  ;;  %v9699_v46 = vpop.f32.mrf.mxu0  ;;  %v13177_v52 = vrot.slane %v9445_v6, 6 }
 0x1d7   :  { %13168 = vst [vmem:[#allocation40_spill] sm:$0xff] %v9669_v32  ;;  %v9689_v32 = vmul.f32 %v6727_v7, %v9132_v3  ;;  %v9712_v44 = vadd.f32 %v9398_v20, %v1382_v30  ;;  %v13178_v20 = vrot.slane %v9449_v17, 6  ;;  %v13179_v30 = vrot.slane %v9699_v46, 6 }
 0x1d8   :  { %13165 = vst [vmem:[#allocation38_spill] sm:$0xff] %v9663_v37  ;;  %v1383_v12 = vsel %vm595_vm0, %v13171_v9, %v1322_v47  ;;  %v13172_v37 = vld [vmem:[#allocation43_spill] sm:$0xff]  ;;  %v9703_v47 = vadd.f32 %v9405_v57, %v9411_v14  ;;  %v13175_v9 = vrot.slane %v9421_v21, 6  ;;  %v13176_v14 = vld [vmem:[#allocation14_spill] sm:$0xff]  ;;  %v1374_v2 = vsel %vm595_vm0, %v1330_v63, %v13177_v52 }
 0x1d9   :  { %v9686_v27 = vmul.f32 %v6727_v7, %v13172_v37  ;;  %13173 = vst [vmem:[#allocation43_spill] sm:$0xff] %v9692_v1  ;;  %v13174_v37 = vrot.slane %v9417_v34, 6  ;;  %v9715_v7 = vadd.f32 %v9415_v40, %v1383_v12  ;;  %v1393_v34 = vsel %vm135_vm5, %v9459_v60, 0.0  ;;  %v13188_v52 = vld [vmem:[#allocation47_spill] sm:$0xff] }
 0x1da   :  { %v1379_v57 = vsel %vm595_vm0, %v13175_v9, %v1326_v41  ;;  %v1375_v40 = vsel %vm595_vm0, %v13178_v20, %v1330_v63  ;;  %v1338_v21 = vrot.slane %v9522_v11, 6  ;;  %v9741_v60 = vadd.f32 %v9424_v29, %v9431_v15  ;;  %v1574_v11 = vpop.f32.mrf.mxu1  ;;  %v13190_v20 = vld [vmem:[#allocation17_spill] sm:$0xff] }
 0x1db   :  { %v1378_v3 = vsel %vm595_vm0, %v1326_v41, %v13174_v37  ;;  %v7403_v37 = vpop.f32.mrf.mxu0  ;;  %v9737_v41 = vsel %vm595_vm0, %v1348_v62, %v13179_v30  ;;  %v9745_v6 = vadd.f32 %v9439_v49, %v9437_v0  ;;  %v1342_v12 = vrot.slane %v9553_v18, 6  ;;  %v13192_v30 = vld [vmem:[#allocation44_spill] sm:$0xff] }
 0x1dc   :  { %v9748_v17 = vadd.f32 %v9419_v43, %v1378_v3  ;;  %v9754_v9 = vadd.f32 %v9443_v33, %v1379_v57  ;;  %v9757_v62 = vadd.f32 %v9452_v48, %v1393_v34  ;;  %v13180_v29 = vrot.slane %v9475_v53, 6  ;;  %v13182_v48 = vld [vmem:[#allocation15_spill] sm:$0xff]  ;;  %v13186_v57 = vld [vmem:[#allocation45_spill] sm:$0xff]  ;;  %v13187_v34 = vld [vmem:[#allocation42_spill] sm:$0xff] }
 0x1dd   :  { %v9751_v63 = vpop.f32.mrf.mxu0  ;;  %v13181_v0 = vrot.slane %v9480_v4, 6  ;;  %v9769_v18 = vadd.f32 %v9467_v16, %v9465_v25  ;;  %v9772_v49 = vadd.f32 %v9447_v61, %v1374_v2  ;;  %v9775_v33 = vadd.f32 %v9471_v39, %v1375_v40 }
 0x1de   :  { %v1370_v15 = vsel %vm595_vm0, %v1334_v50, %v13180_v29  ;;  %v1401_v53 = vsel %vm143_vm7, %v9520_v55, 0.0  ;;  %v9782_v4 = vadd.f32 %v9482_v10, %v9490_v31  ;;  %v13183_v25 = vrot.slane %v9504_v45, 6  ;;  %v7442_v45 = vpop.f32.mrf.mxu1 }
 0x1df   :  { %v1371_v43 = vsel %vm595_vm0, %v13181_v0, %v1334_v50  ;;  %v7454_v3 = vpop.f32.mrf.mxu0  ;;  %v9786_v50 = vadd.f32 %v9492_v56, %v9498_v36  ;;  %v13184_v16 = vrot.slane %v9508_v59, 6  ;;  %v9797_v55 = vadd.f32 %v9477_v42, %v1370_v15  ;;  %v13194_v15 = vld [vmem:[#allocation48_spill] sm:$0xff] }
 0x1e0   :  { %v1366_v61 = vsel %vm595_vm0, %v1338_v21, %v13183_v25  ;;  %v9800_v10 = vadd.f32 %v9502_v8, %v1371_v43  ;;  %v13185_v31 = vrot.slane %v9532_v35, 6  ;;  %v1346_v36 = vrot.slane %v9646_v23, 6  ;;  %v13191_v23 = vld [vmem:[#allocation39_spill] sm:$0xff]  ;;  %v13195_v25 = vld [vmem:[#allocation52_spill] sm:$0xff] }
 0x1e1   :  { %v1367_v39 = vsel %vm595_vm0, %v13184_v16, %v1338_v21  ;;  %v9807_v2 = vpop.f32.mrf.mxu0  ;;  %v9810_v59 = vadd.f32 %v9510_v54, %v1401_v53  ;;  %v9814_v42 = vadd.f32 %v13187_v34, %v13186_v57  ;;  %v13189_v8 = vrot.slane %v13188_v52, 6  ;;  %v13193_v54 = vld [vmem:[#allocation50_spill] sm:$0xff]  ;;  %v13196_v16 = vld [vmem:[#allocation49_spill] sm:$0xff] }
 0x1e2   :  { %v1362_v56 = vsel %vm595_vm0, %v1342_v12, %v13185_v31  ;;  %v1409_v40 = vsel %vm151_vm9, %v9630_v51, 0.0  ;;  %v9824_v21 = vadd.f32 %v13191_v23, %v1366_v61  ;;  %v9827_v29 = vadd.f32 %v13192_v30, %v1367_v39  ;;  %v13198_v61 = vld [vmem:[#allocation51_spill] sm:$0xff]  ;;  %v1587_v30 = vpop.f32.mrf.mxu1 }
 0x1e3   :  { %v1363_v35 = vsel %vm595_vm0, %v13189_v8, %v1342_v12  ;;  %v9831_v0 = vadd.f32 %v13194_v15, %v13193_v54  ;;  %v1352_v43 = vrot.slane %v7403_v37, 6  ;;  %v7455_v53 = vpop.f32.mrf.mxu0  ;;  %v9835_v31 = vadd.f32 %v13196_v16, %v13195_v25  ;;  %v13197_v12 = vld [vmem:[#allocation46_spill] sm:$0xff] }
 0x1e4   :  { %v9838_v57 = vadd.f32 %v13197_v12, %v1362_v56  ;;  %v1797_v51 = vrot.slane %v7454_v3, 7  ;;  %v1798_v34 = vrot.slane %v7455_v53, 7  ;;  %v9841_v52 = vadd.f32 %v13198_v61, %v1363_v35  ;;  %v13200_v15 = vld [vmem:[#allocation54_spill] sm:$0xff] }
 0x1e5   :  { %v9844_v39 = vadd.f32 %v9644_v13, %v1409_v40  ;;  %v13199_v8 = vrot.slane %v9572_v5, 6  ;;  %v1351_v23 = vrot.slane %v9671_v26, 6  ;;  %v1671_v54 = vpop.f32.mrf.mxu0  ;;  %v13201_v56 = vrot.slane %v13200_v15, 6  ;;  %v9861_v5 = vld [vmem:[%s12789_s2 + $0x7] ss:$0 sm:$0xff] }
 0x1e6   :  { %v12856_v35 = vrot.slane %v9807_v2, 7  ;;  %v1855_v13 = vsel %vm825_vm2, %v1797_v51, %v1798_v34  ;;  %v1796_v40 = vrot.slane %v1671_v54, 7  ;;  %v13202_v26 = vrot.slane %v9400_v28, 6 }
 0x1e7   :  { %v1358_v37 = vsel %vm595_vm0, %v1346_v36, %v13199_v8  ;;  %v1359_v3 = vsel %vm595_vm0, %v13201_v56, %v1346_v36  ;;  %v1353_v25 = vsel %vm595_vm0, %v1351_v23, %v1352_v43  ;;  %v1350_v36 = vrot.slane %v9751_v63, 6  ;;  %v7458_v12 = vpop.f32.mrf.mxu0  ;;  %v13203_v8 = vld [vmem:[#allocation53_spill] sm:$0xff]  ;;  %v7443_v63 = vpop.f32.mrf.mxu1 }
 0x1e8   :  { %v1384_v53 = vsel %vm595_vm0, %v1352_v43, %v13202_v26  ;;  %v1894_v16 = vadd.f32 %v1855_v13, %v9703_v47  ;;  %v9873_v61 = vadd.f32 %v9697_v38, %v9657_v22  ;;  %v9876_v15 = vadd.f32 %v13203_v8, %v1358_v37 }
 0x1e9   :  { %v1856_v28 = vsel %vm825_vm2, %v1796_v40, %v1797_v51  ;;  %v1857_v43 = vsel %vm825_vm2, %v12856_v35, %v1796_v40  ;;  %v9884_v54 = vadd.f32 %v1574_v11, %v1359_v3  ;;  %v1684_v38 = vpop.f32.mrf.mxu0  ;;  %v9890_v37 = vadd.f32 %v1587_v30, %v9737_v41  ;;  %v9907_v30 = vld [vmem:[%s12789_s2 + $0x8] ss:$0 sm:$0xff]  ;;  %v1590_v35 = vpop.f32.mrf.mxu1 }
 0x1ea   :  { %v1931_v47 = vadd.f32 %v9861_v5, %v1894_v16  ;;  %v1892_v56 = vadd.f32 %v1857_v43, %v9715_v7  ;;  %v1893_v22 = vadd.f32 %v1856_v28, %v9712_v44  ;;  %v1385_v51 = vsel %vm127_vm1, %v1384_v53, 0.0  ;;  %v13206_v28 = vld [vmem:[#allocation13_spill] sm:$0xff] }
 0x1eb   :  { %v9894_v26 = vadd.f32 %v7443_v63, %v1353_v25  ;;  %v1799_v8 = vrot.slane %v1684_v38, 7  ;;  %v1354_v11 = vsel %vm595_vm0, %v1350_v36, %v1351_v23  ;;  %v7459_v16 = vpop.f32.mrf.mxu0  ;;  %v13205_v44 = vrot.slane %v9699_v46, 6 }
 0x1ec   :  { %v1963_v3 = vmax.f32 %v1931_v47, 0.0  ;;  %v1929_v40 = vadd.f32 %v9861_v5, %v1892_v56  ;;  %v1930_v7 = vadd.f32 %v9861_v5, %v1893_v22  ;;  %v1801_v53 = vrot.slane %v7458_v12, 7  ;;  %v13207_v22 = vld [vmem:[#allocation32_spill] sm:$0xff] }
 0x1ed   :  { %v1355_v41 = vsel %vm595_vm0, %v13205_v44, %v1350_v36  ;;  %v1854_v23 = vsel %vm825_vm2, %v1798_v34, %v1799_v8  ;;  %v1802_v25 = vrot.slane %v7459_v16, 7  ;;  %v1687_v46 = vpop.f32.mrf.mxu0  ;;  %v9914_v38 = vadd.f32 %v13207_v22, %v1385_v51  ;;  %v13208_v16 = vld [vmem:[#allocation8_spill] sm:$0xff] }
 0x1ee   :  { %v2032_v43 = vadd.f32 %v13206_v28, %v1963_v3  ;;  %v1961_v63 = vmax.f32 %v1929_v40, 0.0  ;;  %v1962_v47 = vmax.f32 %v1930_v7, 0.0  ;;  %v1895_v56 = vadd.f32 %v1854_v23, %v9741_v60  ;;  %v13209_v3 = vld [vmem:[#allocation10_spill] sm:$0xff] }
 0x1ef   :  { %v9916_v36 = vadd.f32 %v7442_v45, %v1354_v11  ;;  %v1851_v44 = vsel %vm825_vm2, %v1801_v53, %v1802_v25  ;;  %v1800_v12 = vrot.slane %v1687_v46, 7  ;;  %v7462_v60 = vpop.f32.mrf.mxu0  ;;  %v9924_v23 = vadd.f32 %v1590_v35, %v1355_v41 }
 0x1f0   :  { %v2069_v34 = vadd.f32 %v9907_v30, %v2032_v43  ;;  %v2030_v1 = vadd.f32 %v13208_v16, %v1961_v63  ;;  %v2031_v40 = vadd.f32 %v13209_v3, %v1962_v47  ;;  %v1932_v7 = vadd.f32 %v9861_v5, %v1895_v56 }
 0x1f1   :  { %v1898_v51 = vadd.f32 %v1851_v44, %v9745_v6  ;;  %v1852_v45 = vsel %vm825_vm2, %v1800_v12, %v1801_v53  ;;  %v1853_v11 = vsel %vm825_vm2, %v1799_v8, %v1800_v12  ;;  %v1805_v46 = vrot.slane %v7462_v60, 7  ;;  %v1700_v47 = vpop.f32.mrf.mxu0  ;;  %v13210_v44 = vld [vmem:[#allocation16_spill] sm:$0xff] }
 0x1f2   :  { %v2068_v28 = vadd.f32 %v9907_v30, %v2031_v40  ;;  %v1964_v43 = vmax.f32 %v1932_v7, 0.0  ;;  %v1896_v63 = vadd.f32 %v1853_v11, %v9754_v9  ;;  %v1897_v35 = vadd.f32 %v1852_v45, %v9748_v17  ;;  %v13212_v45 = vld [vmem:[#allocation19_spill] sm:$0xff] }
 0x1f3   :  { %v1935_v56 = vadd.f32 %v9861_v5, %v1898_v51  ;;  %v1803_v41 = vrot.slane %v1700_v47, 7  ;;  %v9936_v6 = vadd.f32 %v9907_v30, %v2030_v1  ;;  %v2101_v22 = vmax.f32 %v2069_v34, 0.0  ;;  %v7463_v12 = vpop.f32.mrf.mxu0  ;;  %v13213_v47 = vld [vmem:[#allocation18_spill] sm:$0xff] }
 0x1f4   :  { %v2100_v53 = vmax.f32 %v2068_v28, 0.0  ;;  %v2033_v16 = vadd.f32 %v13210_v44, %v1964_v43  ;;  %v1933_v8 = vadd.f32 %v9861_v5, %v1896_v63  ;;  %v1934_v9 = vadd.f32 %v9861_v5, %v1897_v35  ;;  %v13214_v44 = vld [vmem:[#allocation20_spill] sm:$0xff] }
 0x1f5   :  { %v1967_v3 = vmax.f32 %v1935_v56, 0.0  ;;  %v1850_v40 = vsel %vm825_vm2, %v1802_v25, %v1803_v41  ;;  %v1806_v7 = vrot.slane %v7463_v12, 7  ;;  %v1703_v34 = vpop.f32.mrf.mxu0  ;;  %v2099_v51 = vmax.f32 %v9936_v6, 0.0  ;;  %v13252_v6 = vld [vmem:[#allocation35_spill] sm:$0xff] }
 0x1f6   :  { %v9943_v60 = vpack.c.bf16 %v2101_v22, %v2100_v53  ;;  %v1965_v17 = vmax.f32 %v1933_v8, 0.0  ;;  %v1867_v1 = vsel %vm103_vm6, %v1850_v40, 0.0  ;;  %v1966_v28 = vmax.f32 %v1934_v9, 0.0 }
 0x1f7   :  { %v2036_v11 = vadd.f32 %v13212_v45, %v1967_v3  ;;  %v1899_v43 = vadd.f32 %v1867_v1, %v9757_v62  ;;  %v1847_v63 = vsel %vm825_vm2, %v1805_v46, %v1806_v7  ;;  %v1804_v35 = vrot.slane %v1703_v34, 7  ;;  %v7466_v22 = vpop.f32.mrf.mxu0 }
 0x1f8   :  { %13211 = vst [vmem:[#allocation45_spill] sm:$0xff] %v9943_v60  ;;  %v2034_v25 = vadd.f32 %v13213_v47, %v1965_v17  ;;  %v1902_v56 = vadd.f32 %v1847_v63, %v9769_v18  ;;  %v2070_v53 = vadd.f32 %v9907_v30, %v2033_v16  ;;  %v2035_v8 = vadd.f32 %v13214_v44, %v1966_v28 }
 0x1f9   :  { %v1936_v12 = vadd.f32 %v9861_v5, %v1899_v43  ;;  %v1809_v40 = vrot.slane %v7466_v22, 7  ;;  %v2073_v3 = vadd.f32 %v9907_v30, %v2036_v11  ;;  %v1848_v9 = vsel %vm825_vm2, %v1804_v35, %v1805_v46  ;;  %v1716_v18 = vpop.f32.mrf.mxu0  ;;  %v13215_v22 = vld [vmem:[#allocation21_spill] sm:$0xff] }
 0x1fa   :  { %v1939_v62 = vadd.f32 %v9861_v5, %v1902_v56  ;;  %v1849_v17 = vsel %vm825_vm2, %v1803_v41, %v1804_v35  ;;  %v2071_v1 = vadd.f32 %v9907_v30, %v2034_v25  ;;  %v1901_v45 = vadd.f32 %v1848_v9, %v9772_v49  ;;  %v13216_v35 = vld [vmem:[#allocation24_spill] sm:$0xff] }
 0x1fb   :  { %v1968_v34 = vmax.f32 %v1936_v12, 0.0  ;;  %v1900_v16 = vadd.f32 %v1849_v17, %v9775_v33  ;;  %v1807_v28 = vrot.slane %v1716_v18, 7  ;;  %v7467_v63 = vpop.f32.mrf.mxu0  ;;  %v2102_v11 = vmax.f32 %v2070_v53, 0.0 }
 0x1fc   :  { %v1971_v43 = vmax.f32 %v1939_v62, 0.0  ;;  %v2103_v47 = vmax.f32 %v2071_v1, 0.0  ;;  %v2072_v56 = vadd.f32 %v9907_v30, %v2035_v8  ;;  %v1938_v41 = vadd.f32 %v9861_v5, %v1901_v45 }
 0x1fd   :  { %v2037_v46 = vadd.f32 %v13215_v22, %v1968_v34  ;;  %v1937_v44 = vadd.f32 %v9861_v5, %v1900_v16  ;;  %v1846_v25 = vsel %vm825_vm2, %v1806_v7, %v1807_v28  ;;  %v1810_v12 = vrot.slane %v7467_v63, 7  ;;  %v1719_v62 = vpop.f32.mrf.mxu0 }
 0x1fe   :  { %v2040_v33 = vadd.f32 %v13216_v35, %v1971_v43  ;;  %v1903_v49 = vadd.f32 %v1846_v25, %v9782_v4  ;;  %v9974_v9 = vpack.c.bf16 %v2103_v47, %v2102_v11  ;;  %v1970_v17 = vmax.f32 %v1938_v41, 0.0  ;;  %v13218_v43 = vld [vmem:[#allocation22_spill] sm:$0xff]  ;;  %v13219_v4 = vld [vmem:[#allocation23_spill] sm:$0xff] }
 0x1ff   :  { %v1969_v53 = vmax.f32 %v1937_v44, 0.0  ;;  %v1808_v8 = vrot.slane %v1719_v62, 7  ;;  %v2104_v18 = vmax.f32 %v2072_v56, 0.0  ;;  %v1843_v34 = vsel %vm825_vm2, %v1809_v40, %v1810_v12  ;;  %v7470_v16 = vpop.f32.mrf.mxu0 }
 0x200   :  { %13217 = vst [vmem:[#allocation42_spill] sm:$0xff] %v9974_v9  ;;  %v1940_v1 = vadd.f32 %v9861_v5, %v1903_v49  ;;  %v2105_v45 = vmax.f32 %v2073_v3, 0.0  ;;  %v2074_v7 = vadd.f32 %v9907_v30, %v2037_v46  ;;  %v2039_v63 = vadd.f32 %v13219_v4, %v1970_v17 }
 0x201   :  { %v2038_v22 = vadd.f32 %v13218_v43, %v1969_v53  ;;  %v1906_v11 = vadd.f32 %v1843_v34, %v9786_v50  ;;  %v1844_v47 = vsel %vm825_vm2, %v1808_v8, %v1809_v40  ;;  %v1845_v56 = vsel %vm825_vm2, %v1807_v28, %v1808_v8  ;;  %v1732_v35 = vpop.f32.mrf.mxu0  ;;  %v13221_v53 = vld [vmem:[#allocation25_spill] sm:$0xff] }
 0x202   :  { %v1972_v44 = vmax.f32 %v1940_v1, 0.0  ;;  %v1905_v41 = vadd.f32 %v1844_v47, %v9797_v55  ;;  %v1813_v25 = vrot.slane %v7470_v16, 7  ;;  %v1904_v46 = vadd.f32 %v1845_v56, %v9800_v10  ;;  %v13223_v56 = vld [vmem:[#allocation27_spill] sm:$0xff] }
 0x203   :  { %v1943_v3 = vadd.f32 %v9861_v5, %v1906_v11  ;;  %v1811_v49 = vrot.slane %v1732_v35, 7  ;;  %v9990_v62 = vpack.c.bf16 %v2105_v45, %v2104_v18  ;;  %v7471_v40 = vpop.f32.mrf.mxu0  ;;  %v2075_v1 = vadd.f32 %v9907_v30, %v2038_v22  ;;  %v13222_v11 = vld [vmem:[#allocation29_spill] sm:$0xff] }
 0x204   :  { %v2041_v50 = vadd.f32 %v13221_v53, %v1972_v44  ;;  %v1942_v17 = vadd.f32 %v9861_v5, %v1905_v41  ;;  %v2106_v34 = vmax.f32 %v2074_v7, 0.0  ;;  %v1941_v55 = vadd.f32 %v9861_v5, %v1904_v46  ;;  %v13225_v53 = vld [vmem:[#allocation26_spill] sm:$0xff] }
 0x205   :  { %13220 = vst [vmem:[#allocation47_spill] sm:$0xff] %v9990_v62  ;;  %v1975_v28 = vmax.f32 %v1943_v3, 0.0  ;;  %v1842_v8 = vsel %vm825_vm2, %v1810_v12, %v1811_v49  ;;  %v1814_v16 = vrot.slane %v7471_v40, 7  ;;  %v1735_v18 = vpop.f32.mrf.mxu0  ;;  %v2107_v45 = vmax.f32 %v2075_v1, 0.0 }
 0x206   :  { %v1974_v43 = vmax.f32 %v1942_v17, 0.0  ;;  %v1875_v10 = vsel %vm111_vm8, %v1842_v8, 0.0  ;;  %v2076_v4 = vadd.f32 %v9907_v30, %v2039_v63  ;;  %v1973_v44 = vmax.f32 %v1941_v55, 0.0 }
 0x207   :  { %v2044_v47 = vadd.f32 %v13222_v11, %v1975_v28  ;;  %v1907_v7 = vadd.f32 %v1875_v10, %v9810_v59  ;;  %v1839_v22 = vsel %vm825_vm2, %v1813_v25, %v1814_v16  ;;  %v1812_v35 = vrot.slane %v1735_v18, 7  ;;  %v7474_v3 = vpop.f32.mrf.mxu0 }
 0x208   :  { %v2043_v41 = vadd.f32 %v13223_v56, %v1974_v43  ;;  %v1910_v12 = vadd.f32 %v1839_v22, %v9814_v42  ;;  %v10007_v46 = vpack.c.bf16 %v2107_v45, %v2106_v34  ;;  %v2042_v17 = vadd.f32 %v13225_v53, %v1973_v44  ;;  %v13226_v22 = vld [vmem:[#allocation28_spill] sm:$0xff] }
 0x209   :  { %v1944_v63 = vadd.f32 %v9861_v5, %v1907_v7  ;;  %v1817_v40 = vrot.slane %v7474_v3, 7  ;;  %v2077_v1 = vadd.f32 %v9907_v30, %v2040_v33  ;;  %v1840_v28 = vsel %vm825_vm2, %v1812_v35, %v1813_v25  ;;  %v1748_v42 = vpop.f32.mrf.mxu0 }
 0x20a   :  { %13224 = vst [vmem:[#allocation39_spill] sm:$0xff] %v10007_v46  ;;  %v1947_v59 = vadd.f32 %v9861_v5, %v1910_v12  ;;  %v1841_v55 = vsel %vm825_vm2, %v1811_v49, %v1812_v35  ;;  %v2108_v8 = vmax.f32 %v2076_v4, 0.0  ;;  %v1909_v10 = vadd.f32 %v1840_v28, %v9824_v21 }
 0x20b   :  { %v1976_v43 = vmax.f32 %v1944_v63, 0.0  ;;  %v1908_v34 = vadd.f32 %v1841_v55, %v9827_v29  ;;  %v1815_v18 = vrot.slane %v1748_v42, 7  ;;  %v7475_v11 = vpop.f32.mrf.mxu0  ;;  %v2109_v44 = vmax.f32 %v2077_v1, 0.0  ;;  %v13227_v29 = vld [vmem:[#allocation34_spill] sm:$0xff] }
 0x20c   :  { %v1979_v45 = vmax.f32 %v1947_v59, 0.0  ;;  %v2078_v33 = vadd.f32 %v9907_v30, %v2041_v50  ;;  %v2079_v7 = vadd.f32 %v9907_v30, %v2042_v17  ;;  %v1946_v49 = vadd.f32 %v9861_v5, %v1909_v10 }
 0x20d   :  { %v2045_v25 = vadd.f32 %v13226_v22, %v1976_v43  ;;  %v1945_v56 = vadd.f32 %v9861_v5, %v1908_v34  ;;  %v1838_v4 = vsel %vm825_vm2, %v1814_v16, %v1815_v18  ;;  %v1818_v35 = vrot.slane %v7475_v11, 7  ;;  %v1751_v3 = vpop.f32.mrf.mxu0  ;;  %v13229_v43 = vld [vmem:[#allocation31_spill] sm:$0xff] }
 0x20e   :  { %v10027_v12 = vadd.f32 %v13227_v29, %v1979_v45  ;;  %v1911_v21 = vadd.f32 %v1838_v4, %v9831_v0  ;;  %v10030_v53 = vpack.c.bf16 %v2109_v44, %v2108_v8  ;;  %v1978_v17 = vmax.f32 %v1946_v49, 0.0  ;;  %v13230_v0 = vld [vmem:[#allocation30_spill] sm:$0xff]  ;;  %v13232_v29 = vld [vmem:[#allocation33_spill] sm:$0xff] }
 0x20f   :  { %v1977_v50 = vmax.f32 %v1945_v56, 0.0  ;;  %v1816_v63 = vrot.slane %v1751_v3, 7  ;;  %v2110_v1 = vmax.f32 %v2078_v33, 0.0  ;;  %v1835_v28 = vsel %vm825_vm2, %v1817_v40, %v1818_v35  ;;  %v7478_v55 = vpop.f32.mrf.mxu0 }
 0x210   :  { %13228 = vst [vmem:[#allocation44_spill] sm:$0xff] %v10030_v53  ;;  %v1948_v59 = vadd.f32 %v9861_v5, %v1911_v21  ;;  %v2111_v16 = vmax.f32 %v2079_v7, 0.0  ;;  %v2080_v42 = vadd.f32 %v9907_v30, %v2043_v41  ;;  %v2047_v10 = vadd.f32 %v13230_v0, %v1978_v17  ;;  %v13233_v0 = vld [vmem:[#allocation36_spill] sm:$0xff] }
 0x211   :  { %v2046_v34 = vadd.f32 %v13229_v43, %v1977_v50  ;;  %v1914_v8 = vadd.f32 %v1835_v28, %v9835_v31  ;;  %v1836_v45 = vsel %vm825_vm2, %v1816_v63, %v1817_v40  ;;  %v1837_v44 = vsel %vm825_vm2, %v1815_v18, %v1816_v63  ;;  %v1764_v56 = vpop.f32.mrf.mxu0 }
 0x212   :  { %v1980_v11 = vmax.f32 %v1948_v59, 0.0  ;;  %v1913_v33 = vadd.f32 %v1836_v45, %v9838_v57  ;;  %v1821_v22 = vrot.slane %v7478_v55, 7  ;;  %v1912_v41 = vadd.f32 %v1837_v44, %v9841_v52 }
 0x213   :  { %v1951_v7 = vadd.f32 %v9861_v5, %v1914_v8  ;;  %v1819_v49 = vrot.slane %v1764_v56, 7  ;;  %v10046_v4 = vpack.c.bf16 %v2111_v16, %v2110_v1  ;;  %v7479_v21 = vpop.f32.mrf.mxu0  ;;  %v2081_v3 = vadd.f32 %v9907_v30, %v2044_v47 }
 0x214   :  { %v10049_v31 = vadd.f32 %v13232_v29, %v1980_v11  ;;  %v1950_v40 = vadd.f32 %v9861_v5, %v1913_v33  ;;  %v2112_v18 = vmax.f32 %v2080_v42, 0.0  ;;  %v1949_v57 = vadd.f32 %v9861_v5, %v1912_v41  ;;  %v13235_v33 = vld [vmem:[#allocation37_spill] sm:$0xff] }
 0x215   :  { %13231 = vst [vmem:[#allocation50_spill] sm:$0xff] %v10046_v4  ;;  %v1983_v50 = vmax.f32 %v1951_v7, 0.0  ;;  %v1834_v17 = vsel %vm825_vm2, %v1818_v35, %v1819_v49  ;;  %v1822_v63 = vrot.slane %v7479_v21, 7  ;;  %v1767_v59 = vpop.f32.mrf.mxu0  ;;  %v2113_v28 = vmax.f32 %v2081_v3, 0.0 }
 0x216   :  { %v1982_v52 = vmax.f32 %v1950_v40, 0.0  ;;  %v1883_v1 = vsel %vm119_vm10, %v1834_v17, 0.0  ;;  %v2082_v55 = vadd.f32 %v9907_v30, %v2045_v25  ;;  %v1981_v47 = vmax.f32 %v1949_v57, 0.0 }
 0x217   :  { %v10060_v16 = vadd.f32 %v9666_v19, %v1983_v50  ;;  %v1915_v42 = vadd.f32 %v1883_v1, %v9844_v39  ;;  %v1831_v43 = vsel %vm825_vm2, %v1821_v22, %v1822_v63  ;;  %v1820_v45 = vrot.slane %v1767_v59, 7  ;;  %v7482_v11 = vpop.f32.mrf.mxu0 }
 0x218   :  { %v2051_v35 = vadd.f32 %v13233_v0, %v1982_v52  ;;  %v1918_v8 = vadd.f32 %v1831_v43, %v9873_v61  ;;  %v10067_v44 = vpack.c.bf16 %v2113_v28, %v2112_v18  ;;  %v2050_v56 = vadd.f32 %v13235_v33, %v1981_v47 }
 0x219   :  { %v1952_v25 = vadd.f32 %v9861_v5, %v1915_v42  ;;  %v1825_v19 = vrot.slane %v7482_v11, 7  ;;  %v2083_v7 = vadd.f32 %v9907_v30, %v2046_v34  ;;  %v1832_v41 = vsel %vm825_vm2, %v1820_v45, %v1821_v22  ;;  %v1780_v61 = vpop.f32.mrf.mxu0  ;;  %v13236_v22 = vld [vmem:[#allocation38_spill] sm:$0xff] }
 0x21a   :  { %13234 = vst [vmem:[#allocation48_spill] sm:$0xff] %v10067_v44  ;;  %v1955_v39 = vadd.f32 %v9861_v5, %v1918_v8  ;;  %v1833_v29 = vsel %vm825_vm2, %v1819_v49, %v1820_v45  ;;  %v2114_v40 = vmax.f32 %v2082_v55, 0.0  ;;  %v1917_v18 = vadd.f32 %v1832_v41, %v9876_v15 }
 0x21b   :  { %v1984_v21 = vmax.f32 %v1952_v25, 0.0  ;;  %v1916_v3 = vadd.f32 %v1833_v29, %v9884_v54  ;;  %v1823_v50 = vrot.slane %v1780_v61, 7  ;;  %v7483_v17 = vpop.f32.mrf.mxu0  ;;  %v2115_v52 = vmax.f32 %v2083_v7, 0.0  ;;  %v13240_v7 = vld [vmem:[#allocation40_spill] sm:$0xff] }
 0x21c   :  { %v1987_v57 = vmax.f32 %v1955_v39, 0.0  ;;  %v2084_v34 = vadd.f32 %v9907_v30, %v2047_v10  ;;  %v2085_v1 = vadd.f32 %v9907_v30, %v10027_v12  ;;  %v1954_v28 = vadd.f32 %v9861_v5, %v1917_v18 }
 0x21d   :  { %v2053_v59 = vadd.f32 %v13236_v22, %v1984_v21  ;;  %v1953_v49 = vadd.f32 %v9861_v5, %v1916_v3  ;;  %v1830_v54 = vsel %vm825_vm2, %v1822_v63, %v1823_v50  ;;  %v1826_v47 = vrot.slane %v7483_v17, 7  ;;  %v1783_v42 = vpop.f32.mrf.mxu0 }
 0x21e   :  { %v2056_v15 = vadd.f32 %v9689_v32, %v1987_v57  ;;  %v1919_v55 = vadd.f32 %v1830_v54, %v9890_v37  ;;  %v10089_v43 = vpack.c.bf16 %v2115_v52, %v2114_v40  ;;  %v1986_v0 = vmax.f32 %v1954_v28, 0.0  ;;  %v13239_v37 = vld [vmem:[#allocation41_spill] sm:$0xff]  ;;  %v13242_v28 = vld [vmem:[#allocation11_spill] sm:$0xff] }
 0x21f   :  { %v1985_v10 = vmax.f32 %v1953_v49, 0.0  ;;  %v1824_v12 = vrot.slane %v1783_v42, 7  ;;  %v2116_v8 = vmax.f32 %v2084_v34, 0.0  ;;  %v1827_v11 = vsel %vm825_vm2, %v1825_v19, %v1826_v47  ;;  %v13243_v42 = vld [vmem:[#allocation9_spill] sm:$0xff] }
 0x220   :  { %13237 = vst [vmem:[#allocation52_spill] sm:$0xff] %v10089_v43  ;;  %v1956_v45 = vadd.f32 %v9861_v5, %v1919_v55  ;;  %v13238_v33 = vrot.slane %v9807_v2, 7  ;;  %v2117_v63 = vmax.f32 %v2085_v1, 0.0  ;;  %v2055_v39 = vadd.f32 %v13240_v7, %v1986_v0 }
 0x221   :  { %v2054_v25 = vadd.f32 %v13239_v37, %v1985_v10  ;;  %v1922_v29 = vadd.f32 %v1827_v11, %v9894_v26  ;;  %v1828_v21 = vsel %vm825_vm2, %v1824_v12, %v1825_v19  ;;  %v1829_v2 = vsel %vm825_vm2, %v1823_v50, %v1824_v12  ;;  %v13245_v12 = vld [vmem:[#allocation43_spill] sm:$0xff] }
 0x222   :  { %v1858_v32 = vsel %vm825_vm2, %v1826_v47, %v13238_v33  ;;  %v1988_v61 = vmax.f32 %v1956_v45, 0.0  ;;  %v1920_v18 = vadd.f32 %v1829_v2, %v9924_v23  ;;  %v1921_v57 = vadd.f32 %v1828_v21, %v9916_v36 }
 0x223   :  { %v1859_v41 = vsel %vm95_vm3, %v1858_v32, 0.0  ;;  %v1959_v3 = vadd.f32 %v9861_v5, %v1922_v29  ;;  %v10111_v17 = vpack.c.bf16 %v2117_v63, %v2116_v8  ;;  %v2087_v19 = vadd.f32 %v9907_v30, %v2050_v56 }
 0x224   :  { %v1891_v40 = vadd.f32 %v1859_v41, %v9914_v38  ;;  %v2057_v52 = vadd.f32 %v9686_v27, %v1988_v61  ;;  %v2086_v38 = vadd.f32 %v9907_v30, %v10049_v31  ;;  %v1957_v50 = vadd.f32 %v9861_v5, %v1920_v18 }
 0x225   :  { %13241 = vst [vmem:[#allocation49_spill] sm:$0xff] %v10111_v17  ;;  %v1991_v34 = vmax.f32 %v1959_v3, 0.0  ;;  %v1958_v1 = vadd.f32 %v9861_v5, %v1921_v57  ;;  %v2088_v23 = vadd.f32 %v9907_v30, %v2051_v35  ;;  %v2119_v49 = vmax.f32 %v2087_v19, 0.0  ;;  %v8051_v57 = vld [vmem:[#allocation2 + $0x90] sm:$0xff]  }
 0x226   :  { %v1928_v26 = vadd.f32 %v9861_v5, %v1891_v40  ;;  %v2118_v36 = vmax.f32 %v2086_v38, 0.0  ;;  %v2089_v27 = vadd.f32 %v9907_v30, %v10060_v16  ;;  %v1989_v55 = vmax.f32 %v1957_v50, 0.0  ;;  %v8054_v38 = vld [vmem:[#allocation2 + $0xf8] sm:$0xff]   ;;  %v8055_v19 = vld [vmem:[#allocation2 + $0xf0] sm:$0xff]  }
 0x227   :  { %v2060_v54 = vadd.f32 %v13242_v28, %v1991_v34  ;;  %v1990_v47 = vmax.f32 %v1958_v1, 0.0  ;;  %v2120_v31 = vmax.f32 %v2088_v23, 0.0  ;;  %v2090_v5 = vadd.f32 %v9907_v30, %v2053_v59  ;;  %7604 = vmatprep.subr.bf16.mxu0 %v8054_v38  ;;  %v8056_v34 = vld [vmem:[#allocation2 + $0xe8] sm:$0xff]   ;;  %v8057_v1 = vld [vmem:[#allocation2 + $0xe0] sm:$0xff]  }
 0x228   :  { %v1960_v22 = vmax.f32 %v1928_v26, 0.0  ;;  %v10125_v10 = vpack.c.bf16 %v2119_v49, %v2118_v36  ;;  %v2121_v0 = vmax.f32 %v2089_v27, 0.0  ;;  %v2058_v35 = vadd.f32 %v9695_v24, %v1989_v55  ;;  %v8053_v26 = vld [vmem:[#allocation2 + $0x80] sm:$0xff]  }
 0x229   :  { %v2059_v8 = vadd.f32 %v13245_v12, %v1990_v47  ;;  %v2091_v45 = vadd.f32 %v9907_v30, %v2054_v25  ;;  %v2092_v16 = vadd.f32 %v9907_v30, %v2055_v39  ;;  %v2122_v32 = vmax.f32 %v2090_v5, 0.0 }
 0x22a   :  { %v2029_v56 = vadd.f32 %v13243_v42, %v1960_v22  ;;  %13244 = vst [vmem:[#allocation46_spill] sm:$0xff] %v10125_v10  ;;  %v10133_v33 = vpack.c.bf16 %v2121_v0, %v2120_v31  ;;  %v2093_v63 = vadd.f32 %v9907_v30, %v2056_v15  ;;  %v2094_v41 = vadd.f32 %v9907_v30, %v2057_v52  ;;  %v8058_v22 = vld [vmem:[#allocation2 + $0x138] sm:$0xff]   ;;  %v8059_v42 = vld [vmem:[#allocation2 + $0x130] sm:$0xff]  }
 0x22b   :  { %v2123_v37 = vmax.f32 %v2091_v45, 0.0  ;;  %v2124_v7 = vmax.f32 %v2092_v16, 0.0  ;;  %v2095_v59 = vadd.f32 %v9907_v30, %v2058_v35  ;;  %v2096_v61 = vadd.f32 %v9907_v30, %v2059_v8  ;;  %v10269_v0 = vld [vmem:[#allocation2 + $0x118] sm:$0xff]   ;;  %v8061_v45 = vld [vmem:[#allocation2 + $0x120] sm:$0xff]  }
 0x22c   :  { %v2066_v11 = vadd.f32 %v9907_v30, %v2029_v56  ;;  %13246 = vst [vmem:[#allocation51_spill] sm:$0xff] %v10133_v33  ;;  %v2125_v29 = vmax.f32 %v2093_v63, 0.0  ;;  %v2097_v25 = vadd.f32 %v9907_v30, %v2060_v54  ;;  %v2126_v40 = vmax.f32 %v2094_v41, 0.0  ;;  %v8060_v56 = vld [vmem:[#allocation2 + $0x128] sm:$0xff]   ;;  %13255 = vst [vmem:[#allocation19_spill] sm:$0xff] %v10269_v0 }
 0x22d   :  { %v10140_v39 = vpack.c.bf16 %v2123_v37, %v2122_v32  ;;  %v2127_v21 = vmax.f32 %v2095_v59, 0.0  ;;  %v2128_v3 = vmax.f32 %v2096_v61, 0.0  ;;  %vm167_vm12 = vcmp.ge.s32.totalorder %v13176_v14, 4 }
 0x22e   :  { %v2098_v24 = vmax.f32 %v2066_v11, 0.0  ;;  %v10146_v15 = vpack.c.bf16 %v2125_v29, %v2124_v7  ;;  %v2129_v18 = vmax.f32 %v2097_v25, 0.0  ;;  %vm175_vm13 = vcmp.ge.s32.totalorder %v13182_v48, 4 }
 0x22f   :  { %13247 = vst [vmem:[#allocation54_spill] sm:$0xff] %v10140_v39  ;;  %v10148_v52 = vpack.c.bf16 %v2127_v21, %v2126_v40  ;;  %vm183_vm14 = vcmp.ge.s32.totalorder %v13190_v20, 4  ;;  %vm6353_vm2 = vcmask 1043459   ;;  %vm8163_vm3 = vmmov 0  }
 0x230   :  { %v10144_v2 = vpack.c.bf16 %v2099_v51, %v2098_v24  ;;  %13249 = vst [vmem:[#allocation13_spill] sm:$0xff] %v10146_v15  ;;  %v10154_v30 = vpack.c.bf16 %v2129_v18, %v2128_v3  ;;  %v8052_v51 = vld [vmem:[#allocation2 + $0x88] sm:$0xff]  }
 0x231   :  { %13250 = vst [vmem:[#allocation32_spill] sm:$0xff] %v10148_v52 }
 0x232   :  { %13248 = vst [vmem:[#allocation53_spill] sm:$0xff] %v10144_v2  ;;  %7492 = vmatprep.mubr.msk.bf16.mxu1 %vm1111_vm4, %v10144_v2  ;;  %7532 = vmatprep.mubr.msk.bf16.mxu0 %vm1111_vm4, %v10144_v2  ;;  %13251 = vst [vmem:[#allocation8_spill] sm:$0xff] %v10154_v30 }
 0x233   :  { %7493 = vmatmul.mubr.msk.bf16.vlgmr.msra.gmra.mxu1 %vm1111_vm4, %v9943_v60  ;;  %7533 = vmatmul.mubr.msk.bf16.vlgmr.msra.gmra.mxu0 %vm1111_vm4, %v9943_v60 }
 0x234   :  { %7565 = vmatpush3.bf16.msra.mxu1 %v13252_v6  ;;  %7496 = vmatprep.mubr.msk.bf16.mxu1 %vm1111_vm4, %v9974_v9 }
 0x235   :  { %7536 = vmatprep.mubr.msk.bf16.mxu0 %vm1111_vm4, %v9974_v9  ;;  %7566 = vmatprep.subr.bf16.mxu1 %v8051_v57 }
 0x236   :  { %7605 = vmatpush3.bf16.msra.mxu0 %v8054_v38 }
 0x237   :  { %7606 = vmatprep.subr.bf16.mxu0 %v8055_v19 }
 0x238   :  { %7567 = vmatpush3.bf16.msra.mxu1 %v8051_v57 }
 0x239   :  { %7568 = vmatprep.subr.bf16.mxu1 %v8052_v51 }
 0x23a   :  { %7607 = vmatpush3.bf16.msra.mxu0 %v8055_v19 }
 0x23b   :  { %7497 = vmatmul.mubr.msk.bf16.gmra.mxu1 %vm1111_vm4, %v9990_v62  ;;  %7537 = vmatmul.mubr.msk.bf16.gmra.mxu0 %vm1111_vm4, %v9990_v62 }
 0x23c   :  { %7500 = vmatprep.mubr.msk.bf16.mxu1 %vm1111_vm4, %v10007_v46  ;;  %7540 = vmatprep.mubr.msk.bf16.mxu0 %vm1111_vm4, %v10007_v46 }
 0x23d   :  { %7569 = vmatpush3.bf16.msra.mxu1 %v8052_v51  ;;  %7608 = vmatprep.subr.bf16.mxu0 %v8056_v34 }
 0x23e   :  { %7570 = vmatprep.subr.bf16.mxu1 %v8053_v26  ;;  %7609 = vmatpush3.bf16.msra.mxu0 %v8056_v34 }
 0x23f   :  { %7610 = vmatprep.subr.bf16.mxu0 %v8057_v1 }
 0x241   :  { %7571 = vmatpush3.bf16.msra.mxu1 %v8053_v26 }
 0x242   :  { %7611 = vmatpush3.bf16.msra.mxu0 %v8057_v1  ;;  %7644 = vmatprep.subr.bf16.mxu1 %v8058_v22 }
 0x243   :  { %7501 = vmatmul.mubr.msk.bf16.gmra.mxu1 %vm1111_vm4, %v10030_v53  ;;  %7541 = vmatmul.mubr.msk.bf16.gmra.mxu0 %vm1111_vm4, %v10030_v53 }
 0x244   :  { %7504 = vmatprep.mubr.msk.bf16.mxu1 %vm1111_vm4, %v10046_v4  ;;  %7544 = vmatprep.mubr.msk.bf16.mxu0 %vm1111_vm4, %v10046_v4 }
 0x245   :  { %7684 = vmatprep.subr.bf16.mxu0 %v10269_v0 }
 0x24b   :  { %7505 = vmatmul.mubr.msk.bf16.gmra.mxu1 %vm1111_vm4, %v10067_v44  ;;  %7545 = vmatmul.mubr.msk.bf16.gmra.mxu0 %vm1111_vm4, %v10067_v44 }
 0x24c   :  { %7508 = vmatprep.mubr.msk.bf16.mxu1 %vm1111_vm4, %v10089_v43  ;;  %7548 = vmatprep.mubr.msk.bf16.mxu0 %vm1111_vm4, %v10089_v43 }
 0x253   :  { %7509 = vmatmul.mubr.msk.bf16.gmra.mxu1 %vm1111_vm4, %v10111_v17  ;;  %7549 = vmatmul.mubr.msk.bf16.gmra.mxu0 %vm1111_vm4, %v10111_v17 }
 0x254   :  { %7512 = vmatprep.mubr.msk.bf16.mxu1 %vm1111_vm4, %v10125_v10  ;;  %7552 = vmatprep.mubr.msk.bf16.mxu0 %vm1111_vm4, %v10125_v10 }
 0x25b   :  { %7513 = vmatmul.mubr.msk.bf16.gmra.mxu1 %vm1111_vm4, %v10133_v33  ;;  %7553 = vmatmul.mubr.msk.bf16.gmra.mxu0 %vm1111_vm4, %v10133_v33 }
 0x25c   :  { %7516 = vmatprep.mubr.msk.bf16.mxu1 %vm1111_vm4, %v10140_v39  ;;  %7556 = vmatprep.mubr.msk.bf16.mxu0 %vm1111_vm4, %v10140_v39 }
 0x263   :  { %7517 = vmatmul.mubr.msk.bf16.gmra.mxu1 %vm1111_vm4, %v10146_v15  ;;  %7557 = vmatmul.mubr.msk.bf16.gmra.mxu0 %vm1111_vm4, %v10146_v15 }
 0x264   :  { %7520 = vmatprep.mubr.msk.bf16.mxu1 %vm1111_vm4, %v10148_v52  ;;  %7560 = vmatprep.mubr.msk.bf16.mxu0 %vm1111_vm4, %v10148_v52 }
 0x26b   :  { %7521 = vmatmul.mubr.msk.bf16.gmra.mxu1 %vm1111_vm4, %v10154_v30  ;;  %7561 = vmatmul.mubr.msk.bf16.gmra.mxu0 %vm1111_vm4, %v10154_v30 }
 0x26c   :  { %7572 = vmatprep.mubr.msk.bf16.mxu1 %vm1111_vm4, %v10144_v2 }
 0x273   :  { %7573 = vmatmul.mubr.msk.bf16.vlgmr.msra.gmra.mxu1 %vm1111_vm4, %v9943_v60 }
 0x274   :  { %7576 = vmatprep.mubr.msk.bf16.mxu1 %vm1111_vm4, %v9974_v9  ;;  %7645 = vmatpush3.bf16.msra.mxu1 %v8058_v22  ;;  %v10418_v9 = vld [vmem:[#allocation2 + $0xd8] sm:$0xff]  }
 0x275   :  { %7646 = vmatprep.subr.bf16.mxu1 %v8059_v42  ;;  %13263 = vst [vmem:[#allocation29_spill] sm:$0xff] %v10418_v9 }
 0x278   :  { %7647 = vmatpush3.bf16.msra.mxu1 %v8059_v42 }
 0x279   :  { %7648 = vmatprep.subr.bf16.mxu1 %v8060_v56 }
 0x27b   :  { %7577 = vmatmul.mubr.msk.bf16.gmra.mxu1 %vm1111_vm4, %v9990_v62 }
 0x27c   :  { %7580 = vmatprep.mubr.msk.bf16.mxu1 %vm1111_vm4, %v10007_v46  ;;  %7649 = vmatpush3.bf16.msra.mxu1 %v8060_v56 }
 0x27d   :  { %7650 = vmatprep.subr.bf16.mxu1 %v8061_v45 }
 0x280   :  { %7651 = vmatpush3.bf16.msra.mxu1 %v8061_v45 }
 0x281   :  { %7724 = vmatprep.subr.bf16.mxu1 %v10418_v9 }
 0x283   :  { %7581 = vmatmul.mubr.msk.bf16.gmra.mxu1 %vm1111_vm4, %v10030_v53 }
 0x284   :  { %7584 = vmatprep.mubr.msk.bf16.mxu1 %vm1111_vm4, %v10046_v4 }
 0x28b   :  { %7585 = vmatmul.mubr.msk.bf16.gmra.mxu1 %vm1111_vm4, %v10067_v44 }
 0x28c   :  { %7588 = vmatprep.mubr.msk.bf16.mxu1 %vm1111_vm4, %v10089_v43 }
 0x293   :  { %7589 = vmatmul.mubr.msk.bf16.gmra.mxu1 %vm1111_vm4, %v10111_v17 }
 0x294   :  { %7592 = vmatprep.mubr.msk.bf16.mxu1 %vm1111_vm4, %v10125_v10 }
 0x29b   :  { %7593 = vmatmul.mubr.msk.bf16.gmra.mxu1 %vm1111_vm4, %v10133_v33 }
 0x29c   :  { %7596 = vmatprep.mubr.msk.bf16.mxu1 %vm1111_vm4, %v10140_v39 }
 0x2a3   :  { %7597 = vmatmul.mubr.msk.bf16.gmra.mxu1 %vm1111_vm4, %v10146_v15 }
 0x2a4   :  { %7600 = vmatprep.mubr.msk.bf16.mxu1 %vm1111_vm4, %v10148_v52 }
 0x2ab   :  { %7601 = vmatmul.mubr.msk.bf16.gmra.mxu1 %vm1111_vm4, %v10154_v30 }
 0x2f3   :  { %v10249_v50 = vpop.f32.mrf.mxu1  ;;  %v10253_v36 = vpop.f32.mrf.mxu0 }
 0x2f4   :  { %v12863_v27 = vrot.slane %v10249_v50, 4  ;;  %v13268_v9 = vrot.slane %v10249_v50, 4  ;;  %v10458_v50 = vld [vmem:[%s12789_s2 + $0x9] ss:$0 sm:$0xff] }
 0x2f5   :  { %v10251_v23 = vpop.f32.mrf.mxu1  ;;  %v10259_v55 = vpop.f32.mrf.mxu0 }
 0x2f6   :  { %13254 = vst [vmem:[#allocation16_spill] sm:$0xff] %v10259_v55 }
 0x2f7   :  { %v7495_v49 = vpop.f32.mrf.mxu1  ;;  %v10273_v35 = vpop.f32.mrf.mxu0 }
 0x2f8   :  { %v2398_v28 = vrot.slane %v7495_v49, 4 }
 0x2f9   :  { %v10257_v54 = vpop.f32.mrf.mxu1  ;;  %v10286_v37 = vpop.f32.mrf.mxu0 }
 0x2fa   :  { %13253 = vst [vmem:[#allocation10_spill] sm:$0xff] %v10257_v54  ;;  %v10265_v47 = vsel %vm2427_vm11, %v12863_v27, %v2398_v28  ;;  %13256 = vst [vmem:[#allocation18_spill] sm:$0xff] %v10286_v37  ;;  %v12893_v0 = vrot.slane %v10257_v54, 4 }
 0x2fb   :  { %v10267_v31 = vpop.f32.mrf.mxu1  ;;  %v10298_v24 = vpop.f32.mrf.mxu0 }
 0x2fc   :  { %v12862_v16 = vrot.slane %v10267_v31, 4 }
 0x2fd   :  { %v10271_v5 = vpop.f32.mrf.mxu1  ;;  %v10310_v18 = vpop.f32.mrf.mxu0 }
 0x2fe   :  { %v12861_v12 = vrot.slane %v10271_v5, 4 }
 0x2ff   :  { %v7499_v8 = vpop.f32.mrf.mxu1  ;;  %v10322_v26 = vpop.f32.mrf.mxu0 }
 0x300   :  { %v10282_v11 = vsel %vm2427_vm11, %v2398_v28, %v12861_v12  ;;  %v2402_v32 = vrot.slane %v7499_v8, 4 }
 0x301   :  { %v10284_v63 = vpop.f32.mrf.mxu1  ;;  %v10334_v28 = vpop.f32.mrf.mxu0 }
 0x302   :  { %v10292_v7 = vsel %vm2427_vm11, %v12862_v16, %v2402_v32 }
 0x303   :  { %v10294_v41 = vpop.f32.mrf.mxu1  ;;  %v10346_v45 = vpop.f32.mrf.mxu0 }
 0x304   :  { %v12860_v25 = vrot.slane %v10294_v41, 4 }
 0x305   :  { %v10296_v59 = vpop.f32.mrf.mxu1 }
 0x306   :  { %v12859_v29 = vrot.slane %v10296_v59, 4 }
 0x307   :  { %v7503_v61 = vpop.f32.mrf.mxu1 }
 0x308   :  { %v10306_v40 = vsel %vm2427_vm11, %v2402_v32, %v12859_v29  ;;  %v2406_v21 = vrot.slane %v7503_v61, 4  ;;  %v10358_v29 = vpop.f32.mrf.mxu0 }
 0x309   :  { %v10308_v3 = vpop.f32.mrf.mxu1 }
 0x30a   :  { %v10316_v57 = vsel %vm2427_vm11, %v12860_v25, %v2406_v21  ;;  %v10370_v27 = vpop.f32.mrf.mxu0 }
 0x30b   :  { %v10318_v6 = vpop.f32.mrf.mxu1 }
 0x30c   :  { %v12858_v34 = vrot.slane %v10318_v6, 4  ;;  %v10382_v15 = vpop.f32.mrf.mxu0 }
 0x30d   :  { %v10320_v51 = vpop.f32.mrf.mxu1 }
 0x30e   :  { %v12857_v38 = vrot.slane %v10320_v51, 4  ;;  %v10394_v17 = vpop.f32.mrf.mxu0 }
 0x30f   :  { %v7507_v19 = vpop.f32.mrf.mxu1 }
 0x310   :  { %v10330_v1 = vsel %vm2427_vm11, %v2406_v21, %v12857_v38  ;;  %v2410_v22 = vrot.slane %v7507_v19, 4  ;;  %v10406_v4 = vpop.f32.mrf.mxu0 }
 0x311   :  { %v10332_v49 = vpop.f32.mrf.mxu1 }
 0x312   :  { %v10340_v42 = vsel %vm2427_vm11, %v12858_v34, %v2410_v22  ;;  %v10420_v60 = vpop.f32.mrf.mxu0 }
 0x313   :  { %v10342_v56 = vpop.f32.mrf.mxu1 }
 0x314   :  { %v12867_v21 = vrot.slane %v10342_v56, 4  ;;  %v10434_v2 = vpop.f32.mrf.mxu0 }
 0x315   :  { %v10344_v8 = vpop.f32.mrf.mxu1 }
 0x316   :  { %v12864_v32 = vrot.slane %v10344_v8, 4  ;;  %v10439_v37 = vpop.f32.mrf.mxu0 }
 0x317   :  { %v7511_v61 = vpop.f32.mrf.mxu1 }
 0x318   :  { %v10354_v19 = vsel %vm2427_vm11, %v2410_v22, %v12864_v32  ;;  %v2414_v38 = vrot.slane %v7511_v61, 4 }
 0x319   :  { %v10356_v34 = vpop.f32.mrf.mxu1 }
 0x31a   :  { %v10364_v25 = vsel %vm2427_vm11, %v12867_v21, %v2414_v38 }
 0x31b   :  { %v10366_v12 = vpop.f32.mrf.mxu1 }
 0x31c   :  { %v12876_v61 = vrot.slane %v10366_v12, 4 }
 0x31d   :  { %v10368_v16 = vpop.f32.mrf.mxu1 }
 0x31e   :  { %v12873_v22 = vrot.slane %v10368_v16, 4 }
 0x31f   :  { %v7515_v32 = vpop.f32.mrf.mxu1 }
 0x320   :  { %v10378_v30 = vsel %vm2427_vm11, %v2414_v38, %v12873_v22  ;;  %v2418_v52 = vrot.slane %v7515_v32, 4 }
 0x321   :  { %v10380_v21 = vpop.f32.mrf.mxu1 }
 0x322   :  { %v10388_v39 = vsel %vm2427_vm11, %v12876_v61, %v2418_v52 }
 0x323   :  { %v10390_v33 = vpop.f32.mrf.mxu1 }
 0x324   :  { %13257 = vst [vmem:[#allocation20_spill] sm:$0xff] %v10390_v33  ;;  %v12884_v32 = vrot.slane %v10390_v33, 4 }
 0x325   :  { %v10392_v10 = vpop.f32.mrf.mxu1 }
 0x326   :  { %13258 = vst [vmem:[#allocation21_spill] sm:$0xff] %v10392_v10  ;;  %v12883_v38 = vrot.slane %v10392_v10, 4  ;;  %v10451_v10 = vpop.f32.mrf.mxu0 }
 0x327   :  { %v7519_v22 = vpop.f32.mrf.mxu1 }
 0x328   :  { %v10402_v43 = vsel %vm2427_vm11, %v2418_v52, %v12883_v38  ;;  %v2422_v44 = vrot.slane %v7519_v22, 4  ;;  %v10469_v33 = vpop.f32.mrf.mxu0 }
 0x329   :  { %13259 = vst [vmem:[#allocation24_spill] sm:$0xff] %v10402_v43  ;;  %v10404_v61 = vpop.f32.mrf.mxu1 }
 0x32a   :  { %v10412_v53 = vsel %vm2427_vm11, %v12884_v32, %v2422_v44 }
 0x32b   :  { %13260 = vst [vmem:[#allocation22_spill] sm:$0xff] %v10412_v53  ;;  %v10414_v46 = vpop.f32.mrf.mxu1 }
 0x32c   :  { %13261 = vst [vmem:[#allocation23_spill] sm:$0xff] %v10414_v46 }
 0x32d   :  { %v10416_v62 = vpop.f32.mrf.mxu1 }
 0x32e   :  { %13262 = vst [vmem:[#allocation25_spill] sm:$0xff] %v10416_v62  ;;  %v12889_v52 = vrot.slane %v10416_v62, 4 }
 0x32f   :  { %v10423_v22 = vpop.f32.mrf.mxu1 }
 0x330   :  { %13264 = vst [vmem:[#allocation27_spill] sm:$0xff] %v10423_v22  ;;  %v10430_v38 = vsel %vm2427_vm11, %v2422_v44, %v12889_v52  ;;  %v2457_v44 = vsel %vm2427_vm11, %v12893_v0, %v13268_v9 }
 0x331   :  { %13265 = vst [vmem:[#allocation26_spill] sm:$0xff] %v10430_v38  ;;  %v10432_v32 = vpop.f32.mrf.mxu1  ;;  %v2626_v38 = vadd.f32 %v10273_v35, %v10265_v47  ;;  %v2623_v9 = vadd.f32 %v10253_v36, %v2457_v44  ;;  %v2631_v36 = vadd.f32 %v10310_v18, %v10282_v11 }
 0x332   :  { %13266 = vst [vmem:[#allocation28_spill] sm:$0xff] %v10432_v32 }
 0x333   :  { %v7574_v46 = vpop.f32.mrf.mxu1 }
 0x334   :  { %v2936_v52 = vrot.slane %v7574_v46, 6  ;;  %v2400_v46 = vrot.slane %v10284_v63, 4 }
 0x335   :  { %v10437_v55 = vpop.f32.mrf.mxu1 }
 0x336   :  { %13267 = vst [vmem:[#allocation34_spill] sm:$0xff] %v10437_v55 }
 0x337   :  { %v7575_v22 = vpop.f32.mrf.mxu1 }
 0x338   :  { %v2937_v62 = vrot.slane %v7575_v22, 6 }
 0x339   :  { %v10449_v32 = vpop.f32.mrf.mxu1 }
 0x33a   :  { %13269 = vst [vmem:[#allocation31_spill] sm:$0xff] %v10449_v32  ;;  %v2994_v55 = vsel %vm595_vm0, %v2936_v52, %v2937_v62  ;;  %v12897_v53 = vrot.slane %v10449_v32, 6 }
 0x33b   :  { %v3033_v22 = vadd.f32 %v2994_v55, %v2626_v38  ;;  %v7578_v47 = vpop.f32.mrf.mxu1  ;;  %v13270_v55 = vrot.slane %v10267_v31, 4  ;;  %v13271_v38 = vrot.slane %v10271_v5, 4  ;;  %v2642_v31 = vadd.f32 %v10322_v26, %v10292_v7 }
 0x33c   :  { %v2995_v35 = vsel %vm595_vm0, %v12897_v53, %v2936_v52  ;;  %v13272_v26 = vrot.slane %v10294_v41, 4  ;;  %v2658_v41 = vadd.f32 %v10370_v27, %v10316_v57 }
 0x33d   :  { %v3070_v0 = vadd.f32 %v10458_v50, %v3033_v22  ;;  %v3032_v54 = vadd.f32 %v2995_v35, %v2623_v9  ;;  %v2823_v13 = vpop.f32.mrf.mxu1  ;;  %v2453_v63 = vsel %vm2427_vm11, %v2400_v46, %v13270_v55  ;;  %v2454_v52 = vsel %vm2427_vm11, %v13271_v38, %v2400_v46  ;;  %v10488_v46 = vpop.f32.mrf.mxu0 }
 0x33e   :  { %v2938_v43 = vrot.slane %v2823_v13, 6  ;;  %v2404_v22 = vrot.slane %v10308_v3, 4  ;;  %v2940_v35 = vrot.slane %v7578_v47, 6  ;;  %v2639_v32 = vadd.f32 %v10298_v24, %v2453_v63 }
 0x33f   :  { %v3069_v44 = vadd.f32 %v10458_v50, %v3032_v54  ;;  %v7579_v9 = vpop.f32.mrf.mxu1  ;;  %v3102_v18 = vmax.f32 %v3070_v0, 0.0  ;;  %v2634_v47 = vadd.f32 %v10334_v28, %v2454_v52 }
 0x340   :  { %v2993_v13 = vsel %vm595_vm0, %v2937_v62, %v2938_v43  ;;  %v2941_v11 = vrot.slane %v7579_v9, 6  ;;  %v2532_v62 = vsel %vm167_vm12, %v10306_v40, 0.0  ;;  %v2449_v24 = vsel %vm2427_vm11, %v2404_v22, %v13272_v26 }
 0x341   :  { %v3101_v55 = vmax.f32 %v3069_v44, 0.0  ;;  %v3034_v53 = vadd.f32 %v2993_v13, %v2631_v36  ;;  %v2826_v5 = vpop.f32.mrf.mxu1  ;;  %v2647_v13 = vadd.f32 %v10358_v29, %v2532_v62 }
 0x342   :  { %v2990_v54 = vsel %vm595_vm0, %v2940_v35, %v2941_v11  ;;  %v2939_v3 = vrot.slane %v2826_v5, 6 }
 0x343   :  { %v10496_v38 = vpack.c.bf16 %v3102_v18, %v3101_v55  ;;  %v3037_v0 = vadd.f32 %v2990_v54, %v2642_v31  ;;  %v7582_v7 = vpop.f32.mrf.mxu1  ;;  %v3071_v36 = vadd.f32 %v10458_v50, %v3034_v53  ;;  %v10511_v31 = vpop.f32.mrf.mxu0  ;;  %v2655_v53 = vadd.f32 %v10346_v45, %v2449_v24 }
 0x344   :  { %v2991_v63 = vsel %vm595_vm0, %v2939_v3, %v2940_v35  ;;  %v2992_v28 = vsel %vm595_vm0, %v2938_v43, %v2939_v3  ;;  %v13273_v35 = vrot.slane %v10296_v59, 4  ;;  %v2944_v29 = vrot.slane %v7582_v7, 6 }
 0x345   :  { %v3074_v52 = vadd.f32 %v10458_v50, %v3037_v0  ;;  %v3035_v40 = vadd.f32 %v2992_v28, %v2634_v47  ;;  %v3036_v44 = vadd.f32 %v2991_v63, %v2639_v32  ;;  %v2839_v9 = vpop.f32.mrf.mxu1  ;;  %v3103_v54 = vmax.f32 %v3071_v36, 0.0  ;;  %v10525_v0 = vpop.f32.mrf.mxu0 }
 0x346   :  { %v2942_v18 = vrot.slane %v2839_v9, 6  ;;  %v2450_v43 = vsel %vm2427_vm11, %v13273_v35, %v2404_v22  ;;  %v2408_v22 = vrot.slane %v10332_v49, 4  ;;  %v2663_v35 = vadd.f32 %v10406_v4, %v10330_v1 }
 0x347   :  { %v3072_v55 = vadd.f32 %v10458_v50, %v3035_v40  ;;  %v3073_v32 = vadd.f32 %v10458_v50, %v3036_v44  ;;  %v7583_v5 = vpop.f32.mrf.mxu1  ;;  %v3106_v3 = vmax.f32 %v3074_v52, 0.0  ;;  %v2650_v36 = vadd.f32 %v10382_v15, %v2450_v43 }
 0x348   :  { %v2989_v27 = vsel %vm595_vm0, %v2941_v11, %v2942_v18  ;;  %v2945_v57 = vrot.slane %v7583_v5, 6  ;;  %v2674_v43 = vadd.f32 %v10420_v60, %v10340_v42  ;;  %v10549_v5 = vpop.f32.mrf.mxu0 }
 0x349   :  { %v3006_v45 = vsel %vm135_vm5, %v2989_v27, 0.0  ;;  %v2842_v47 = vpop.f32.mrf.mxu1  ;;  %v3104_v59 = vmax.f32 %v3072_v55, 0.0  ;;  %v3105_v62 = vmax.f32 %v3073_v32, 0.0  ;;  %v13274_v55 = vrot.slane %v10318_v6, 4 }
 0x34a   :  { %v3038_v26 = vadd.f32 %v3006_v45, %v2647_v13  ;;  %v2986_v24 = vsel %vm595_vm0, %v2944_v29, %v2945_v57  ;;  %v2943_v7 = vrot.slane %v2842_v47, 6 }
 0x34b   :  { %v3041_v11 = vadd.f32 %v2986_v24, %v2658_v41  ;;  %v7586_v63 = vpop.f32.mrf.mxu1  ;;  %v10530_v28 = vpack.c.bf16 %v3104_v59, %v3103_v54  ;;  %v10532_v52 = vpack.c.bf16 %v3106_v3, %v3105_v62  ;;  %v2445_v32 = vsel %vm2427_vm11, %v2408_v22, %v13274_v55 }
 0x34c   :  { %v3075_v40 = vadd.f32 %v10458_v50, %v3038_v26  ;;  %v2987_v49 = vsel %vm595_vm0, %v2943_v7, %v2944_v29  ;;  %v2988_v44 = vsel %vm595_vm0, %v2942_v18, %v2943_v7  ;;  %v13275_v54 = vrot.slane %v10320_v51, 4  ;;  %v10562_v26 = vpop.f32.mrf.mxu0 }
 0x34d   :  { %v3078_v9 = vadd.f32 %v10458_v50, %v3041_v11  ;;  %v3039_v13 = vadd.f32 %v2988_v44, %v2650_v36  ;;  %v3040_v15 = vadd.f32 %v2987_v49, %v2655_v53  ;;  %v2855_v41 = vpop.f32.mrf.mxu1  ;;  %v2412_v29 = vrot.slane %v10356_v34, 4 }
 0x34e   :  { %v2946_v18 = vrot.slane %v2855_v41, 6  ;;  %v2446_v53 = vsel %vm2427_vm11, %v13275_v54, %v2408_v22  ;;  %v2948_v42 = vrot.slane %v7586_v63, 6  ;;  %v3107_v3 = vmax.f32 %v3075_v40, 0.0 }
 0x34f   :  { %v3076_v4 = vadd.f32 %v10458_v50, %v3039_v13  ;;  %v3077_v1 = vadd.f32 %v10458_v50, %v3040_v15  ;;  %v7587_v60 = vpop.f32.mrf.mxu1  ;;  %v3110_v45 = vmax.f32 %v3078_v9, 0.0  ;;  %v2671_v22 = vadd.f32 %v10394_v17, %v2445_v32 }
 0x350   :  { %v2985_v6 = vsel %vm595_vm0, %v2945_v57, %v2946_v18  ;;  %v2949_v27 = vrot.slane %v7587_v60, 6  ;;  %v2666_v34 = vadd.f32 %v10434_v2, %v2446_v53  ;;  %v2540_v57 = vsel %vm175_vm13, %v10354_v19, 0.0 }
 0x351   :  { %v3042_v47 = vadd.f32 %v2985_v6, %v2663_v35  ;;  %v2858_v59 = vpop.f32.mrf.mxu1  ;;  %v3108_v51 = vmax.f32 %v3076_v4, 0.0  ;;  %v3109_v62 = vmax.f32 %v3077_v1, 0.0  ;;  %v13276_v17 = vrot.slane %v10342_v56, 4 }
 0x352   :  { %v2982_v24 = vsel %vm595_vm0, %v2948_v42, %v2949_v27  ;;  %v2947_v7 = vrot.slane %v2858_v59, 6  ;;  %v2679_v35 = vadd.f32 %v10451_v10, %v2540_v57  ;;  %v2690_v56 = vadd.f32 %v10469_v33, %v10364_v25 }
 0x353   :  { %v3045_v36 = vadd.f32 %v2982_v24, %v2674_v43  ;;  %v7590_v11 = vpop.f32.mrf.mxu1  ;;  %v10569_v63 = vpack.c.bf16 %v3108_v51, %v3107_v3  ;;  %v10571_v40 = vpack.c.bf16 %v3110_v45, %v3109_v62  ;;  %v2441_v2 = vsel %vm2427_vm11, %v2412_v29, %v13276_v17  ;;  %v10586_v43 = vpop.f32.mrf.mxu0 }
 0x354   :  { %v3079_v49 = vadd.f32 %v10458_v50, %v3042_v47  ;;  %v2983_v44 = vsel %vm595_vm0, %v2947_v7, %v2948_v42  ;;  %v2984_v9 = vsel %vm595_vm0, %v2946_v18, %v2947_v7  ;;  %v2687_v32 = vadd.f32 %v10439_v37, %v2441_v2 }
 0x355   :  { %v3082_v19 = vadd.f32 %v10458_v50, %v3045_v36  ;;  %v3043_v13 = vadd.f32 %v2984_v9, %v2666_v34  ;;  %v3044_v15 = vadd.f32 %v2983_v44, %v2671_v22  ;;  %v2871_v41 = vpop.f32.mrf.mxu1  ;;  %v13277_v54 = vrot.slane %v10344_v8, 4  ;;  %v2710_v45 = vpop.f32.mrf.mxu0 }
 0x356   :  { %v2950_v55 = vrot.slane %v2871_v41, 6  ;;  %v3111_v60 = vmax.f32 %v3079_v49, 0.0  ;;  %v2952_v10 = vrot.slane %v7590_v11, 6  ;;  %v2395_v36 = vrot.slane %v10251_v23, 4 }
 0x357   :  { %v2442_v18 = vsel %vm2427_vm11, %v13277_v54, %v2412_v29  ;;  %v3080_v53 = vadd.f32 %v10458_v50, %v3043_v13  ;;  %v3081_v4 = vadd.f32 %v10458_v50, %v3044_v15  ;;  %v7591_v1 = vpop.f32.mrf.mxu1  ;;  %v3114_v42 = vmax.f32 %v3082_v19, 0.0  ;;  %v7559_v13 = vpop.f32.mrf.mxu0 }
 0x358   :  { %v2981_v33 = vsel %vm595_vm0, %v2949_v27, %v2950_v55  ;;  %v2953_v25 = vrot.slane %v7591_v1, 6  ;;  %v2416_v29 = vrot.slane %v10380_v21, 4  ;;  %v2682_v62 = vadd.f32 %v10488_v46, %v2442_v18 }
 0x359   :  { %v3014_v37 = vsel %vm143_vm7, %v2981_v33, 0.0  ;;  %v2874_v6 = vpop.f32.mrf.mxu1  ;;  %v3112_v8 = vmax.f32 %v3080_v53, 0.0  ;;  %v3113_v3 = vmax.f32 %v3081_v4, 0.0  ;;  %v2695_v49 = vadd.f32 %v10525_v0, %v10378_v30 }
 0x35a   :  { %v3046_v47 = vadd.f32 %v3014_v37, %v2679_v35  ;;  %v2978_v59 = vsel %vm595_vm0, %v2952_v10, %v2953_v25  ;;  %v2951_v51 = vrot.slane %v2874_v6, 6  ;;  %v2706_v44 = vadd.f32 %v10549_v5, %v10388_v39 }
 0x35b   :  { %v3049_v22 = vadd.f32 %v2978_v59, %v2690_v56  ;;  %v7594_v27 = vpop.f32.mrf.mxu1  ;;  %v10603_v34 = vpack.c.bf16 %v3112_v8, %v3111_v60  ;;  %v10605_v24 = vpack.c.bf16 %v3114_v42, %v3113_v3  ;;  %v13278_v9 = vrot.slane %v10366_v12, 4  ;;  %v2713_v60 = vpop.f32.mrf.mxu0  ;;  %v13280_v42 = vld [vmem:[#allocation24_spill] sm:$0xff] }
 0x35c   :  { %v3083_v7 = vadd.f32 %v10458_v50, %v3046_v47  ;;  %v2979_v21 = vsel %vm595_vm0, %v2951_v51, %v2952_v10  ;;  %v2980_v57 = vsel %vm595_vm0, %v2950_v55, %v2951_v51  ;;  %v13279_v41 = vrot.slane %v10368_v16, 4 }
 0x35d   :  { %v3086_v46 = vadd.f32 %v10458_v50, %v3049_v22  ;;  %v3047_v11 = vadd.f32 %v2980_v57, %v2682_v62  ;;  %v3048_v17 = vadd.f32 %v2979_v21, %v2687_v32  ;;  %v2887_v2 = vpop.f32.mrf.mxu1  ;;  %v2437_v19 = vsel %vm2427_vm11, %v2416_v29, %v13278_v9  ;;  %v13284_v22 = vld [vmem:[#allocation10_spill] sm:$0xff] }
 0x35e   :  { %v2954_v15 = vrot.slane %v2887_v2, 6  ;;  %v2438_v35 = vsel %vm2427_vm11, %v13279_v41, %v2416_v29  ;;  %v2420_v56 = vrot.slane %v10404_v61, 4  ;;  %v2956_v39 = vrot.slane %v7594_v27, 6  ;;  %v13281_v29 = vld [vmem:[#allocation20_spill] sm:$0xff]  ;;  %v13286_v2 = vld [vmem:[#allocation22_spill] sm:$0xff] }
 0x35f   :  { %v3084_v55 = vadd.f32 %v10458_v50, %v3047_v11  ;;  %v3085_v30 = vadd.f32 %v10458_v50, %v3048_v17  ;;  %v7595_v0 = vpop.f32.mrf.mxu1  ;;  %v3115_v32 = vmax.f32 %v3083_v7, 0.0  ;;  %v3118_v54 = vmax.f32 %v3086_v46, 0.0 }
 0x360   :  { %v2977_v12 = vsel %vm595_vm0, %v2953_v25, %v2954_v15  ;;  %v2957_v5 = vrot.slane %v7595_v0, 6  ;;  %v2703_v1 = vadd.f32 %v10511_v31, %v2437_v19  ;;  %v2698_v61 = vadd.f32 %v10562_v26, %v2438_v35  ;;  %v13283_v26 = vld [vmem:[#allocation12_spill] sm:$0xff] }
 0x361   :  { %v3117_v18 = vmax.f32 %v3085_v30, 0.0  ;;  %v3050_v53 = vadd.f32 %v2977_v12, %v2695_v49  ;;  %v2890_v16 = vpop.f32.mrf.mxu1  ;;  %v3116_v4 = vmax.f32 %v3084_v55, 0.0  ;;  %v2548_v25 = vsel %vm183_vm14, %v13280_v42, 0.0  ;;  %v13289_v55 = vld [vmem:[#allocation27_spill] sm:$0xff]  ;;  %v13290_v42 = vld [vmem:[#allocation34_spill] sm:$0xff] }
 0x362   :  { %v2974_v10 = vsel %vm595_vm0, %v2956_v39, %v2957_v5  ;;  %v2955_v33 = vrot.slane %v2890_v16, 6  ;;  %v13282_v47 = vrot.slane %v13281_v29, 4  ;;  %vm159_vm15 = vcmp.ge.s32.totalorder %v13283_v26, 4 }
 0x363   :  { %v10639_v37 = vpack.c.bf16 %v3118_v54, %v3117_v18  ;;  %v3053_v6 = vadd.f32 %v2974_v10, %v2706_v44  ;;  %v7598_v8 = vpop.f32.mrf.mxu1  ;;  %v10641_v3 = vpack.c.bf16 %v3116_v4, %v3115_v32  ;;  %v3087_v59 = vadd.f32 %v10458_v50, %v3050_v53  ;;  %v13287_v44 = vld [vmem:[#allocation21_spill] sm:$0xff] }
 0x364   :  { %v2433_v31 = vsel %vm2427_vm11, %v2420_v56, %v13282_v47  ;;  %v2975_v51 = vsel %vm595_vm0, %v2955_v33, %v2956_v39  ;;  %v2976_v62 = vsel %vm595_vm0, %v2954_v15, %v2955_v33  ;;  %v13285_v27 = vrot.slane %v13284_v22, 4  ;;  %v10665_v15 = vpop.f32.mrf.mxu0  ;;  %v13291_v47 = vld [vmem:[#allocation28_spill] sm:$0xff] }
 0x365   :  { %v3090_v21 = vadd.f32 %v10458_v50, %v3053_v6  ;;  %v3051_v57 = vadd.f32 %v2976_v62, %v2698_v61  ;;  %v3052_v46 = vadd.f32 %v2975_v51, %v2703_v1  ;;  %v2903_v11 = vpop.f32.mrf.mxu1  ;;  %v2711_v17 = vadd.f32 %v2710_v45, %v2548_v25  ;;  %v13292_v62 = vld [vmem:[#allocation31_spill] sm:$0xff] }
 0x366   :  { %v2458_v7 = vsel %vm2427_vm11, %v2395_v36, %v13285_v27  ;;  %v2722_v49 = vadd.f32 %v7559_v13, %v13286_v2  ;;  %v13288_v9 = vrot.slane %v13287_v44, 4  ;;  %v2958_v41 = vrot.slane %v2903_v11, 6  ;;  %v2726_v1 = vpop.f32.mrf.mxu0  ;;  %v13294_v11 = vld [vmem:[#allocation18_spill] sm:$0xff] }
 0x367   :  { %v2719_v35 = vadd.f32 %v10586_v43, %v2433_v31  ;;  %v2426_v30 = vrot.slane %v13289_v55, 4  ;;  %v3088_v0 = vadd.f32 %v10458_v50, %v3051_v57  ;;  %v3089_v39 = vadd.f32 %v10458_v50, %v3052_v46  ;;  %v7599_v12 = vpop.f32.mrf.mxu1  ;;  %v13295_v44 = vld [vmem:[#allocation26_spill] sm:$0xff] }
 0x368   :  { %v2434_v19 = vsel %vm2427_vm11, %v13288_v9, %v2420_v56  ;;  %v3119_v45 = vmax.f32 %v3087_v59, 0.0  ;;  %v2960_v32 = vrot.slane %v7598_v8, 6  ;;  %v2973_v13 = vsel %vm595_vm0, %v2957_v5, %v2958_v41 }
 0x369   :  { %v2961_v54 = vrot.slane %v7599_v12, 6  ;;  %v3122_v18 = vmax.f32 %v3090_v21, 0.0  ;;  %v3121_v56 = vmax.f32 %v3089_v39, 0.0  ;;  %v3022_v53 = vsel %vm151_vm9, %v2973_v13, 0.0  ;;  %v2906_v16 = vpop.f32.mrf.mxu1 }
 0x36a   :  { %v3120_v43 = vmax.f32 %v3088_v0, 0.0  ;;  %v2714_v4 = vadd.f32 %v2713_v60, %v2434_v19  ;;  %v3054_v61 = vadd.f32 %v3022_v53, %v2711_v17  ;;  %v2959_v33 = vrot.slane %v2906_v16, 6  ;;  %v10701_v17 = vpop.f32.mrf.mxu0 }
 0x36b   :  { %v2970_v10 = vsel %vm595_vm0, %v2960_v32, %v2961_v54  ;;  %v2934_v25 = vrot.slane %v13290_v42, 6  ;;  %v10678_v6 = vpack.c.bf16 %v3122_v18, %v3121_v56  ;;  %v10680_v8 = vpop.f32.mrf.mxu1  ;;  %v2459_v60 = vsel %vm2427_vm11, %v2426_v30, %v2395_v36 }
 0x36c   :  { %v3057_v5 = vadd.f32 %v2970_v10, %v2722_v49  ;;  %v10682_v29 = vpack.c.bf16 %v3120_v43, %v3119_v45  ;;  %v2424_v31 = vrot.slane %v13291_v47, 4  ;;  %v2971_v59 = vsel %vm595_vm0, %v2959_v33, %v2960_v32 }
 0x36d   :  { %v2972_v51 = vsel %vm595_vm0, %v2958_v41, %v2959_v33  ;;  %v13293_v22 = vrot.slane %v13292_v62, 6  ;;  %v3056_v57 = vadd.f32 %v2971_v59, %v2719_v35  ;;  %v2919_v46 = vpop.f32.mrf.mxu1  ;;  %v2618_v36 = vadd.f32 %v13294_v11, %v2458_v7  ;;  %v13296_v35 = vld [vmem:[#allocation25_spill] sm:$0xff] }
 0x36e   :  { %v3094_v23 = vadd.f32 %v10458_v50, %v3057_v5  ;;  %v3055_v21 = vadd.f32 %v2972_v51, %v2714_v4  ;;  %v3091_v2 = vadd.f32 %v10458_v50, %v3054_v61  ;;  %v2962_v49 = vrot.slane %v2919_v46, 6  ;;  %v13298_v4 = vld [vmem:[#allocation16_spill] sm:$0xff]  ;;  %v2729_v61 = vpop.f32.mrf.mxu0 }
 0x36f   :  { %v2996_v27 = vsel %vm595_vm0, %v2934_v25, %v13293_v22  ;;  %v2727_v9 = vadd.f32 %v2726_v1, %v13295_v44  ;;  %v2524_v19 = vsel %vm159_vm15, %v2459_v60, 0.0  ;;  %v3093_v0 = vadd.f32 %v10458_v50, %v3056_v57  ;;  %v10709_v39 = vpop.f32.mrf.mxu1  ;;  %v8063_v44 = vld [vmem:[#allocation2 + $0x110] sm:$0xff]  }
 0x370   :  { %v3092_v41 = vadd.f32 %v10458_v50, %v3055_v21  ;;  %v13297_v7 = vrot.slane %v13296_v35, 4  ;;  %v3031_v45 = vadd.f32 %v2996_v27, %v2618_v36  ;;  %v2969_v32 = vsel %vm595_vm0, %v2961_v54, %v2962_v49  ;;  %v8068_v35 = vld [vmem:[#allocation2 + $0xc8] sm:$0xff]  }
 0x371   :  { %v2965_v13 = vrot.slane %v10709_v39, 6  ;;  %v3126_v18 = vmax.f32 %v3094_v23, 0.0  ;;  %v3125_v56 = vmax.f32 %v3093_v0, 0.0  ;;  %v3058_v53 = vadd.f32 %v2969_v32, %v2727_v9  ;;  %v10720_v16 = vpop.f32.mrf.mxu1  ;;  %v13300_v0 = vld [vmem:[#allocation29_spill] sm:$0xff] }
 0x372   :  { %v2430_v12 = vsel %vm2427_vm11, %v13297_v7, %v2424_v31  ;;  %v3124_v43 = vmax.f32 %v3092_v41, 0.0  ;;  %v2615_v1 = vadd.f32 %v13298_v4, %v2524_v19  ;;  %v2963_v33 = vrot.slane %v10720_v16, 6  ;;  %v13299_v19 = vld [vmem:[#allocation19_spill] sm:$0xff]  ;;  %v8064_v41 = vld [vmem:[#allocation2 + $0x108] sm:$0xff]  }
 0x373   :  { %v2997_v10 = vsel %vm595_vm0, %v2965_v13, %v2934_v25  ;;  %v3123_v42 = vmax.f32 %v3091_v2, 0.0  ;;  %v2730_v54 = vadd.f32 %v2729_v61, %v2430_v12  ;;  %v10728_v5 = vpack.c.bf16 %v3126_v18, %v3125_v56  ;;  %v8065_v7 = vld [vmem:[#allocation2 + $0x100] sm:$0xff]   ;;  %v13303_v16 = vld [vmem:[#allocation45_spill] sm:$0xff] }
 0x374   :  { %v2998_v60 = vsel %vm127_vm1, %v2997_v10, 0.0  ;;  %v3068_v59 = vadd.f32 %v10458_v50, %v3031_v45  ;;  %v2968_v62 = vsel %vm595_vm0, %v2962_v49, %v2963_v33  ;;  %v3095_v25 = vadd.f32 %v10458_v50, %v3058_v53  ;;  %v8067_v49 = vld [vmem:[#allocation2 + $0xd0] sm:$0xff]   ;;  %v8069_v12 = vld [vmem:[#allocation2 + $0xc0] sm:$0xff]  }
 0x375   :  { %v3030_v51 = vadd.f32 %v2998_v60, %v2615_v1  ;;  %v10737_v22 = vpack.c.bf16 %v3124_v43, %v3123_v42  ;;  %v3059_v27 = vadd.f32 %v2968_v62, %v2730_v54  ;;  %v13301_v45 = vld [vmem:[#allocation23_spill] sm:$0xff]  ;;  %v2964_v56 = vrot.slane %v10680_v8, 6  ;;  %v13304_v1 = vld [vmem:[#allocation42_spill] sm:$0xff]  ;;  %v8072_v54 = vld [vmem:[#allocation2 + $0x148] sm:$0xff]  }
 0x376   :  { %v3100_v46 = vmax.f32 %v3068_v59, 0.0  ;;  %v3127_v11 = vmax.f32 %v3095_v25, 0.0  ;;  %v2425_v32 = vrot.slane %v13301_v45, 4  ;;  %v13305_v61 = vld [vmem:[#allocation47_spill] sm:$0xff]  ;;  %v8071_v42 = vld [vmem:[#allocation2 + $0x150] sm:$0xff]  }
 0x377   :  { %v3067_v23 = vadd.f32 %v10458_v50, %v3030_v51  ;;  %v3096_v21 = vadd.f32 %v10458_v50, %v3059_v27  ;;  %v2967_v43 = vsel %vm595_vm0, %v2963_v33, %v2964_v56  ;;  %v2966_v55 = vsel %vm595_vm0, %v2964_v56, %v2965_v13  ;;  %v13306_v10 = vld [vmem:[#allocation39_spill] sm:$0xff]  ;;  %v8075_v56 = vld [vmem:[#allocation2 + $0x190] sm:$0xff]  }
 0x378   :  { %v2429_v18 = vsel %vm2427_vm11, %v2424_v31, %v2425_v32  ;;  %v2428_v53 = vsel %vm2427_vm11, %v2425_v32, %v2426_v30  ;;  %v8070_v33 = vld [vmem:[#allocation2 + $0x158] sm:$0xff]  }
 0x379   :  { %v3099_v57 = vmax.f32 %v3067_v23, 0.0  ;;  %v3128_v36 = vmax.f32 %v3096_v21, 0.0  ;;  %v2735_v4 = vadd.f32 %v10665_v15, %v2429_v18  ;;  %v2738_v30 = vadd.f32 %v10701_v17, %v2428_v53 }
 0x37b   :  { %v10742_v2 = vpack.c.bf16 %v3100_v46, %v3099_v57  ;;  %v10744_v9 = vpack.c.bf16 %v3128_v36, %v3127_v11  ;;  %v3060_v15 = vadd.f32 %v2967_v43, %v2735_v4  ;;  %v3061_v8 = vadd.f32 %v2966_v55, %v2738_v30 }
 0x37d   :  { %7612 = vmatprep.mubr.msk.bf16.mxu0 %vm1111_vm4, %v10742_v2  ;;  %7652 = vmatprep.mubr.msk.bf16.mxu1 %vm1111_vm4, %v10742_v2  ;;  %v3097_v47 = vadd.f32 %v10458_v50, %v3060_v15  ;;  %v3098_v31 = vadd.f32 %v10458_v50, %v3061_v8  ;;  %v13302_v50 = vld [vmem:[#allocation53_spill] sm:$0xff] }
 0x37e   :  { %7613 = vmatmul.mubr.msk.bf16.vlgmr.msra.gmra.mxu0 %vm1111_vm4, %v10496_v38  ;;  %7653 = vmatmul.mubr.msk.bf16.vlgmr.msra.gmra.mxu1 %vm1111_vm4, %v10496_v38 }
 0x37f   :  { %7685 = vmatpush3.bf16.msra.mxu0 %v13299_v19  ;;  %7616 = vmatprep.mubr.msk.bf16.mxu0 %vm1111_vm4, %v10530_v28  ;;  %v3129_v39 = vmax.f32 %v3097_v47, 0.0  ;;  %v3130_v17 = vmax.f32 %v3098_v31, 0.0  ;;  %v8076_v31 = vld [vmem:[#allocation2 + $0x188] sm:$0xff]  }
 0x380   :  { %7656 = vmatprep.mubr.msk.bf16.mxu1 %vm1111_vm4, %v10530_v28  ;;  %7686 = vmatprep.subr.bf16.mxu0 %v8063_v44 }
 0x381   :  { %7725 = vmatpush3.bf16.msra.mxu1 %v13300_v0  ;;  %v3146_v13 = vpack.c.bf16 %v3130_v17, %v3129_v39  ;;  %v8077_v39 = vld [vmem:[#allocation2 + $0x180] sm:$0xff]   ;;  %v10938_v17 = vld [vmem:[#allocation2 + $0x178] sm:$0xff]  }
 0x382   :  { %7726 = vmatprep.subr.bf16.mxu1 %v8067_v49  ;;  %13319 = vst [vmem:[#allocation33_spill] sm:$0xff] %v10938_v17 }
 0x383   :  { %7687 = vmatpush3.bf16.msra.mxu0 %v8063_v44 }
 0x384   :  { %7688 = vmatprep.subr.bf16.mxu0 %v8064_v41 }
 0x385   :  { %7727 = vmatpush3.bf16.msra.mxu1 %v8067_v49 }
 0x386   :  { %7617 = vmatmul.mubr.msk.bf16.gmra.mxu0 %vm1111_vm4, %v10532_v52  ;;  %7657 = vmatmul.mubr.msk.bf16.gmra.mxu1 %vm1111_vm4, %v10532_v52 }
 0x387   :  { %7620 = vmatprep.mubr.msk.bf16.mxu0 %vm1111_vm4, %v10569_v63  ;;  %7660 = vmatprep.mubr.msk.bf16.mxu1 %vm1111_vm4, %v10569_v63 }
 0x388   :  { %7689 = vmatpush3.bf16.msra.mxu0 %v8064_v41  ;;  %7728 = vmatprep.subr.bf16.mxu1 %v8068_v35 }
 0x389   :  { %7690 = vmatprep.subr.bf16.mxu0 %v8065_v7  ;;  %7729 = vmatpush3.bf16.msra.mxu1 %v8068_v35  ;;  %v8073_v35 = vld [vmem:[#allocation2 + $0x140] sm:$0xff]  }
 0x38a   :  { %7730 = vmatprep.subr.bf16.mxu1 %v8069_v12 }
 0x38c   :  { %7691 = vmatpush3.bf16.msra.mxu0 %v8065_v7 }
 0x38d   :  { %7731 = vmatpush3.bf16.msra.mxu1 %v8069_v12  ;;  %7764 = vmatprep.subr.bf16.mxu0 %v8070_v33 }
 0x38e   :  { %7621 = vmatmul.mubr.msk.bf16.gmra.mxu0 %vm1111_vm4, %v10571_v40  ;;  %7661 = vmatmul.mubr.msk.bf16.gmra.mxu1 %vm1111_vm4, %v10571_v40 }
 0x38f   :  { %7624 = vmatprep.mubr.msk.bf16.mxu0 %vm1111_vm4, %v10603_v34  ;;  %7664 = vmatprep.mubr.msk.bf16.mxu1 %vm1111_vm4, %v10603_v34 }
 0x396   :  { %7625 = vmatmul.mubr.msk.bf16.gmra.mxu0 %vm1111_vm4, %v10605_v24  ;;  %7665 = vmatmul.mubr.msk.bf16.gmra.mxu1 %vm1111_vm4, %v10605_v24 }
 0x397   :  { %7628 = vmatprep.mubr.msk.bf16.mxu0 %vm1111_vm4, %v10641_v3  ;;  %7668 = vmatprep.mubr.msk.bf16.mxu1 %vm1111_vm4, %v10641_v3 }
 0x39e   :  { %7629 = vmatmul.mubr.msk.bf16.gmra.mxu0 %vm1111_vm4, %v10639_v37  ;;  %7669 = vmatmul.mubr.msk.bf16.gmra.mxu1 %vm1111_vm4, %v10639_v37 }
 0x39f   :  { %7632 = vmatprep.mubr.msk.bf16.mxu0 %vm1111_vm4, %v10682_v29  ;;  %7672 = vmatprep.mubr.msk.bf16.mxu1 %vm1111_vm4, %v10682_v29 }
 0x3a6   :  { %7633 = vmatmul.mubr.msk.bf16.gmra.mxu0 %vm1111_vm4, %v10678_v6  ;;  %7673 = vmatmul.mubr.msk.bf16.gmra.mxu1 %vm1111_vm4, %v10678_v6 }
 0x3a7   :  { %7636 = vmatprep.mubr.msk.bf16.mxu0 %vm1111_vm4, %v10737_v22  ;;  %7676 = vmatprep.mubr.msk.bf16.mxu1 %vm1111_vm4, %v10737_v22 }
 0x3ae   :  { %7637 = vmatmul.mubr.msk.bf16.gmra.mxu0 %vm1111_vm4, %v10728_v5  ;;  %7677 = vmatmul.mubr.msk.bf16.gmra.mxu1 %vm1111_vm4, %v10728_v5 }
 0x3af   :  { %7640 = vmatprep.mubr.msk.bf16.mxu0 %vm1111_vm4, %v10744_v9  ;;  %7680 = vmatprep.mubr.msk.bf16.mxu1 %vm1111_vm4, %v10744_v9 }
 0x3b6   :  { %7641 = vmatmul.mubr.msk.bf16.gmra.mxu0 %vm1111_vm4, %v3146_v13  ;;  %7681 = vmatmul.mubr.msk.bf16.gmra.mxu1 %vm1111_vm4, %v3146_v13 }
 0x3b7   :  { %7692 = vmatprep.mubr.msk.bf16.mxu0 %vm1111_vm4, %v10742_v2  ;;  %7732 = vmatprep.mubr.msk.bf16.mxu1 %vm1111_vm4, %v13302_v50 }
 0x3be   :  { %7693 = vmatmul.mubr.msk.bf16.vlgmr.msra.gmra.mxu0 %vm1111_vm4, %v10496_v38  ;;  %7733 = vmatmul.mubr.msk.bf16.vlgmr.msra.gmra.mxu1 %vm1111_vm4, %v13303_v16  ;;  %v13307_v38 = vld [vmem:[#allocation44_spill] sm:$0xff] }
 0x3bf   :  { %7696 = vmatprep.mubr.msk.bf16.mxu0 %vm1111_vm4, %v10530_v28  ;;  %7736 = vmatprep.mubr.msk.bf16.mxu1 %vm1111_vm4, %v13304_v1  ;;  %v13308_v28 = vld [vmem:[#allocation50_spill] sm:$0xff] }
 0x3c0   :  { %7765 = vmatpush3.bf16.msra.mxu0 %v8070_v33 }
 0x3c1   :  { %7766 = vmatprep.subr.bf16.mxu0 %v8071_v42 }
 0x3c4   :  { %7767 = vmatpush3.bf16.msra.mxu0 %v8071_v42 }
 0x3c5   :  { %7768 = vmatprep.subr.bf16.mxu0 %v8072_v54 }
 0x3c6   :  { %7697 = vmatmul.mubr.msk.bf16.gmra.mxu0 %vm1111_vm4, %v10532_v52  ;;  %7737 = vmatmul.mubr.msk.bf16.gmra.mxu1 %vm1111_vm4, %v13305_v61  ;;  %v13309_v52 = vld [vmem:[#allocation48_spill] sm:$0xff] }
 0x3c7   :  { %7700 = vmatprep.mubr.msk.bf16.mxu0 %vm1111_vm4, %v10569_v63  ;;  %7740 = vmatprep.mubr.msk.bf16.mxu1 %vm1111_vm4, %v13306_v10  ;;  %v13310_v63 = vld [vmem:[#allocation52_spill] sm:$0xff] }
 0x3c8   :  { %7769 = vmatpush3.bf16.msra.mxu0 %v8072_v54 }
 0x3c9   :  { %7770 = vmatprep.subr.bf16.mxu0 %v8073_v35 }
 0x3cc   :  { %7771 = vmatpush3.bf16.msra.mxu0 %v8073_v35 }
 0x3cd   :  { %7844 = vmatprep.subr.bf16.mxu0 %v10938_v17 }
 0x3ce   :  { %7701 = vmatmul.mubr.msk.bf16.gmra.mxu0 %vm1111_vm4, %v10571_v40  ;;  %7741 = vmatmul.mubr.msk.bf16.gmra.mxu1 %vm1111_vm4, %v13307_v38  ;;  %v13311_v40 = vld [vmem:[#allocation49_spill] sm:$0xff] }
 0x3cf   :  { %7704 = vmatprep.mubr.msk.bf16.mxu0 %vm1111_vm4, %v10603_v34  ;;  %7744 = vmatprep.mubr.msk.bf16.mxu1 %vm1111_vm4, %v13308_v28  ;;  %v13312_v34 = vld [vmem:[#allocation46_spill] sm:$0xff] }
 0x3d6   :  { %7705 = vmatmul.mubr.msk.bf16.gmra.mxu0 %vm1111_vm4, %v10605_v24  ;;  %7745 = vmatmul.mubr.msk.bf16.gmra.mxu1 %vm1111_vm4, %v13309_v52  ;;  %v13313_v24 = vld [vmem:[#allocation51_spill] sm:$0xff] }
 0x3d7   :  { %7708 = vmatprep.mubr.msk.bf16.mxu0 %vm1111_vm4, %v10641_v3  ;;  %7748 = vmatprep.mubr.msk.bf16.mxu1 %vm1111_vm4, %v13310_v63  ;;  %v13314_v3 = vld [vmem:[#allocation54_spill] sm:$0xff] }
 0x3de   :  { %7709 = vmatmul.mubr.msk.bf16.gmra.mxu0 %vm1111_vm4, %v10639_v37  ;;  %7749 = vmatmul.mubr.msk.bf16.gmra.mxu1 %vm1111_vm4, %v13311_v40  ;;  %v13315_v37 = vld [vmem:[#allocation13_spill] sm:$0xff] }
 0x3df   :  { %7712 = vmatprep.mubr.msk.bf16.mxu0 %vm1111_vm4, %v10682_v29  ;;  %7752 = vmatprep.mubr.msk.bf16.mxu1 %vm1111_vm4, %v13312_v34  ;;  %v13316_v29 = vld [vmem:[#allocation32_spill] sm:$0xff] }
 0x3e6   :  { %7713 = vmatmul.mubr.msk.bf16.gmra.mxu0 %vm1111_vm4, %v10678_v6  ;;  %7753 = vmatmul.mubr.msk.bf16.gmra.mxu1 %vm1111_vm4, %v13313_v24  ;;  %v13317_v6 = vld [vmem:[#allocation8_spill] sm:$0xff] }
 0x3e7   :  { %7716 = vmatprep.mubr.msk.bf16.mxu0 %vm1111_vm4, %v10737_v22  ;;  %7756 = vmatprep.mubr.msk.bf16.mxu1 %vm1111_vm4, %v13314_v3 }
 0x3ee   :  { %7717 = vmatmul.mubr.msk.bf16.gmra.mxu0 %vm1111_vm4, %v10728_v5  ;;  %7757 = vmatmul.mubr.msk.bf16.gmra.mxu1 %vm1111_vm4, %v13315_v37 }
 0x3ef   :  { %7720 = vmatprep.mubr.msk.bf16.mxu0 %vm1111_vm4, %v10744_v9  ;;  %7760 = vmatprep.mubr.msk.bf16.mxu1 %vm1111_vm4, %v13316_v29  ;;  %v8074_v9 = vld [vmem:[#allocation2 + $0x198] sm:$0xff]  }
 0x3f0   :  { %7804 = vmatprep.subr.bf16.mxu1 %v8074_v9 }
 0x3f1   :  { %7805 = vmatpush3.bf16.msra.mxu1 %v8074_v9 }
 0x3f2   :  { %7806 = vmatprep.subr.bf16.mxu1 %v8075_v56 }
 0x3f5   :  { %7807 = vmatpush3.bf16.msra.mxu1 %v8075_v56 }
 0x3f6   :  { %7721 = vmatmul.mubr.msk.bf16.gmra.mxu0 %vm1111_vm4, %v3146_v13  ;;  %7761 = vmatmul.mubr.msk.bf16.gmra.mxu1 %vm1111_vm4, %v13317_v6 }
 0x3f7   :  { %7808 = vmatprep.subr.bf16.mxu1 %v8076_v31 }
 0x3f9   :  { %7809 = vmatpush3.bf16.msra.mxu1 %v8076_v31 }
 0x3fa   :  { %7810 = vmatprep.subr.bf16.mxu1 %v8077_v39 }
 0x3fd   :  { %7811 = vmatpush3.bf16.msra.mxu1 %v8077_v39 }
 0x43e   :  { %v7614_v5 = vpop.f32.mrf.mxu0  ;;  %v7654_v60 = vpop.f32.mrf.mxu1 }
 0x43f   :  { %v3398_v25 = vrot.slane %v7614_v5, 4 }
 0x440   :  { %v10895_v59 = vpop.f32.mrf.mxu0  ;;  %v10897_v51 = vpop.f32.mrf.mxu1 }
 0x442   :  { %v7615_v62 = vpop.f32.mrf.mxu0  ;;  %v7655_v22 = vpop.f32.mrf.mxu1 }
 0x443   :  { %v3399_v27 = vrot.slane %v7615_v62, 4 }
 0x444   :  { %v10899_v23 = vpop.f32.mrf.mxu0  ;;  %v10901_v21 = vpop.f32.mrf.mxu1 }
 0x445   :  { %v3456_v57 = vsel %vm2427_vm11, %v3398_v25, %v3399_v27  ;;  %v12909_v46 = vrot.slane %v10899_v23, 4 }
 0x446   :  { %v10906_v11 = vadd.f32 %v7655_v22, %v3456_v57  ;;  %v7618_v36 = vpop.f32.mrf.mxu0  ;;  %v7658_v2 = vpop.f32.mrf.mxu1 }
 0x447   :  { %v3457_v44 = vsel %vm2427_vm11, %v12909_v46, %v3398_v25  ;;  %v3402_v45 = vrot.slane %v7618_v36, 4 }
 0x448   :  { %v10912_v49 = vadd.f32 %v7654_v60, %v3457_v44  ;;  %v10914_v19 = vpop.f32.mrf.mxu0  ;;  %v10916_v41 = vpop.f32.mrf.mxu1 }
 0x449   :  { %v12906_v0 = vrot.slane %v10914_v19, 4 }
 0x44a   :  { %v7619_v7 = vpop.f32.mrf.mxu0  ;;  %v7659_v12 = vpop.f32.mrf.mxu1 }
 0x44b   :  { %v10923_v32 = vsel %vm2427_vm11, %v3399_v27, %v12906_v0  ;;  %v3403_v18 = vrot.slane %v7619_v7, 4 }
 0x44c   :  { %v10925_v53 = vpop.f32.mrf.mxu0  ;;  %v10927_v43 = vpop.f32.mrf.mxu1 }
 0x44d   :  { %v3452_v4 = vsel %vm2427_vm11, %v3402_v45, %v3403_v18  ;;  %v12907_v55 = vrot.slane %v10925_v53, 4 }
 0x44e   :  { %v10932_v30 = vadd.f32 %v7659_v12, %v3452_v4  ;;  %v7622_v15 = vpop.f32.mrf.mxu0  ;;  %v7662_v8 = vpop.f32.mrf.mxu1 }
 0x44f   :  { %v3453_v47 = vsel %vm2427_vm11, %v12907_v55, %v3402_v45  ;;  %v3406_v38 = vrot.slane %v7622_v15, 4 }
 0x450   :  { %13318 = vst [vmem:[#allocation30_spill] sm:$0xff] %v10932_v30  ;;  %v10940_v13 = vadd.f32 %v7658_v2, %v3453_v47  ;;  %v10942_v50 = vpop.f32.mrf.mxu0  ;;  %v10944_v16 = vpop.f32.mrf.mxu1 }
 0x451   :  { %v12904_v1 = vrot.slane %v10942_v50, 4 }
 0x452   :  { %13320 = vst [vmem:[#allocation36_spill] sm:$0xff] %v10940_v13  ;;  %v7623_v61 = vpop.f32.mrf.mxu0  ;;  %v7663_v10 = vpop.f32.mrf.mxu1 }
 0x453   :  { %v10952_v28 = vsel %vm2427_vm11, %v3403_v18, %v12904_v1  ;;  %v3407_v52 = vrot.slane %v7623_v61, 4 }
 0x454   :  { %v10954_v63 = vpop.f32.mrf.mxu0  ;;  %v10956_v40 = vpop.f32.mrf.mxu1 }
 0x455   :  { %v3448_v34 = vsel %vm2427_vm11, %v3406_v38, %v3407_v52  ;;  %v12905_v24 = vrot.slane %v10954_v63, 4 }
 0x456   :  { %v10961_v3 = vadd.f32 %v7663_v10, %v3448_v34  ;;  %v7626_v37 = vpop.f32.mrf.mxu0  ;;  %v7666_v29 = vpop.f32.mrf.mxu1 }
 0x457   :  { %v3449_v6 = vsel %vm2427_vm11, %v12905_v24, %v3406_v38  ;;  %v3410_v22 = vrot.slane %v7626_v37, 4 }
 0x458   :  { %13321 = vst [vmem:[#allocation37_spill] sm:$0xff] %v10961_v3  ;;  %v10967_v33 = vadd.f32 %v7662_v8, %v3449_v6  ;;  %v10969_v42 = vpop.f32.mrf.mxu0  ;;  %v10971_v54 = vpop.f32.mrf.mxu1 }
 0x459   :  { %v12902_v5 = vrot.slane %v10969_v42, 4 }
 0x45a   :  { %13322 = vst [vmem:[#allocation38_spill] sm:$0xff] %v10967_v33  ;;  %v7627_v60 = vpop.f32.mrf.mxu0  ;;  %v7667_v62 = vpop.f32.mrf.mxu1 }
 0x45b   :  { %v10978_v25 = vsel %vm2427_vm11, %v3407_v52, %v12902_v5  ;;  %v3411_v27 = vrot.slane %v7627_v60, 4 }
 0x45c   :  { %v10980_v57 = vpop.f32.mrf.mxu0  ;;  %v10982_v36 = vpop.f32.mrf.mxu1 }
 0x45d   :  { %v3444_v2 = vsel %vm2427_vm11, %v3410_v22, %v3411_v27  ;;  %v12903_v44 = vrot.slane %v10980_v57, 4 }
 0x45e   :  { %v10987_v9 = vadd.f32 %v7667_v62, %v3444_v2  ;;  %v7630_v35 = vpop.f32.mrf.mxu0  ;;  %v7670_v7 = vpop.f32.mrf.mxu1 }
 0x45f   :  { %v3445_v12 = vsel %vm2427_vm11, %v12903_v44, %v3410_v22  ;;  %v3414_v47 = vrot.slane %v7630_v35, 4 }
 0x460   :  { %13323 = vst [vmem:[#allocation41_spill] sm:$0xff] %v10987_v9  ;;  %v10993_v45 = vadd.f32 %v7666_v29, %v3445_v12  ;;  %v10995_v18 = vpop.f32.mrf.mxu0  ;;  %v10997_v56 = vpop.f32.mrf.mxu1 }
 0x461   :  { %v12899_v4 = vrot.slane %v10995_v18, 4 }
 0x462   :  { %13324 = vst [vmem:[#allocation40_spill] sm:$0xff] %v10993_v45  ;;  %v7631_v15 = vpop.f32.mrf.mxu0  ;;  %v7671_v8 = vpop.f32.mrf.mxu1 }
 0x463   :  { %v11004_v31 = vsel %vm2427_vm11, %v3411_v27, %v12899_v4  ;;  %v3415_v39 = vrot.slane %v7631_v15, 4 }
 0x464   :  { %v11006_v61 = vpop.f32.mrf.mxu0  ;;  %v11008_v10 = vpop.f32.mrf.mxu1 }
 0x465   :  { %v3440_v38 = vsel %vm2427_vm11, %v3414_v47, %v3415_v39  ;;  %v12900_v52 = vrot.slane %v11006_v61, 4 }
 0x466   :  { %v11013_v34 = vadd.f32 %v7671_v8, %v3440_v38  ;;  %v7634_v37 = vpop.f32.mrf.mxu0  ;;  %v7674_v29 = vpop.f32.mrf.mxu1 }
 0x467   :  { %v3441_v6 = vsel %vm2427_vm11, %v12900_v52, %v3414_v47  ;;  %v3418_v12 = vrot.slane %v7634_v37, 4 }
 0x468   :  { %13325 = vst [vmem:[#allocation11_spill] sm:$0xff] %v11013_v34  ;;  %v11019_v60 = vadd.f32 %v7670_v7, %v3441_v6  ;;  %v11021_v62 = vpop.f32.mrf.mxu0  ;;  %v11023_v22 = vpop.f32.mrf.mxu1 }
 0x469   :  { %v12901_v27 = vrot.slane %v11021_v62, 4 }
 0x46a   :  { %13326 = vst [vmem:[#allocation9_spill] sm:$0xff] %v11019_v60  ;;  %v7635_v2 = vpop.f32.mrf.mxu0  ;;  %v7675_v35 = vpop.f32.mrf.mxu1 }
 0x46b   :  { %v11030_v15 = vsel %vm2427_vm11, %v3415_v39, %v12901_v27  ;;  %v3419_v8 = vrot.slane %v7635_v2, 4 }
 0x46c   :  { %v11032_v38 = vpop.f32.mrf.mxu0  ;;  %v11034_v7 = vpop.f32.mrf.mxu1 }
 0x46d   :  { %v3436_v47 = vsel %vm2427_vm11, %v3418_v12, %v3419_v8  ;;  %v12908_v6 = vrot.slane %v11032_v38, 4 }
 0x46e   :  { %v11039_v4 = vadd.f32 %v7675_v35, %v3436_v47  ;;  %v7638_v52 = vpop.f32.mrf.mxu0  ;;  %v7678_v37 = vpop.f32.mrf.mxu1 }
 0x46f   :  { %v3437_v39 = vsel %vm2427_vm11, %v12908_v6, %v3418_v12  ;;  %v3422_v0 = vrot.slane %v7638_v52, 4 }
 0x470   :  { %13327 = vst [vmem:[#allocation43_spill] sm:$0xff] %v11039_v4  ;;  %v11045_v27 = vadd.f32 %v7674_v29, %v3437_v39  ;;  %v11047_v2 = vpop.f32.mrf.mxu0  ;;  %v11049_v5 = vpop.f32.mrf.mxu1 }
 0x471   :  { %v12910_v44 = vrot.slane %v11047_v2, 4 }
 0x472   :  { %13328 = vst [vmem:[#allocation35_spill] sm:$0xff] %v11045_v27  ;;  %v7639_v1 = vpop.f32.mrf.mxu0  ;;  %v7679_v24 = vpop.f32.mrf.mxu1 }
 0x473   :  { %v11056_v35 = vsel %vm2427_vm11, %v3419_v8, %v12910_v44  ;;  %v3423_v47 = vrot.slane %v7639_v1, 4 }
 0x474   :  { %v11058_v55 = vpop.f32.mrf.mxu0  ;;  %v11060_v29 = vpop.f32.mrf.mxu1 }
 0x475   :  { %v3432_v12 = vsel %vm2427_vm11, %v3422_v0, %v3423_v47  ;;  %v12911_v39 = vrot.slane %v11058_v55, 4 }
 0x476   :  { %v11065_v6 = vadd.f32 %v7679_v24, %v3432_v12  ;;  %v7642_v46 = vpop.f32.mrf.mxu0  ;;  %v7682_v52 = vpop.f32.mrf.mxu1  ;;  %v3396_v24 = vrot.slane %v10895_v59, 4 }
 0x477   :  { %v3433_v8 = vsel %vm2427_vm11, %v12911_v39, %v3422_v0  ;;  %v3426_v12 = vrot.slane %v7642_v46, 4 }
 0x478   :  { %13329 = vst [vmem:[#allocation24_spill] sm:$0xff] %v11065_v6  ;;  %v11071_v44 = vadd.f32 %v7678_v37, %v3433_v8  ;;  %v11073_v1 = vpop.f32.mrf.mxu0  ;;  %v11075_v4 = vpop.f32.mrf.mxu1 }
 0x479   :  { %v12913_v27 = vrot.slane %v11073_v1, 4 }
 0x47a   :  { %13330 = vst [vmem:[#allocation20_spill] sm:$0xff] %v11071_v44  ;;  %v7643_v60 = vpop.f32.mrf.mxu0  ;;  %v7683_v34 = vpop.f32.mrf.mxu1 }
 0x47b   :  { %v11083_v6 = vsel %vm2427_vm11, %v3423_v47, %v12913_v27  ;;  %v3427_v0 = vrot.slane %v7643_v60, 4 }
 0x47c   :  { %v11085_v37 = vpop.f32.mrf.mxu0  ;;  %v11087_v8 = vpop.f32.mrf.mxu1 }
 0x47d   :  { %13331 = vst [vmem:[#allocation10_spill] sm:$0xff] %v11087_v8  ;;  %v3459_v39 = vsel %vm2427_vm11, %v3427_v0, %v3396_v24  ;;  %v3428_v44 = vsel %vm2427_vm11, %v3426_v12, %v3427_v0  ;;  %v12914_v59 = vrot.slane %v11085_v37, 4 }
 0x47e   :  { %v3460_v46 = vsel %vm159_vm15, %v3459_v39, 0.0  ;;  %v11096_v17 = vadd.f32 %v7683_v34, %v3428_v44  ;;  %v7694_v47 = vpop.f32.mrf.mxu0  ;;  %v11098_v27 = vpop.f32.mrf.mxu1 }
 0x47f   :  { %13333 = vst [vmem:[#allocation21_spill] sm:$0xff] %v11098_v27  ;;  %v11101_v60 = vadd.f32 %v10897_v51, %v3460_v46  ;;  %v3429_v45 = vsel %vm2427_vm11, %v12914_v59, %v3426_v12 }
 0x480   :  { %13332 = vst [vmem:[#allocation22_spill] sm:$0xff] %v11096_v17  ;;  %v11107_v9 = vadd.f32 %v7682_v52, %v3429_v45  ;;  %v11109_v0 = vpop.f32.mrf.mxu0  ;;  %v11111_v33 = vpop.f32.mrf.mxu1 }
 0x481   :  { %13334 = vst [vmem:[#allocation27_spill] sm:$0xff] %v11101_v60  ;;  %13336 = vst [vmem:[#allocation28_spill] sm:$0xff] %v11111_v33 }
 0x482   :  { %13335 = vst [vmem:[#allocation34_spill] sm:$0xff] %v11107_v9  ;;  %v7695_v39 = vpop.f32.mrf.mxu0  ;;  %v11113_v44 = vpop.f32.mrf.mxu1 }
 0x483   :  { %13337 = vst [vmem:[#allocation31_spill] sm:$0xff] %v11113_v44 }
 0x484   :  { %v3746_v34 = vpop.f32.mrf.mxu0  ;;  %v11115_v17 = vpop.f32.mrf.mxu1 }
 0x485   :  { %13338 = vst [vmem:[#allocation18_spill] sm:$0xff] %v11115_v17 }
 0x486   :  { %v11117_v3 = vpop.f32.mrf.mxu0  ;;  %v11119_v51 = vpop.f32.mrf.mxu1 }
 0x487   :  { %13339 = vst [vmem:[#allocation26_spill] sm:$0xff] %v11119_v51 }
 0x488   :  { %v11121_v46 = vpop.f32.mrf.mxu0  ;;  %v11123_v60 = vpop.f32.mrf.mxu1 }
 0x489   :  { %13340 = vst [vmem:[#allocation25_spill] sm:$0xff] %v11123_v60 }
 0x48a   :  { %v11125_v45 = vpop.f32.mrf.mxu0  ;;  %v11127_v52 = vpop.f32.mrf.mxu1 }
 0x48b   :  { %13341 = vst [vmem:[#allocation16_spill] sm:$0xff] %v11127_v52 }
 0x48c   :  { %v11129_v12 = vpop.f32.mrf.mxu0  ;;  %v11133_v9 = vpop.f32.mrf.mxu1 }
 0x48d   :  { %13343 = vst [vmem:[#allocation29_spill] sm:$0xff] %v11133_v9 }
 0x48e   :  { %v11131_v59 = vpop.f32.mrf.mxu0  ;;  %v11139_v30 = vpop.f32.mrf.mxu1 }
 0x48f   :  { %13342 = vst [vmem:[#allocation19_spill] sm:$0xff] %v11131_v59  ;;  %13345 = vst [vmem:[#allocation53_spill] sm:$0xff] %v11139_v30 }
 0x490   :  { %v11135_v26 = vpop.f32.mrf.mxu0  ;;  %v11145_v60 = vpop.f32.mrf.mxu1 }
 0x491   :  { %13348 = vst [vmem:[#allocation47_spill] sm:$0xff] %v11145_v60 }
 0x492   :  { %v11137_v13 = vpop.f32.mrf.mxu0  ;;  %v11151_v33 = vpop.f32.mrf.mxu1 }
 0x493   :  { %13344 = vst [vmem:[#allocation23_spill] sm:$0xff] %v11137_v13  ;;  %13351 = vst [vmem:[#allocation50_spill] sm:$0xff] %v11151_v33 }
 0x494   :  { %v11141_v51 = vpop.f32.mrf.mxu0  ;;  %v11157_v27 = vpop.f32.mrf.mxu1 }
 0x495   :  { %13346 = vst [vmem:[#allocation45_spill] sm:$0xff] %v11141_v51  ;;  %13354 = vst [vmem:[#allocation49_spill] sm:$0xff] %v11157_v27  ;;  %v13360_v27 = vrot.slane %v10899_v23, 4 }
 0x496   :  { %v11143_v17 = vpop.f32.mrf.mxu0  ;;  %v11163_v51 = vpop.f32.mrf.mxu1 }
 0x497   :  { %13347 = vst [vmem:[#allocation42_spill] sm:$0xff] %v11143_v17  ;;  %13356 = vst [vmem:[#allocation51_spill] sm:$0xff] %v11163_v51 }
 0x498   :  { %v11147_v44 = vpop.f32.mrf.mxu0  ;;  %v11169_v8 = vpop.f32.mrf.mxu1 }
 0x499   :  { %13349 = vst [vmem:[#allocation39_spill] sm:$0xff] %v11147_v44  ;;  %v3873_v44 = vrot.slane %v7695_v39, 6 }
 0x49a   :  { %v11149_v52 = vpop.f32.mrf.mxu0  ;;  %v11183_v39 = vpop.f32.mrf.mxu1 }
 0x49b   :  { %13350 = vst [vmem:[#allocation44_spill] sm:$0xff] %v11149_v52  ;;  %v3871_v52 = vrot.slane %v3746_v34, 6  ;;  %13361 = vst [vmem:[#allocation8_spill] sm:$0xff] %v11183_v39  ;;  %v13366_v39 = vrot.slane %v10942_v50, 4 }
 0x49c   :  { %v11153_v59 = vpop.f32.mrf.mxu0 }
 0x49d   :  { %13352 = vst [vmem:[#allocation48_spill] sm:$0xff] %v11153_v59  ;;  %v3872_v59 = vrot.slane %v7694_v47, 6  ;;  %v13364_v47 = vrot.slane %v10914_v19, 4 }
 0x49e   :  { %v11155_v9 = vpop.f32.mrf.mxu0 }
 0x49f   :  { %13353 = vst [vmem:[#allocation52_spill] sm:$0xff] %v11155_v9  ;;  %v3930_v51 = vsel %vm595_vm0, %v3872_v59, %v3873_v44 }
 0x4a0   :  { %v11159_v13 = vpop.f32.mrf.mxu0 }
 0x4a2   :  { %v11161_v30 = vpop.f32.mrf.mxu0 }
 0x4a3   :  { %13355 = vst [vmem:[#allocation46_spill] sm:$0xff] %v11161_v30  ;;  %v3458_v30 = vsel %vm2427_vm11, %v3396_v24, %v13360_v27  ;;  %v3468_v27 = vsel %vm167_vm12, %v10952_v28, 0.0  ;;  %v3870_v24 = vrot.slane %v11109_v0, 6 }
 0x4a4   :  { %v11165_v17 = vpop.f32.mrf.mxu0  ;;  %v3554_v19 = vadd.f32 %v10901_v21, %v3458_v30  ;;  %v13368_v21 = vrot.slane %v10969_v42, 4  ;;  %v11228_v30 = vld [vmem:[%s12789_s2 + $0xa] ss:$0 sm:$0xff]  ;;  %v3875_v42 = vrot.slane %v11129_v12, 6 }
 0x4a5   :  { %v3932_v28 = vsel %vm595_vm0, %v3870_v24, %v3871_v52 }
 0x4a6   :  { %v11167_v60 = vpop.f32.mrf.mxu0 }
 0x4a7   :  { %13357 = vst [vmem:[#allocation54_spill] sm:$0xff] %v11167_v60  ;;  %v3931_v60 = vsel %vm595_vm0, %v3871_v52, %v3872_v59  ;;  %v13365_v59 = vrot.slane %v10954_v63, 4  ;;  %v3567_v63 = vadd.f32 %v10916_v41, %v10923_v32  ;;  %v13371_v52 = vrot.slane %v11032_v38, 4 }
 0x4a8   :  { %v11171_v33 = vpop.f32.mrf.mxu0 }
 0x4a9   :  { %13358 = vst [vmem:[#allocation13_spill] sm:$0xff] %v11171_v33  ;;  %v13363_v33 = vrot.slane %v10925_v53, 4  ;;  %v3450_v53 = vsel %vm2427_vm11, %v13366_v39, %v13365_v59  ;;  %v11217_v39 = vadd.f32 %v10944_v16, %v3468_v27  ;;  %v13374_v27 = vrot.slane %v11047_v2, 4 }
 0x4aa   :  { %v11173_v9 = vpop.f32.mrf.mxu0  ;;  %v11235_v32 = vadd.f32 %v10956_v40, %v3450_v53  ;;  %v3877_v53 = vrot.slane %v11125_v45, 6  ;;  %v13375_v45 = vrot.slane %v11085_v37, 4 }
 0x4ab   :  { %13359 = vst [vmem:[#allocation32_spill] sm:$0xff] %v11173_v9  ;;  %v3454_v23 = vsel %vm2427_vm11, %v13364_v47, %v13363_v33  ;;  %v3874_v9 = vrot.slane %v11121_v46, 6  ;;  %v3969_v33 = vadd.f32 %v3930_v51, %v10906_v11  ;;  %v3968_v46 = vadd.f32 %v3931_v60, %v10912_v49  ;;  %v11230_v49 = vpop.f32.mrf.mxu1 }
 0x4ac   :  { %v11185_v34 = vpop.f32.mrf.mxu0  ;;  %v3570_v50 = vadd.f32 %v10927_v43, %v3454_v23  ;;  %v13367_v47 = vrot.slane %v10980_v57, 4  ;;  %v3476_v43 = vsel %vm175_vm13, %v11004_v31, 0.0  ;;  %v11245_v57 = vadd.f32 %v10971_v54, %v10978_v25 }
 0x4ad   :  { %13362 = vst [vmem:[#allocation55_spill] sm:$0xff] %v11185_v34  ;;  %v3929_v16 = vsel %vm595_vm0, %v3873_v44, %v3874_v9  ;;  %v13369_v60 = vrot.slane %v11006_v61, 4  ;;  %v13370_v51 = vrot.slane %v10995_v18, 4  ;;  %v13372_v31 = vrot.slane %v11021_v62, 4 }
 0x4ae   :  { %v11204_v34 = vpop.f32.mrf.mxu0  ;;  %v3446_v11 = vsel %vm2427_vm11, %v13368_v21, %v13367_v47  ;;  %v3967_v23 = vadd.f32 %v3932_v28, %v3554_v19  ;;  %v3484_v25 = vsel %vm183_vm14, %v11056_v35, 0.0  ;;  %v4006_v18 = vadd.f32 %v11228_v30, %v3969_v33  ;;  %v11279_v19 = vpop.f32.mrf.mxu1 }
 0x4af   :  { %v3442_v40 = vsel %vm2427_vm11, %v13370_v51, %v13369_v60  ;;  %v3438_v44 = vsel %vm2427_vm11, %v13372_v31, %v13371_v52  ;;  %v11262_v54 = vadd.f32 %v10982_v36, %v3446_v11  ;;  %v4005_v61 = vadd.f32 %v11228_v30, %v3968_v46  ;;  %v13379_v51 = vld [vmem:[#allocation28_spill] sm:$0xff]  ;;  %v13380_v52 = vld [vmem:[#allocation31_spill] sm:$0xff] }
 0x4b0   :  { %v11232_v41 = vpop.f32.mrf.mxu0  ;;  %v11270_v38 = vadd.f32 %v10997_v56, %v3476_v43  ;;  %v13373_v62 = vrot.slane %v11058_v55, 4  ;;  %v3970_v36 = vadd.f32 %v3929_v16, %v3567_v63  ;;  %v11284_v33 = vadd.f32 %v11008_v10, %v3442_v40 }
 0x4b1   :  { %v11288_v56 = vadd.f32 %v11023_v22, %v11030_v15  ;;  %v11291_v55 = vadd.f32 %v11034_v7, %v3438_v44  ;;  %v3928_v2 = vsel %vm595_vm0, %v3874_v9, %v3875_v42  ;;  %v11296_v28 = vadd.f32 %v11049_v5, %v3484_v25  ;;  %v11307_v22 = vld [vmem:[%s12789_s2 + $0xb] ss:$0 sm:$0xff] }
 0x4b2   :  { %v11259_v12 = vpop.f32.mrf.mxu0  ;;  %v3434_v59 = vsel %vm2427_vm11, %v13374_v27, %v13373_v62  ;;  %v13376_v46 = vrot.slane %v11073_v1, 4  ;;  %v4004_v15 = vadd.f32 %v11228_v30, %v3967_v23  ;;  %v3876_v7 = vrot.slane %v11117_v3, 6  ;;  %v11324_v3 = vpop.f32.mrf.mxu1  ;;  %v13382_v23 = vld [vmem:[#allocation26_spill] sm:$0xff] }
 0x4b3   :  { %v11314_v5 = vadd.f32 %v11060_v29, %v3434_v59  ;;  %v11318_v1 = vadd.f32 %v11075_v4, %v11083_v6  ;;  %v4038_v37 = vmax.f32 %v4006_v18, 0.0  ;;  %v4037_v63 = vmax.f32 %v4005_v61, 0.0  ;;  %v13377_v29 = vld [vmem:[#allocation10_spill] sm:$0xff]  ;;  %v13378_v4 = vld [vmem:[#allocation21_spill] sm:$0xff] }
 0x4b4   :  { %v11281_v35 = vpop.f32.mrf.mxu0  ;;  %v3430_v10 = vsel %vm2427_vm11, %v13376_v46, %v13375_v45  ;;  %v4007_v47 = vadd.f32 %v11228_v30, %v3970_v36  ;;  %v3926_v21 = vsel %vm595_vm0, %v3876_v7, %v3877_v53  ;;  %v3971_v11 = vadd.f32 %v3928_v2, %v3570_v50  ;;  %v13381_v50 = vld [vmem:[#allocation18_spill] sm:$0xff]  ;;  %v13383_v18 = vld [vmem:[#allocation45_spill] sm:$0xff] }
 0x4b5   :  { %v3878_v43 = vrot.slane %v11135_v26, 6  ;;  %v11329_v60 = vadd.f32 %v13377_v29, %v3430_v10  ;;  %v4147_v6 = vadd.f32 %v13378_v4, %v11307_v22  ;;  %v4139_v40 = vadd.f32 %v11307_v22, %v13379_v51  ;;  %v13386_v59 = vld [vmem:[#allocation25_spill] sm:$0xff]  ;;  %v13387_v2 = vld [vmem:[#allocation30_spill] sm:$0xff]  ;;  %v11358_v51 = vpop.f32.mrf.mxu1 }
 0x4b6   :  { %v11311_v9 = vpop.f32.mrf.mxu0  ;;  %v4150_v31 = vadd.f32 %v13380_v52, %v11307_v22  ;;  %v4036_v44 = vmax.f32 %v4004_v15, 0.0  ;;  %v4142_v26 = vadd.f32 %v11307_v22, %v13381_v50  ;;  %v11341_v25 = vadd.f32 %v13382_v23, %v11307_v22  ;;  %v13390_v52 = vld [vmem:[#allocation29_spill] sm:$0xff] }
 0x4b7   :  { %v3879_v61 = vrot.slane %v13383_v18, 6  ;;  %v11346_v27 = vadd.f32 %v4147_v6, %v4037_v63  ;;  %v4155_v36 = vadd.f32 %v11307_v22, %v13386_v59  ;;  %v3973_v45 = vadd.f32 %v3926_v21, %v13387_v2  ;;  %v13389_v63 = vld [vmem:[#allocation16_spill] sm:$0xff]  ;;  %v13391_v21 = vld [vmem:[#allocation23_spill] sm:$0xff] }
 0x4b8   :  { %v11326_v16 = vpop.f32.mrf.mxu0  ;;  %v3927_v46 = vsel %vm595_vm0, %v3875_v42, %v3876_v7  ;;  %v11353_v10 = vadd.f32 %v4150_v31, %v4038_v37  ;;  %v4039_v15 = vmax.f32 %v4007_v47, 0.0  ;;  %v4008_v29 = vadd.f32 %v11228_v30, %v3971_v11  ;;  %v13393_v37 = vld [vmem:[#allocation36_spill] sm:$0xff]  ;;  %v13394_v11 = vld [vmem:[#allocation19_spill] sm:$0xff] }
 0x4b9   :  { %13385 = vst [vmem:[#allocation21_spill] sm:$0xff] %v11346_v27  ;;  %v3925_v4 = vsel %vm595_vm0, %v3877_v53, %v3878_v43  ;;  %v4166_v6 = vadd.f32 %v13389_v63, %v11307_v22  ;;  %v4158_v50 = vadd.f32 %v11307_v22, %v13390_v52  ;;  %v3881_v23 = vrot.slane %v13391_v21, 6  ;;  %v13397_v21 = vld [vmem:[#allocation48_spill] sm:$0xff] }
 0x4ba   :  { %v11344_v62 = vpop.f32.mrf.mxu0  ;;  %13388 = vst [vmem:[#allocation28_spill] sm:$0xff] %v11353_v10  ;;  %v11366_v7 = vadd.f32 %v4142_v26, %v4036_v44  ;;  %v3972_v47 = vadd.f32 %v3927_v46, %v13393_v37  ;;  %v3880_v31 = vrot.slane %v13394_v11, 6  ;;  %v3924_v53 = vsel %vm595_vm0, %v3878_v43, %v3879_v61  ;;  %v11385_v43 = vpop.f32.mrf.mxu1  ;;  %v13398_v11 = vld [vmem:[#allocation27_spill] sm:$0xff] }
 0x4bb   :  { %13384 = vst [vmem:[#allocation10_spill] sm:$0xff] %v11344_v62  ;;  %v12916_v42 = vrot.slane %v11344_v62, 6  ;;  %v4010_v59 = vadd.f32 %v11228_v30, %v3973_v45  ;;  %v3942_v2 = vsel %vm135_vm5, %v3925_v4, 0.0  ;;  %v11383_v46 = vadd.f32 %v4155_v36, %v4039_v15 }
 0x4bc   :  { %13392 = vst [vmem:[#allocation31_spill] sm:$0xff] %v11366_v7  ;;  %v4040_v63 = vmax.f32 %v4008_v29, 0.0  ;;  %v3922_v4 = vsel %vm595_vm0, %v3880_v31, %v3881_v23  ;;  %v3975_v0 = vadd.f32 %v3924_v53, %v11235_v32  ;;  %v3883_v37 = vrot.slane %v13397_v21, 6  ;;  %v13399_v29 = vld [vmem:[#allocation39_spill] sm:$0xff]  ;;  %v13402_v32 = vld [vmem:[#allocation53_spill] sm:$0xff] }
 0x4bd   :  { %v3933_v44 = vsel %vm595_vm0, %v12916_v42, %v3870_v24  ;;  %13395 = vst [vmem:[#allocation18_spill] sm:$0xff] %v11383_v46  ;;  %v4009_v36 = vadd.f32 %v11228_v30, %v3972_v47  ;;  %v3974_v15 = vadd.f32 %v3942_v2, %v11217_v39  ;;  %v3882_v42 = vrot.slane %v13399_v29, 6  ;;  %v13403_v47 = vld [vmem:[#allocation47_spill] sm:$0xff]  ;;  %v13404_v2 = vld [vmem:[#allocation37_spill] sm:$0xff]  ;;  %v11415_v24 = vpop.f32.mrf.mxu1 }
 0x4be   :  { %v3934_v45 = vsel %vm127_vm1, %v3933_v44, 0.0  ;;  %v13400_v26 = vmax.f32 %v11346_v27, 0.0  ;;  %v13401_v44 = vmax.f32 %v11353_v10, 0.0  ;;  %v4042_v52 = vmax.f32 %v4010_v59, 0.0 }
 0x4bf   :  { %v3966_v18 = vadd.f32 %v3934_v45, %v13398_v11  ;;  %v11406_v53 = vadd.f32 %v13402_v32, %v11307_v22  ;;  %v4171_v39 = vadd.f32 %v11307_v22, %v13403_v47  ;;  %v3977_v11 = vadd.f32 %v3922_v4, %v13404_v2  ;;  %v13406_v47 = vld [vmem:[#allocation50_spill] sm:$0xff] }
 0x4c0   :  { %v11402_v14 = vpack.c.bf16 %v13401_v44, %v13400_v26  ;;  %v3923_v29 = vsel %vm595_vm0, %v3879_v61, %v3880_v31  ;;  %v11417_v26 = vadd.f32 %v4158_v50, %v4040_v63  ;;  %v4012_v59 = vadd.f32 %v11228_v30, %v3975_v0  ;;  %v13408_v31 = vld [vmem:[#allocation38_spill] sm:$0xff]  ;;  %v13409_v63 = vld [vmem:[#allocation44_spill] sm:$0xff] }
 0x4c1   :  { %v4003_v45 = vadd.f32 %v11228_v30, %v3966_v18  ;;  %v3920_v44 = vsel %vm595_vm0, %v3882_v42, %v3883_v37  ;;  %v4041_v32 = vmax.f32 %v4009_v36, 0.0  ;;  %v4011_v21 = vadd.f32 %v11228_v30, %v3974_v15 }
 0x4c2   :  { %13405 = vst [vmem:[#allocation26_spill] sm:$0xff] %v11417_v26  ;;  %v4182_v27 = vadd.f32 %v13406_v47, %v11307_v22  ;;  %v3921_v4 = vsel %vm595_vm0, %v3881_v23, %v3882_v42  ;;  %v11427_v61 = vadd.f32 %v4166_v6, %v4042_v52  ;;  %v3976_v50 = vadd.f32 %v3923_v29, %v13408_v31  ;;  %v11437_v47 = vpop.f32.mrf.mxu1 }
 0x4c3   :  { %v4035_v18 = vmax.f32 %v4003_v45, 0.0  ;;  %v3885_v2 = vrot.slane %v13409_v63, 6  ;;  %v4014_v10 = vadd.f32 %v11228_v30, %v3977_v11  ;;  %v13411_v45 = vld [vmem:[#allocation42_spill] sm:$0xff]  ;;  %v3979_v15 = vadd.f32 %v3920_v44, %v11262_v54  ;;  %v13413_v11 = vld [vmem:[#allocation49_spill] sm:$0xff] }
 0x4c4   :  { %13407 = vst [vmem:[#allocation45_spill] sm:$0xff] %v11427_v61  ;;  %v3884_v36 = vrot.slane %v13411_v45, 6  ;;  %v3886_v62 = vrot.slane %v11159_v13, 6  ;;  %v12922_v23 = vmax.f32 %v11417_v26, 0.0  ;;  %v4044_v6 = vmax.f32 %v4012_v59, 0.0  ;;  %v11463_v31 = vpop.f32.mrf.mxu1 }
 0x4c5   :  { %v11431_v0 = vadd.f32 %v4139_v40, %v4035_v18  ;;  %v3978_v42 = vadd.f32 %v3921_v4, %v11245_v57  ;;  %v11443_v40 = vadd.f32 %v11341_v25, %v4041_v32  ;;  %v4043_v29 = vmax.f32 %v4011_v21, 0.0 }
 0x4c6   :  { %v4174_v18 = vadd.f32 %v11307_v22, %v13413_v11  ;;  %v3887_v54 = vrot.slane %v11165_v17, 6  ;;  %v4013_v44 = vadd.f32 %v11228_v30, %v3976_v50  ;;  %v3918_v59 = vsel %vm595_vm0, %v3884_v36, %v3885_v2  ;;  %v8079_v50 = vld [vmem:[#allocation2 + $0x170] sm:$0xff]  }
 0x4c7   :  { %13410 = vst [vmem:[#allocation25_spill] sm:$0xff] %v11431_v0  ;;  %v12921_v52 = vmax.f32 %v11431_v0, 0.0  ;;  %13412 = vst [vmem:[#allocation30_spill] sm:$0xff] %v11443_v40  ;;  %v13414_v57 = vmax.f32 %v11366_v7, 0.0  ;;  %v4046_v25 = vmax.f32 %v4014_v10, 0.0  ;;  %v3919_v21 = vsel %vm595_vm0, %v3883_v37, %v3884_v36 }
 0x4c8   :  { %v4016_v32 = vadd.f32 %v11228_v30, %v3979_v15  ;;  %v3917_v17 = vsel %vm595_vm0, %v3885_v2, %v3886_v62  ;;  %v13415_v63 = vmax.f32 %v11383_v46, 0.0  ;;  %v11471_v11 = vadd.f32 %v4174_v18, %v4044_v6  ;;  %v13419_v15 = vld [vmem:[#allocation41_spill] sm:$0xff]  ;;  %v13420_v18 = vld [vmem:[#allocation40_spill] sm:$0xff] }
 0x4c9   :  { %v11456_v4 = vpack.c.bf16 %v13414_v57, %v12921_v52  ;;  %v4015_v10 = vadd.f32 %v11228_v30, %v3978_v42  ;;  %v13417_v57 = vld [vmem:[#allocation46_spill] sm:$0xff]  ;;  %v11480_v36 = vadd.f32 %v4171_v39, %v4043_v29  ;;  %v3981_v52 = vadd.f32 %v3918_v59, %v13419_v15  ;;  %v13422_v29 = vld [vmem:[#allocation33_spill] sm:$0xff]  ;;  %v13424_v59 = vld [vmem:[#allocation51_spill] sm:$0xff] }
 0x4ca   :  { %v11469_v45 = vpack.c.bf16 %v12922_v23, %v13415_v63  ;;  %13416 = vst [vmem:[#allocation16_spill] sm:$0xff] %v11471_v11  ;;  %v3889_v37 = vrot.slane %v13417_v57, 6  ;;  %v3916_v6 = vsel %vm595_vm0, %v3886_v62, %v3887_v54  ;;  %v4045_v42 = vmax.f32 %v4013_v44, 0.0  ;;  %v13421_v57 = vld [vmem:[#allocation52_spill] sm:$0xff] }
 0x4cb   :  { %7772 = vmatprep.mubr.msk.bf16.mxu0 %vm1111_vm4, %v11456_v4  ;;  %7812 = vmatprep.mubr.msk.bf16.mxu1 %vm1111_vm4, %v11456_v4  ;;  %13418 = vst [vmem:[#allocation29_spill] sm:$0xff] %v11480_v36  ;;  %v3980_v63 = vadd.f32 %v3919_v21, %v13420_v18  ;;  %v3888_v23 = vrot.slane %v13421_v57, 6  ;;  %v3950_v39 = vsel %vm143_vm7, %v3917_v17, 0.0  ;;  %v11496_v62 = vadd.f32 %v4182_v27, %v4046_v25  ;;  %v11502_v21 = vpop.f32.mrf.mxu1  ;;  %v8080_v17 = vld [vmem:[#allocation2 + $0x168] sm:$0xff]  }
 0x4cc   :  { %7773 = vmatmul.mubr.msk.bf16.vlgmr.msra.gmra.mxu0 %vm1111_vm4, %v11402_v14  ;;  %7813 = vmatmul.mubr.msk.bf16.vlgmr.msra.gmra.mxu1 %vm1111_vm4, %v11402_v14  ;;  %v4195_v15 = vadd.f32 %v13424_v59, %v11307_v22  ;;  %v4187_v44 = vadd.f32 %v11307_v22, %v11169_v8  ;;  %v4048_v13 = vmax.f32 %v4016_v32, 0.0  ;;  %v4047_v57 = vmax.f32 %v4015_v10, 0.0  ;;  %v13425_v59 = vld [vmem:[#allocation55_spill] sm:$0xff]  ;;  %v13427_v18 = vld [vmem:[#allocation13_spill] sm:$0xff] }
 0x4cd   :  { %7845 = vmatpush3.bf16.msra.mxu0 %v13422_v29  ;;  %7776 = vmatprep.mubr.msk.bf16.mxu0 %vm1111_vm4, %v11469_v45  ;;  %13423 = vst [vmem:[#allocation23_spill] sm:$0xff] %v11496_v62  ;;  %v3914_v27 = vsel %vm595_vm0, %v3888_v23, %v3889_v37  ;;  %v3983_v25 = vadd.f32 %v3916_v6, %v11284_v33  ;;  %v3891_v2 = vrot.slane %v13425_v59, 6  ;;  %v12927_v0 = vmax.f32 %v11480_v36, 0.0  ;;  %v13428_v33 = vld [vmem:[#allocation8_spill] sm:$0xff] }
 0x4ce   :  { %7816 = vmatprep.mubr.msk.bf16.mxu1 %vm1111_vm4, %v11469_v45  ;;  %7846 = vmatprep.subr.bf16.mxu0 %v8079_v50  ;;  %v4018_v29 = vadd.f32 %v11228_v30, %v3981_v52  ;;  %v4190_v8 = vadd.f32 %v11307_v22, %v11230_v49  ;;  %v3982_v32 = vadd.f32 %v3950_v39, %v11270_v38  ;;  %v3890_v46 = vrot.slane %v13427_v18, 6  ;;  %v13430_v49 = vld [vmem:[#allocation11_spill] sm:$0xff]  ;;  %v11526_v38 = vpop.f32.mrf.mxu1  ;;  %v13542_v58 = vld [vmem:[#allocation25_spill] sm:$0xff] }
 0x4cf   :  { %v11517_v26 = vadd.f32 %v11406_v53, %v4045_v42  ;;  %v4017_v10 = vadd.f32 %v11228_v30, %v3980_v63  ;;  %v4198_v52 = vadd.f32 %v13428_v33, %v11307_v22  ;;  %v3985_v7 = vadd.f32 %v3914_v27, %v13430_v49  ;;  %v8081_v27 = vld [vmem:[#allocation2 + $0x160] sm:$0xff]  }
 0x4d0   :  { %v11523_v6 = vadd.f32 %v4190_v8, %v4048_v13  ;;  %v13431_v39 = vmax.f32 %v11443_v40, 0.0  ;;  %v13432_v59 = vmax.f32 %v11427_v61, 0.0  ;;  %v11540_v63 = vadd.f32 %v4187_v44, %v4047_v57 }
 0x4d1   :  { %13426 = vst [vmem:[#allocation36_spill] sm:$0xff] %v11517_v26  ;;  %7847 = vmatpush3.bf16.msra.mxu0 %v8079_v50  ;;  %v13433_v50 = vmax.f32 %v11471_v11, 0.0  ;;  %v3915_v13 = vsel %vm595_vm0, %v3887_v54, %v3888_v23  ;;  %v4020_v18 = vadd.f32 %v11228_v30, %v3983_v25  ;;  %v4050_v33 = vmax.f32 %v4018_v29, 0.0  ;;  %v11930_v11 = vld [vmem:[%s12789_s2 + $0xc] ss:$0 sm:$0xff] }
 0x4d2   :  { %13429 = vst [vmem:[#allocation19_spill] sm:$0xff] %v11523_v6  ;;  %v11532_v53 = vpack.c.bf16 %v13432_v59, %v13431_v39  ;;  %7848 = vmatprep.subr.bf16.mxu0 %v8080_v17  ;;  %13434 = vst [vmem:[#allocation48_spill] sm:$0xff] %v11540_v63  ;;  %v4019_v49 = vadd.f32 %v11228_v30, %v3982_v32  ;;  %v3912_v39 = vsel %vm595_vm0, %v3890_v46, %v3891_v2  ;;  %vm6351_vm1 = vcmask 1042434  }
 0x4d3   :  { %v11538_v42 = vpack.c.bf16 %v13433_v50, %v12927_v0  ;;  %v4049_v23 = vmax.f32 %v4017_v10, 0.0  ;;  %v4211_v54 = vadd.f32 %v11279_v19, %v11307_v22  ;;  %v3913_v57 = vsel %vm595_vm0, %v3889_v37, %v3890_v46  ;;  %v13435_v10 = vld [vmem:[#allocation9_spill] sm:$0xff]  ;;  %v11567_v50 = vpop.f32.mrf.mxu1 }
 0x4d4   :  { %7777 = vmatmul.mubr.msk.bf16.gmra.mxu0 %vm1111_vm4, %v11532_v53  ;;  %7817 = vmatmul.mubr.msk.bf16.gmra.mxu1 %vm1111_vm4, %v11532_v53  ;;  %v4203_v29 = vadd.f32 %v11307_v22, %v11324_v3  ;;  %v4022_v32 = vadd.f32 %v11228_v30, %v3985_v7  ;;  %v3984_v59 = vadd.f32 %v3915_v13, %v13435_v10  ;;  %v4052_v46 = vmax.f32 %v4020_v18, 0.0  ;;  %v13438_v13 = vld [vmem:[#allocation54_spill] sm:$0xff]  ;;  %v13439_v18 = vld [vmem:[#allocation32_spill] sm:$0xff] }
 0x4d5   :  { %7780 = vmatprep.mubr.msk.bf16.mxu0 %vm1111_vm4, %v11538_v42  ;;  %7820 = vmatprep.mubr.msk.bf16.mxu1 %vm1111_vm4, %v11538_v42  ;;  %v3987_v37 = vadd.f32 %v3912_v39, %v11291_v55  ;;  %v3894_v0 = vrot.slane %v11232_v41, 6  ;;  %v11572_v8 = vadd.f32 %v4198_v52, %v4050_v33  ;;  %v4051_v44 = vmax.f32 %v4019_v49, 0.0  ;;  %v11589_v49 = vpop.f32.mrf.mxu1 }
 0x4d6   :  { %7849 = vmatpush3.bf16.msra.mxu0 %v8080_v17  ;;  %v3986_v3 = vadd.f32 %v3913_v57, %v11288_v56  ;;  %v3895_v7 = vrot.slane %v11281_v35, 6  ;;  %v11576_v25 = vadd.f32 %v4195_v15, %v4049_v23  ;;  %v4206_v17 = vadd.f32 %v11307_v22, %v11385_v43 }
 0x4d7   :  { %7850 = vmatprep.subr.bf16.mxu0 %v8081_v27  ;;  %13436 = vst [vmem:[#allocation27_spill] sm:$0xff] %v11572_v8  ;;  %v3892_v10 = vrot.slane %v13438_v13, 6  ;;  %v3893_v19 = vrot.slane %v13439_v18, 6  ;;  %v13440_v55 = vmax.f32 %v11540_v63, 0.0  ;;  %v13441_v41 = vmax.f32 %v11523_v6, 0.0 }
 0x4d8   :  { %13437 = vst [vmem:[#allocation39_spill] sm:$0xff] %v11576_v25  ;;  %v4054_v33 = vmax.f32 %v4022_v32, 0.0  ;;  %v4021_v56 = vadd.f32 %v11228_v30, %v3984_v59  ;;  %v13442_v35 = vmax.f32 %v11517_v26, 0.0  ;;  %v13443_v15 = vmax.f32 %v11496_v62, 0.0 }
 0x4d9   :  { %v11586_v52 = vpack.c.bf16 %v13441_v41, %v13440_v55  ;;  %v11597_v39 = vadd.f32 %v4206_v17, %v4052_v46  ;;  %v3911_v23 = vsel %vm595_vm0, %v3891_v2, %v3892_v10  ;;  %v4024_v57 = vadd.f32 %v11228_v30, %v3987_v37  ;;  %v4237_v55 = vpop.f32.mrf.mxu1 }
 0x4da   :  { %v11595_v43 = vpack.c.bf16 %v13443_v15, %v13442_v35  ;;  %7851 = vmatpush3.bf16.msra.mxu0 %v8081_v27  ;;  %v3909_v32 = vsel %vm595_vm0, %v3893_v19, %v3894_v0  ;;  %v11604_v59 = vadd.f32 %v4203_v29, %v4051_v44  ;;  %v4023_v13 = vadd.f32 %v11228_v30, %v3986_v3  ;;  %v11619_v29 = vpop.f32.mrf.mxu0  ;;  %v13446_v3 = vld [vmem:[#allocation35_spill] sm:$0xff] }
 0x4db   :  { %13444 = vst [vmem:[#allocation53_spill] sm:$0xff] %v11597_v39  ;;  %v3908_v18 = vsel %vm595_vm0, %v3894_v0, %v3895_v7  ;;  %v4214_v46 = vadd.f32 %v11358_v51, %v11307_v22  ;;  %v3910_v44 = vsel %vm595_vm0, %v3892_v10, %v3893_v19  ;;  %v4053_v0 = vmax.f32 %v4021_v56, 0.0  ;;  %v13448_v56 = vld [vmem:[#allocation43_spill] sm:$0xff] }
 0x4dc   :  { %13445 = vst [vmem:[#allocation47_spill] sm:$0xff] %v11604_v59  ;;  %7781 = vmatmul.mubr.msk.bf16.gmra.mxu0 %vm1111_vm4, %v11595_v43  ;;  %7821 = vmatmul.mubr.msk.bf16.gmra.mxu1 %vm1111_vm4, %v11595_v43  ;;  %v4219_v37 = vadd.f32 %v11307_v22, %v11437_v47  ;;  %v3988_v17 = vadd.f32 %v3911_v23, %v13446_v3  ;;  %v3958_v51 = vsel %vm151_vm9, %v3909_v32, 0.0  ;;  %v12928_v19 = vmax.f32 %v11597_v39, 0.0 }
 0x4dd   :  { %7784 = vmatprep.mubr.msk.bf16.mxu0 %vm1111_vm4, %v11586_v52  ;;  %7824 = vmatprep.mubr.msk.bf16.mxu1 %vm1111_vm4, %v11586_v52  ;;  %v11630_v41 = vadd.f32 %v4214_v46, %v4054_v33  ;;  %v4056_v10 = vmax.f32 %v4024_v57, 0.0  ;;  %v3991_v35 = vadd.f32 %v3908_v18, %v11314_v5  ;;  %v12929_v15 = vmax.f32 %v11604_v59, 0.0  ;;  %v11645_v57 = vpop.f32.mrf.mxu1 }
 0x4de   :  { %v4055_v2 = vmax.f32 %v4023_v13, 0.0  ;;  %v3989_v27 = vadd.f32 %v3910_v44, %v13448_v56  ;;  %v3899_v47 = vrot.slane %v11619_v29, 6  ;;  %v4222_v23 = vadd.f32 %v11307_v22, %v11502_v21 }
 0x4df   :  { %13447 = vst [vmem:[#allocation37_spill] sm:$0xff] %v11630_v41  ;;  %v3896_v32 = vrot.slane %v11204_v34, 6  ;;  %v3990_v33 = vadd.f32 %v3958_v51, %v11296_v28  ;;  %v3897_v46 = vrot.slane %v11259_v12, 6  ;;  %v11642_v3 = vadd.f32 %v4211_v54, %v4053_v0  ;;  %v13454_v51 = vld [vmem:[#allocation20_spill] sm:$0xff] }
 0x4e0   :  { %v4025_v5 = vadd.f32 %v11228_v30, %v3988_v17  ;;  %v3898_v13 = vrot.slane %v11326_v16, 6  ;;  %v13450_v18 = vmax.f32 %v11576_v25, 0.0  ;;  %v13451_v44 = vmax.f32 %v11572_v8, 0.0 }
 0x4e1   :  { %13449 = vst [vmem:[#allocation50_spill] sm:$0xff] %v11642_v3  ;;  %v11658_v34 = vpack.c.bf16 %v12928_v19, %v12929_v15  ;;  %v11660_v12 = vadd.f32 %v4222_v23, %v4056_v10  ;;  %v3907_v28 = vsel %vm595_vm0, %v3895_v7, %v3896_v32  ;;  %v4028_v21 = vadd.f32 %v11228_v30, %v3991_v35 }
 0x4e2   :  { %v11652_v29 = vpack.c.bf16 %v13451_v44, %v13450_v18  ;;  %v11665_v16 = vadd.f32 %v4219_v37, %v4055_v2  ;;  %v4026_v54 = vadd.f32 %v11228_v30, %v3989_v27  ;;  %v3904_v0 = vsel %vm595_vm0, %v3898_v13, %v3899_v47 }
 0x4e3   :  { %13452 = vst [vmem:[#allocation38_spill] sm:$0xff] %v11660_v12  ;;  %v4227_v17 = vadd.f32 %v11415_v24, %v11307_v22  ;;  %v4027_v7 = vadd.f32 %v11228_v30, %v3990_v33  ;;  %v3906_v2 = vsel %vm595_vm0, %v3896_v32, %v3897_v46  ;;  %v12942_v27 = vmax.f32 %v11642_v3, 0.0  ;;  %v4250_v24 = vpop.f32.mrf.mxu1 }
 0x4e4   :  { %13453 = vst [vmem:[#allocation44_spill] sm:$0xff] %v11665_v16  ;;  %7785 = vmatmul.mubr.msk.bf16.gmra.mxu0 %vm1111_vm4, %v11652_v29  ;;  %7825 = vmatmul.mubr.msk.bf16.gmra.mxu1 %vm1111_vm4, %v11652_v29  ;;  %v4057_v37 = vmax.f32 %v4025_v5, 0.0  ;;  %v3992_v10 = vadd.f32 %v3907_v28, %v13454_v51  ;;  %v3905_v35 = vsel %vm595_vm0, %v3897_v46, %v3898_v13  ;;  %v12930_v23 = vmax.f32 %v11660_v12, 0.0  ;;  %v13455_v5 = vld [vmem:[#allocation24_spill] sm:$0xff] }
 0x4e5   :  { %7788 = vmatprep.mubr.msk.bf16.mxu0 %vm1111_vm4, %v11658_v34  ;;  %7828 = vmatprep.mubr.msk.bf16.mxu1 %vm1111_vm4, %v11658_v34  ;;  %v4230_v56 = vadd.f32 %v11463_v31, %v11307_v22  ;;  %v4060_v32 = vmax.f32 %v4028_v21, 0.0  ;;  %v3995_v33 = vadd.f32 %v3904_v0, %v11329_v60  ;;  %v12943_v18 = vmax.f32 %v11630_v41, 0.0  ;;  %v7763_v0 = vpop.f32.mrf.mxu1 }
 0x4e6   :  { %v12931_v44 = vmax.f32 %v11665_v16, 0.0  ;;  %v4058_v19 = vmax.f32 %v4026_v54, 0.0  ;;  %v3993_v15 = vadd.f32 %v3906_v2, %v13455_v5  ;;  %v4059_v28 = vmax.f32 %v4027_v7, 0.0 }
 0x4e7   :  { %v4238_v51 = vadd.f32 %v11307_v22, %v4237_v55  ;;  %v3900_v46 = vrot.slane %v11311_v9, 6  ;;  %v3994_v13 = vadd.f32 %v3905_v35, %v11318_v1  ;;  %v11697_v31 = vadd.f32 %v4227_v17, %v4057_v37 }
 0x4e8   :  { %v4235_v21 = vadd.f32 %v11307_v22, %v11567_v50  ;;  %v4029_v60 = vadd.f32 %v11228_v30, %v3992_v10  ;;  %v11706_v54 = vpack.c.bf16 %v12943_v18, %v12942_v27  ;;  %v11712_v9 = vpack.c.bf16 %v12930_v23, %v12931_v44  ;;  %v13460_v10 = vld [vmem:[#allocation10_spill] sm:$0xff] }
 0x4e9   :  { %13456 = vst [vmem:[#allocation42_spill] sm:$0xff] %v11697_v31  ;;  %v11714_v1 = vadd.f32 %v4238_v51, %v4060_v32  ;;  %v3903_v50 = vsel %vm595_vm0, %v3899_v47, %v3900_v46  ;;  %v4032_v55 = vadd.f32 %v11228_v30, %v3995_v33  ;;  %v11719_v17 = vadd.f32 %v4230_v56, %v4058_v19  ;;  %v13462_v56 = vld [vmem:[#allocation34_spill] sm:$0xff]  ;;  %v4253_v33 = vpop.f32.mrf.mxu1 }
 0x4ea   :  { %v4030_v7 = vadd.f32 %v11228_v30, %v3993_v15  ;;  %v11726_v2 = vadd.f32 %v4235_v21, %v4059_v28  ;;  %v4031_v37 = vadd.f32 %v11228_v30, %v3994_v13  ;;  %v13461_v35 = vrot.slane %v13460_v10, 6  ;;  %v13463_v21 = vld [vmem:[#allocation22_spill] sm:$0xff] }
 0x4eb   :  { %13457 = vst [vmem:[#allocation49_spill] sm:$0xff] %v11714_v1  ;;  %13458 = vst [vmem:[#allocation46_spill] sm:$0xff] %v11719_v17  ;;  %v12940_v19 = vmax.f32 %v11697_v31, 0.0  ;;  %v4061_v15 = vmax.f32 %v4029_v60, 0.0  ;;  %v3996_v32 = vadd.f32 %v3903_v50, %v13462_v56  ;;  %v12937_v5 = vmax.f32 %v11714_v1, 0.0 }
 0x4ec   :  { %7789 = vmatmul.mubr.msk.bf16.gmra.mxu0 %vm1111_vm4, %v11706_v54  ;;  %7829 = vmatmul.mubr.msk.bf16.gmra.mxu1 %vm1111_vm4, %v11706_v54  ;;  %13459 = vst [vmem:[#allocation41_spill] sm:$0xff] %v11726_v2  ;;  %v3902_v47 = vsel %vm595_vm0, %v3900_v46, %v13461_v35  ;;  %v4064_v28 = vmax.f32 %v4032_v55, 0.0  ;;  %v12941_v51 = vmax.f32 %v11719_v17, 0.0  ;;  %v4243_v46 = vadd.f32 %v11526_v38, %v11307_v22 }
 0x4ed   :  { %7792 = vmatprep.mubr.msk.bf16.mxu0 %vm1111_vm4, %v11712_v9  ;;  %7832 = vmatprep.mubr.msk.bf16.mxu1 %vm1111_vm4, %v11712_v9  ;;  %v4062_v13 = vmax.f32 %v4030_v7, 0.0  ;;  %v3997_v10 = vadd.f32 %v3902_v47, %v13463_v21  ;;  %v12939_v35 = vmax.f32 %v11726_v2, 0.0  ;;  %v4063_v23 = vmax.f32 %v4031_v37, 0.0 }
 0x4ee   :  { %v4254_v44 = vadd.f32 %v11307_v22, %v4253_v33  ;;  %v4246_v60 = vadd.f32 %v11589_v49, %v11307_v22  ;;  %v11748_v50 = vadd.f32 %v4243_v46, %v4061_v15  ;;  %v4033_v55 = vadd.f32 %v11228_v30, %v3996_v32 }
 0x4ef   :  { %v4340_v38 = vpack.c.bf16 %v12941_v51, %v12940_v19  ;;  %v4341_v7 = vpack.c.bf16 %v12937_v5, %v12939_v35  ;;  %v4251_v37 = vadd.f32 %v11307_v22, %v4250_v24  ;;  %v4034_v49 = vadd.f32 %v11228_v30, %v3997_v10 }
 0x4f0   :  { %13464 = vst [vmem:[#allocation40_spill] sm:$0xff] %v11748_v50  ;;  %v11760_v47 = vadd.f32 %v4254_v44, %v4064_v28  ;;  %v11762_v56 = vadd.f32 %v4246_v60, %v4062_v13  ;;  %v12936_v32 = vmax.f32 %v11748_v50, 0.0  ;;  %v4065_v33 = vmax.f32 %v4033_v55, 0.0 }
 0x4f1   :  { %v11767_v15 = vadd.f32 %v4251_v37, %v4063_v23  ;;  %v4259_v30 = vadd.f32 %v11645_v57, %v11307_v22  ;;  %v4066_v28 = vmax.f32 %v4034_v49, 0.0  ;;  %v4262_v23 = vadd.f32 %v7763_v0, %v11307_v22  ;;  %v8088_v37 = vld [vmem:[#allocation2 + $0x1e8] sm:$0xff]   ;;  %v11843_v49 = vld [vmem:[#allocation2 + $0x1d8] sm:$0xff]  }
 0x4f2   :  { %13465 = vst [vmem:[#allocation52_spill] sm:$0xff] %v11760_v47  ;;  %13466 = vst [vmem:[#allocation33_spill] sm:$0xff] %v11762_v56  ;;  %v12933_v24 = vmax.f32 %v11760_v47, 0.0  ;;  %v12938_v44 = vmax.f32 %v11762_v56, 0.0  ;;  %vm6349_vm0 = vcmask 1041409   ;;  %vm6643_vm5 = vcmask 60416  }
 0x4f3   :  { %13467 = vst [vmem:[#allocation51_spill] sm:$0xff] %v11767_v15  ;;  %v12935_v46 = vmax.f32 %v11767_v15, 0.0  ;;  %v11778_v13 = vadd.f32 %v4259_v30, %v4065_v33  ;;  %v11788_v60 = vadd.f32 %v4262_v23, %v4066_v28  ;;  %v8089_v23 = vld [vmem:[#allocation2 + $0x1e0] sm:$0xff]  }
 0x4f4   :  { %7793 = vmatmul.mubr.msk.bf16.gmra.mxu0 %vm1111_vm4, %v4340_v38  ;;  %7833 = vmatmul.mubr.msk.bf16.gmra.mxu1 %vm1111_vm4, %v4340_v38  ;;  %v4342_v21 = vpack.c.bf16 %v12938_v44, %v12936_v32 }
 0x4f5   :  { %7796 = vmatprep.mubr.msk.bf16.mxu0 %vm1111_vm4, %v4341_v7  ;;  %7836 = vmatprep.mubr.msk.bf16.mxu1 %vm1111_vm4, %v4341_v7  ;;  %13468 = vst [vmem:[#allocation55_spill] sm:$0xff] %v11778_v13  ;;  %v4343_v10 = vpack.c.bf16 %v12933_v24, %v12935_v46  ;;  %13469 = vst [vmem:[#allocation13_spill] sm:$0xff] %v11788_v60  ;;  %v12932_v22 = vmax.f32 %v11778_v13, 0.0  ;;  %v12934_v57 = vmax.f32 %v11788_v60, 0.0 }
 0x4f7   :  { %v4344_v0 = vpack.c.bf16 %v12934_v57, %v12932_v22 }
 0x4fc   :  { %7797 = vmatmul.mubr.msk.bf16.gmra.mxu0 %vm1111_vm4, %v4342_v21  ;;  %7837 = vmatmul.mubr.msk.bf16.gmra.mxu1 %vm1111_vm4, %v4342_v21 }
 0x4fd   :  { %7800 = vmatprep.mubr.msk.bf16.mxu0 %vm1111_vm4, %v4343_v10  ;;  %7840 = vmatprep.mubr.msk.bf16.mxu1 %vm1111_vm4, %v4343_v10 }
 0x504   :  { %7801 = vmatmul.mubr.msk.bf16.gmra.mxu0 %vm1111_vm4, %v4344_v0  ;;  %7841 = vmatmul.mubr.msk.bf16.gmra.mxu1 %vm1111_vm4, %v4344_v0 }
 0x505   :  { %7852 = vmatprep.mubr.msk.bf16.mxu0 %vm1111_vm4, %v11456_v4  ;;  %v8083_v4 = vld [vmem:[#allocation2 + $0x1b0] sm:$0xff]  }
 0x50c   :  { %7853 = vmatmul.mubr.msk.bf16.vlgmr.msra.gmra.mxu0 %vm1111_vm4, %v11402_v14  ;;  %v8082_v14 = vld [vmem:[#allocation2 + $0x1b8] sm:$0xff]  }
 0x50d   :  { %7856 = vmatprep.mubr.msk.bf16.mxu0 %vm1111_vm4, %v11469_v45  ;;  %7884 = vmatprep.subr.bf16.mxu1 %v8082_v14  ;;  %v8084_v45 = vld [vmem:[#allocation2 + $0x1a8] sm:$0xff]  }
 0x50e   :  { %7885 = vmatpush3.bf16.msra.mxu1 %v8082_v14 }
 0x50f   :  { %7886 = vmatprep.subr.bf16.mxu1 %v8083_v4 }
 0x512   :  { %7887 = vmatpush3.bf16.msra.mxu1 %v8083_v4 }
 0x513   :  { %7888 = vmatprep.subr.bf16.mxu1 %v8084_v45 }
 0x514   :  { %7857 = vmatmul.mubr.msk.bf16.gmra.mxu0 %vm1111_vm4, %v11532_v53 }
 0x515   :  { %7860 = vmatprep.mubr.msk.bf16.mxu0 %vm1111_vm4, %v11538_v42 }
 0x516   :  { %7889 = vmatpush3.bf16.msra.mxu1 %v8084_v45 }
 0x51c   :  { %7861 = vmatmul.mubr.msk.bf16.gmra.mxu0 %vm1111_vm4, %v11595_v43 }
 0x51d   :  { %7864 = vmatprep.mubr.msk.bf16.mxu0 %vm1111_vm4, %v11586_v52  ;;  %v8085_v52 = vld [vmem:[#allocation2 + $0x1a0] sm:$0xff]  }
 0x51e   :  { %7890 = vmatprep.subr.bf16.mxu1 %v8085_v52 }
 0x51f   :  { %7891 = vmatpush3.bf16.msra.mxu1 %v8085_v52 }
 0x520   :  { %7964 = vmatprep.subr.bf16.mxu1 %v11843_v49 }
 0x524   :  { %7865 = vmatmul.mubr.msk.bf16.gmra.mxu0 %vm1111_vm4, %v11652_v29  ;;  %v8086_v29 = vld [vmem:[#allocation2 + $0x1f8] sm:$0xff]  }
 0x525   :  { %7868 = vmatprep.mubr.msk.bf16.mxu0 %vm1111_vm4, %v11658_v34  ;;  %7924 = vmatprep.subr.bf16.mxu0 %v8086_v29 }
 0x526   :  { %7925 = vmatpush3.bf16.msra.mxu0 %v8086_v29 }
 0x52c   :  { %7869 = vmatmul.mubr.msk.bf16.gmra.mxu0 %vm1111_vm4, %v11706_v54 }
 0x52d   :  { %7872 = vmatprep.mubr.msk.bf16.mxu0 %vm1111_vm4, %v11712_v9 }
 0x534   :  { %7873 = vmatmul.mubr.msk.bf16.gmra.mxu0 %vm1111_vm4, %v4340_v38 }
 0x535   :  { %7876 = vmatprep.mubr.msk.bf16.mxu0 %vm1111_vm4, %v4341_v7  ;;  %v8087_v7 = vld [vmem:[#allocation2 + $0x1f0] sm:$0xff]  }
 0x536   :  { %7926 = vmatprep.subr.bf16.mxu0 %v8087_v7 }
 0x537   :  { %7927 = vmatpush3.bf16.msra.mxu0 %v8087_v7 }
 0x538   :  { %7928 = vmatprep.subr.bf16.mxu0 %v8088_v37 }
 0x53b   :  { %7929 = vmatpush3.bf16.msra.mxu0 %v8088_v37 }
 0x53c   :  { %7877 = vmatmul.mubr.msk.bf16.gmra.mxu0 %vm1111_vm4, %v4342_v21  ;;  %7930 = vmatprep.subr.bf16.mxu0 %v8089_v23 }
 0x53d   :  { %7880 = vmatprep.mubr.msk.bf16.mxu0 %vm1111_vm4, %v4343_v10 }
 0x53f   :  { %7931 = vmatpush3.bf16.msra.mxu0 %v8089_v23 }
 0x544   :  { %7881 = vmatmul.mubr.msk.bf16.gmra.mxu0 %vm1111_vm4, %v4344_v0 }
 0x58c   :  { %v11829_v53 = vpop.f32.mrf.mxu0  ;;  %v11831_v42 = vpop.f32.mrf.mxu1 }
 0x58e   :  { %v11833_v43 = vpop.f32.mrf.mxu0  ;;  %v11835_v34 = vpop.f32.mrf.mxu1 }
 0x590   :  { %v11837_v54 = vpop.f32.mrf.mxu0  ;;  %v7815_v55 = vpop.f32.mrf.mxu1 }
 0x591   :  { %v4760_v8 = vadd.f32 %v7815_v55, %v11829_v53 }
 0x592   :  { %v11839_v9 = vpop.f32.mrf.mxu0  ;;  %v11847_v30 = vpop.f32.mrf.mxu1 }
 0x594   :  { %v11841_v38 = vpop.f32.mrf.mxu0  ;;  %v11852_v10 = vpop.f32.mrf.mxu1 }
 0x596   :  { %v11845_v33 = vpop.f32.mrf.mxu0  ;;  %v4764_v4 = vpop.f32.mrf.mxu1 }
 0x598   :  { %v7779_v28 = vpop.f32.mrf.mxu0  ;;  %v7819_v29 = vpop.f32.mrf.mxu1 }
 0x59a   :  { %v11850_v21 = vpop.f32.mrf.mxu0  ;;  %v11866_v22 = vpop.f32.mrf.mxu1 }
 0x59c   :  { %v11854_v0 = vpop.f32.mrf.mxu0  ;;  %v11870_v57 = vpop.f32.mrf.mxu1 }
 0x59e   :  { %v11856_v14 = vpop.f32.mrf.mxu0  ;;  %v11876_v23 = vpop.f32.mrf.mxu1 }
 0x5a0   :  { %v11858_v45 = vpop.f32.mrf.mxu0  ;;  %v11882_v35 = vpop.f32.mrf.mxu1 }
 0x5a2   :  { %v11860_v52 = vpop.f32.mrf.mxu0 }
 0x5a4   :  { %v11862_v7 = vpop.f32.mrf.mxu0 }
 0x5a6   :  { %v11864_v28 = vpop.f32.mrf.mxu0 }
 0x5a8   :  { %v7787_v24 = vpop.f32.mrf.mxu0 }
 0x5a9   :  { %v11888_v24 = vpop.f32.mrf.mxu1 }
 0x5aa   :  { %v11868_v37 = vpop.f32.mrf.mxu0 }
 0x5ab   :  { %v11892_v13 = vpop.f32.mrf.mxu1 }
 0x5ac   :  { %v11872_v46 = vpop.f32.mrf.mxu0 }
 0x5ad   :  { %v11898_v15 = vpop.f32.mrf.mxu1 }
 0x5ae   :  { %v11874_v32 = vpop.f32.mrf.mxu0 }
 0x5af   :  { %13470 = vst [vmem:[#allocation8_spill] sm:$0xff] %v11874_v32  ;;  %v11904_v56 = vpop.f32.mrf.mxu1 }
 0x5b0   :  { %v11878_v5 = vpop.f32.mrf.mxu0 }
 0x5b2   :  { %v11880_v44 = vpop.f32.mrf.mxu0 }
 0x5b4   :  { %v11884_v19 = vpop.f32.mrf.mxu0 }
 0x5b6   :  { %v11886_v51 = vpop.f32.mrf.mxu0 }
 0x5b8   :  { %v7795_v27 = vpop.f32.mrf.mxu0 }
 0x5b9   :  { %v11910_v27 = vpop.f32.mrf.mxu1 }
 0x5ba   :  { %v11890_v18 = vpop.f32.mrf.mxu0 }
 0x5bb   :  { %v11914_v16 = vpop.f32.mrf.mxu1 }
 0x5bc   :  { %v11894_v47 = vpop.f32.mrf.mxu0 }
 0x5bd   :  { %v11918_v41 = vpop.f32.mrf.mxu1 }
 0x5be   :  { %v11896_v60 = vpop.f32.mrf.mxu0  ;;  %13472 = vst [vmem:[#allocation9_spill] sm:$0xff] %v11918_v41  ;;  %v4765_v41 = vadd.f32 %v11837_v54, %v4764_v4 }
 0x5bf   :  { %13471 = vst [vmem:[#allocation11_spill] sm:$0xff] %v11896_v60  ;;  %v11923_v26 = vpop.f32.mrf.mxu1 }
 0x5c0   :  { %v11900_v50 = vpop.f32.mrf.mxu0 }
 0x5c1   :  { %v11940_v20 = vpop.f32.mrf.mxu1 }
 0x5c2   :  { %v11902_v1 = vpop.f32.mrf.mxu0 }
 0x5c4   :  { %v11906_v2 = vpop.f32.mrf.mxu0 }
 0x5c6   :  { %v11908_v31 = vpop.f32.mrf.mxu0 }
 0x5c8   :  { %v7803_v12 = vpop.f32.mrf.mxu0 }
 0x5ca   :  { %v11912_v17 = vpop.f32.mrf.mxu0 }
 0x5cc   :  { %v7854_v3 = vpop.f32.mrf.mxu0 }
 0x5cd   :  { %v5070_v25 = vrot.slane %v7854_v3, 4  ;;  %v4757_v3 = vadd.f32 %v11831_v42, %v11839_v9 }
 0x5ce   :  { %v11916_v39 = vpop.f32.mrf.mxu0 }
 0x5d0   :  { %v7855_v59 = vpop.f32.mrf.mxu0 }
 0x5d1   :  { %v5071_v6 = vrot.slane %v7855_v59, 4 }
 0x5d2   :  { %v11921_v63 = vpop.f32.mrf.mxu0 }
 0x5d3   :  { %v5128_v12 = vsel %vm2427_vm11, %v5070_v25, %v5071_v6  ;;  %v12972_v62 = vrot.slane %v11921_v63, 4 }
 0x5d4   :  { %v5167_v59 = vadd.f32 %v5128_v12, %v4760_v8  ;;  %v7858_v36 = vpop.f32.mrf.mxu0 }
 0x5d5   :  { %v5129_v53 = vsel %vm2427_vm11, %v12972_v62, %v5070_v25  ;;  %v5074_v8 = vrot.slane %v7858_v36, 4  ;;  %v4776_v25 = vadd.f32 %v7819_v29, %v11841_v38  ;;  %v11950_v62 = vpop.f32.mrf.mxu1  ;;  %v4773_v36 = vadd.f32 %v11852_v10, %v11850_v21 }
 0x5d6   :  { %v5204_v55 = vadd.f32 %v11930_v11, %v5167_v59  ;;  %v5166_v40 = vadd.f32 %v5129_v53, %v4757_v3  ;;  %v4957_v61 = vpop.f32.mrf.mxu0 }
 0x5d7   :  { %v5072_v60 = vrot.slane %v4957_v61, 4  ;;  %v11970_v10 = vpop.f32.mrf.mxu1 }
 0x5d8   :  { %v5203_v48 = vadd.f32 %v11930_v11, %v5166_v40  ;;  %v11944_v32 = vpop.f32.mrf.mxu0  ;;  %v5236_v12 = vmax.f32 %v5204_v55, 0.0 }
 0x5d9   :  { %v5127_v42 = vsel %vm2427_vm11, %v5071_v6, %v5072_v60  ;;  %v5075_v9 = vrot.slane %v11944_v32, 4  ;;  %v4768_v6 = vadd.f32 %v11866_v22, %v11845_v33 }
 0x5da   :  { %v5235_v3 = vmax.f32 %v5203_v48, 0.0  ;;  %v5168_v59 = vadd.f32 %v5127_v42, %v4765_v41  ;;  %v4960_v53 = vpop.f32.mrf.mxu0 }
 0x5db   :  { %v5124_v61 = vsel %vm2427_vm11, %v5074_v8, %v5075_v9  ;;  %v5073_v40 = vrot.slane %v4960_v53, 4 }
 0x5dc   :  { %v11960_v54 = vpack.c.bf16 %v5236_v12, %v5235_v3  ;;  %v5171_v38 = vadd.f32 %v5124_v61, %v4776_v25  ;;  %v7862_v48 = vpop.f32.mrf.mxu0  ;;  %v5205_v29 = vadd.f32 %v11930_v11, %v5168_v59 }
 0x5dd   :  { %v5125_v41 = vsel %vm2427_vm11, %v5073_v40, %v5074_v8  ;;  %v5126_v4 = vsel %vm2427_vm11, %v5072_v60, %v5073_v40  ;;  %v4792_v8 = vadd.f32 %v11882_v35, %v11854_v0  ;;  %v5078_v12 = vrot.slane %v7862_v48, 4 }
 0x5de   :  { %v5208_v55 = vadd.f32 %v11930_v11, %v5171_v38  ;;  %v5169_v42 = vadd.f32 %v5126_v4, %v4768_v6  ;;  %v5170_v53 = vadd.f32 %v5125_v41, %v4773_v36  ;;  %v11968_v21 = vpop.f32.mrf.mxu0  ;;  %v5237_v3 = vmax.f32 %v5205_v29, 0.0  ;;  %v11978_v36 = vpop.f32.mrf.mxu1 }
 0x5df   :  { %v4789_v4 = vadd.f32 %v11870_v57, %v11860_v52  ;;  %v4797_v57 = vadd.f32 %v11858_v45, %v11898_v15 }
 0x5e0   :  { %v5206_v22 = vadd.f32 %v11930_v11, %v5169_v42  ;;  %v5207_v33 = vadd.f32 %v11930_v11, %v5170_v53  ;;  %v7863_v25 = vpop.f32.mrf.mxu0  ;;  %v5240_v59 = vmax.f32 %v5208_v55, 0.0 }
 0x5e1   :  { %v5079_v60 = vrot.slane %v7863_v25, 4 }
 0x5e2   :  { %v5238_v61 = vmax.f32 %v5206_v22, 0.0  ;;  %v5239_v40 = vmax.f32 %v5207_v33, 0.0  ;;  %v11976_v6 = vpop.f32.mrf.mxu0  ;;  %v11994_v33 = vpop.f32.mrf.mxu1 }
 0x5e3   :  { %v5120_v38 = vsel %vm2427_vm11, %v5078_v12, %v5079_v60  ;;  %v5077_v41 = vrot.slane %v11976_v6, 4  ;;  %v4784_v6 = vadd.f32 %v11888_v24, %v11856_v14  ;;  %v8091_v24 = vld [vmem:[#allocation2 + $0x1d0] sm:$0xff]  }
 0x5e4   :  { %v11985_v42 = vpack.c.bf16 %v5240_v59, %v5239_v40  ;;  %v5175_v35 = vadd.f32 %v5120_v38, %v4792_v8  ;;  %v7866_v0 = vpop.f32.mrf.mxu0  ;;  %v11987_v48 = vpack.c.bf16 %v5238_v61, %v5237_v3  ;;  %v4808_v61 = vadd.f32 %v11904_v56, %v11862_v7 }
 0x5e5   :  { %v5121_v29 = vsel %vm2427_vm11, %v5077_v41, %v5078_v12  ;;  %v5082_v3 = vrot.slane %v7866_v0, 4  ;;  %v4800_v0 = vadd.f32 %v11910_v27, %v11864_v28 }
 0x5e6   :  { %v5212_v55 = vadd.f32 %v11930_v11, %v5175_v35  ;;  %v5174_v53 = vadd.f32 %v5121_v29, %v4789_v4  ;;  %v4989_v22 = vpop.f32.mrf.mxu0  ;;  %v12006_v29 = vpop.f32.mrf.mxu1 }
 0x5e7   :  { %v5080_v25 = vrot.slane %v4989_v22, 4 }
 0x5e8   :  { %v5211_v52 = vadd.f32 %v11930_v11, %v5174_v53  ;;  %v11999_v8 = vpop.f32.mrf.mxu0  ;;  %v5244_v40 = vmax.f32 %v5212_v55, 0.0 }
 0x5e9   :  { %v5119_v59 = vsel %vm2427_vm11, %v5079_v60, %v5080_v25  ;;  %v5083_v12 = vrot.slane %v11999_v8, 4  ;;  %v4805_v60 = vadd.f32 %v11892_v13, %v11868_v37  ;;  %v12026_v37 = vpop.f32.mrf.mxu1 }
 0x5ea   :  { %v5243_v38 = vmax.f32 %v5211_v52, 0.0  ;;  %v5176_v4 = vadd.f32 %v5119_v59, %v4797_v57  ;;  %v4992_v35 = vpop.f32.mrf.mxu0 }
 0x5eb   :  { %v5116_v15 = vsel %vm2427_vm11, %v5082_v3, %v5083_v12  ;;  %v5081_v45 = vrot.slane %v4992_v35, 4 }
 0x5ec   :  { %v12016_v53 = vpack.c.bf16 %v5244_v40, %v5243_v38  ;;  %v5179_v56 = vadd.f32 %v5116_v15, %v4808_v61  ;;  %v7870_v7 = vpop.f32.mrf.mxu0  ;;  %v5213_v57 = vadd.f32 %v11930_v11, %v5176_v4 }
 0x5ed   :  { %v5117_v55 = vsel %vm2427_vm11, %v5081_v45, %v5082_v3  ;;  %v5118_v22 = vsel %vm2427_vm11, %v5080_v25, %v5081_v45  ;;  %v4824_v3 = vadd.f32 %v11923_v26, %v11872_v46  ;;  %v5086_v40 = vrot.slane %v7870_v7, 4 }
 0x5ee   :  { %v5216_v52 = vadd.f32 %v11930_v11, %v5179_v56  ;;  %v5177_v59 = vadd.f32 %v5118_v22, %v4800_v0  ;;  %v5178_v35 = vadd.f32 %v5117_v55, %v4805_v60  ;;  %v12024_v13 = vpop.f32.mrf.mxu0  ;;  %v5245_v38 = vmax.f32 %v5213_v57, 0.0  ;;  %v7839_v60 = vpop.f32.mrf.mxu1 }
 0x5ef   :  { %v4821_v22 = vadd.f32 %v11914_v16, %v11880_v44  ;;  %v4829_v16 = vadd.f32 %v11878_v5, %v11970_v10 }
 0x5f0   :  { %v5214_v28 = vadd.f32 %v11930_v11, %v5177_v59  ;;  %v5215_v27 = vadd.f32 %v11930_v11, %v5178_v35  ;;  %v7871_v61 = vpop.f32.mrf.mxu0  ;;  %v5248_v4 = vmax.f32 %v5216_v52, 0.0 }
 0x5f1   :  { %v5087_v25 = vrot.slane %v7871_v61, 4 }
 0x5f2   :  { %v5246_v15 = vmax.f32 %v5214_v28, 0.0  ;;  %v5247_v45 = vmax.f32 %v5215_v27, 0.0  ;;  %v12032_v0 = vpop.f32.mrf.mxu0  ;;  %v12048_v27 = vpop.f32.mrf.mxu1 }
 0x5f3   :  { %v5112_v56 = vsel %vm2427_vm11, %v5086_v40, %v5087_v25  ;;  %v5085_v55 = vrot.slane %v12032_v0, 4 }
 0x5f4   :  { %v12039_v59 = vpack.c.bf16 %v5248_v4, %v5247_v45  ;;  %v5183_v26 = vadd.f32 %v5112_v56, %v4824_v3  ;;  %v7874_v46 = vpop.f32.mrf.mxu0  ;;  %v12041_v7 = vpack.c.bf16 %v5246_v15, %v5245_v38  ;;  %v4840_v15 = vadd.f32 %v11978_v36, %v11884_v19 }
 0x5f5   :  { %v5113_v57 = vsel %vm2427_vm11, %v5085_v55, %v5086_v40  ;;  %v5090_v38 = vrot.slane %v7874_v46, 4  ;;  %v4837_v46 = vadd.f32 %v11950_v62, %v11890_v18 }
 0x5f6   :  { %v5220_v52 = vadd.f32 %v11930_v11, %v5183_v26  ;;  %v5182_v35 = vadd.f32 %v5113_v57, %v4821_v22  ;;  %v5021_v28 = vpop.f32.mrf.mxu0  ;;  %v7842_v57 = vpop.f32.mrf.mxu1 }
 0x5f7   :  { %v5088_v61 = vrot.slane %v5021_v28, 4 }
 0x5f8   :  { %v5219_v44 = vadd.f32 %v11930_v11, %v5182_v35  ;;  %v12053_v3 = vpop.f32.mrf.mxu0  ;;  %v5252_v45 = vmax.f32 %v5220_v52, 0.0  ;;  %v4860_v18 = vpop.f32.mrf.mxu1 }
 0x5f9   :  { %v5111_v4 = vsel %vm2427_vm11, %v5087_v25, %v5088_v61  ;;  %v5091_v40 = vrot.slane %v12053_v3, 4  ;;  %v4832_v25 = vadd.f32 %v11994_v33, %v11886_v51 }
 0x5fa   :  { %v5251_v56 = vmax.f32 %v5219_v44, 0.0  ;;  %v5184_v22 = vadd.f32 %v5111_v4, %v4829_v16  ;;  %v5024_v26 = vpop.f32.mrf.mxu0 }
 0x5fb   :  { %v5108_v5 = vsel %vm2427_vm11, %v5090_v38, %v5091_v40  ;;  %v5089_v10 = vrot.slane %v5024_v26, 4 }
 0x5fc   :  { %v12068_v35 = vpack.c.bf16 %v5252_v45, %v5251_v56  ;;  %v5187_v19 = vadd.f32 %v5108_v5, %v4840_v15  ;;  %v7878_v36 = vpop.f32.mrf.mxu0  ;;  %v5221_v16 = vadd.f32 %v11930_v11, %v5184_v22  ;;  %v4856_v45 = vadd.f32 %v7839_v60, %v11894_v47 }
 0x5fd   :  { %v5109_v52 = vsel %vm2427_vm11, %v5089_v10, %v5090_v38  ;;  %v5110_v28 = vsel %vm2427_vm11, %v5088_v61, %v5089_v10  ;;  %v5068_v38 = vrot.slane %v11916_v39, 4  ;;  %v5094_v56 = vrot.slane %v7878_v36, 4 }
 0x5fe   :  { %v5224_v44 = vadd.f32 %v11930_v11, %v5187_v19  ;;  %v5185_v4 = vadd.f32 %v5110_v28, %v4832_v25  ;;  %v5186_v26 = vadd.f32 %v5109_v52, %v4837_v46  ;;  %v12076_v62 = vpop.f32.mrf.mxu0  ;;  %v5253_v5 = vmax.f32 %v5221_v16, 0.0  ;;  %v7843_v52 = vpop.f32.mrf.mxu1 }
 0x5ff   :  { %v4853_v46 = vadd.f32 %v12006_v29, %v11902_v1  ;;  %v13473_v47 = vrot.slane %v11921_v63, 4  ;;  %v4752_v1 = vadd.f32 %v11847_v30, %v11833_v43 }
 0x600   :  { %v5222_v51 = vadd.f32 %v11930_v11, %v5185_v4  ;;  %v5223_v33 = vadd.f32 %v11930_v11, %v5186_v26  ;;  %v7879_v15 = vpop.f32.mrf.mxu0  ;;  %v5256_v22 = vmax.f32 %v5224_v44, 0.0 }
 0x601   :  { %v5095_v61 = vrot.slane %v7879_v15, 4  ;;  %v5130_v39 = vsel %vm2427_vm11, %v5068_v38, %v13473_v47 }
 0x602   :  { %v5254_v10 = vmax.f32 %v5222_v51, 0.0  ;;  %v5255_v19 = vmax.f32 %v5223_v33, 0.0  ;;  %v12082_v25 = vpop.f32.mrf.mxu0  ;;  %v4863_v33 = vpop.f32.mrf.mxu1  ;;  %v5165_v15 = vadd.f32 %v5130_v39, %v4752_v1 }
 0x603   :  { %v5104_v28 = vsel %vm2427_vm11, %v5094_v56, %v5095_v61  ;;  %v5093_v4 = vrot.slane %v12082_v25, 4  ;;  %v4864_v47 = vadd.f32 %v4863_v33, %v11908_v31 }
 0x604   :  { %v12093_v60 = vpack.c.bf16 %v5256_v22, %v5255_v19  ;;  %v5191_v36 = vadd.f32 %v5104_v28, %v4856_v45  ;;  %v7882_v16 = vpop.f32.mrf.mxu0  ;;  %v12095_v44 = vpack.c.bf16 %v5254_v10, %v5253_v5  ;;  %v4861_v45 = vadd.f32 %v11900_v50, %v4860_v18 }
 0x605   :  { %v5105_v29 = vsel %vm2427_vm11, %v5093_v4, %v5094_v56  ;;  %v4872_v5 = vadd.f32 %v7843_v52, %v11906_v2  ;;  %v5076_v10 = vrot.slane %v11968_v21, 4  ;;  %v4869_v19 = vadd.f32 %v7842_v57, %v11912_v17 }
 0x606   :  { %v5228_v26 = vadd.f32 %v11930_v11, %v5191_v36  ;;  %v5190_v63 = vadd.f32 %v5105_v29, %v4853_v46  ;;  %v5053_v51 = vpop.f32.mrf.mxu0  ;;  %v5098_v28 = vrot.slane %v7882_v16, 4  ;;  %v5202_v2 = vadd.f32 %v11930_v11, %v5165_v15 }
 0x607   :  { %v5096_v22 = vrot.slane %v5053_v51, 4  ;;  %v5123_v57 = vsel %vm2427_vm11, %v5075_v9, %v5076_v10  ;;  %v5122_v29 = vsel %vm2427_vm11, %v5076_v10, %v5077_v41 }
 0x608   :  { %v5227_v43 = vadd.f32 %v11930_v11, %v5190_v63  ;;  %v7883_v30 = vpop.f32.mrf.mxu0  ;;  %v5260_v39 = vmax.f32 %v5228_v26, 0.0  ;;  %v5234_v10 = vmax.f32 %v5202_v2, 0.0  ;;  %v5084_v2 = vrot.slane %v12024_v13, 4  ;;  %v13476_v13 = vld [vmem:[#allocation8_spill] sm:$0xff] }
 0x609   :  { %v5103_v56 = vsel %vm2427_vm11, %v5095_v61, %v5096_v22  ;;  %v5099_v46 = vrot.slane %v7883_v30, 4 }
 0x60a   :  { %v5259_v36 = vmax.f32 %v5227_v43, 0.0  ;;  %v5192_v1 = vadd.f32 %v5103_v56, %v4861_v45  ;;  %v5056_v50 = vpop.f32.mrf.mxu0 }
 0x60b   :  { %v5100_v21 = vsel %vm2427_vm11, %v5098_v28, %v5099_v46  ;;  %v5131_v18 = vsel %vm2427_vm11, %v5099_v46, %v5068_v38  ;;  %v5097_v17 = vrot.slane %v5056_v50, 4 }
 0x60c   :  { %v12121_v61 = vpack.c.bf16 %v5260_v39, %v5259_v36  ;;  %v5132_v52 = vsel %vm159_vm15, %v5131_v18, 0.0  ;;  %v5195_v16 = vadd.f32 %v5100_v21, %v4872_v5  ;;  %v5229_v9 = vadd.f32 %v11930_v11, %v5192_v1  ;;  %v8092_v1 = vld [vmem:[#allocation2 + $0x1c8] sm:$0xff]  }
 0x60d   :  { %v5164_v26 = vadd.f32 %v5132_v52, %v11835_v34  ;;  %v5101_v38 = vsel %vm2427_vm11, %v5097_v17, %v5098_v28  ;;  %v5102_v32 = vsel %vm2427_vm11, %v5096_v22, %v5097_v17  ;;  %v5140_v34 = vsel %vm167_vm12, %v5123_v57, 0.0  ;;  %v8093_v17 = vld [vmem:[#allocation2 + $0x1c0] sm:$0xff]  }
 0x60e   :  { %v5232_v63 = vadd.f32 %v11930_v11, %v5195_v16  ;;  %v5193_v51 = vadd.f32 %v5102_v32, %v4864_v47  ;;  %v5194_v33 = vadd.f32 %v5101_v38, %v4869_v19  ;;  %v5173_v22 = vadd.f32 %v5122_v29, %v4784_v6 }
 0x60f   :  { %v5201_v15 = vadd.f32 %v11930_v11, %v5164_v26  ;;  %v5261_v30 = vmax.f32 %v5229_v9, 0.0  ;;  %v5172_v19 = vadd.f32 %v5140_v34, %v11876_v23  ;;  %v5115_v18 = vsel %vm2427_vm11, %v5083_v12, %v5084_v2 }
 0x610   :  { %v5230_v45 = vadd.f32 %v11930_v11, %v5193_v51  ;;  %v5231_v5 = vadd.f32 %v11930_v11, %v5194_v33  ;;  %v5264_v28 = vmax.f32 %v5232_v63, 0.0  ;;  %v5210_v36 = vadd.f32 %v11930_v11, %v5173_v22  ;;  %v13479_v33 = vld [vmem:[#allocation11_spill] sm:$0xff] }
 0x611   :  { %v5233_v43 = vmax.f32 %v5201_v15, 0.0  ;;  %v5209_v23 = vadd.f32 %v11930_v11, %v5172_v19  ;;  %v5114_v57 = vsel %vm2427_vm11, %v5084_v2, %v5085_v55  ;;  %v4816_v52 = vadd.f32 %v11940_v20, %v13476_v13  ;;  %v13478_v55 = vld [vmem:[#allocation9_spill] sm:$0xff] }
 0x612   :  { %v5262_v56 = vmax.f32 %v5230_v45, 0.0  ;;  %v5263_v46 = vmax.f32 %v5231_v5, 0.0  ;;  %v5242_v50 = vmax.f32 %v5210_v36, 0.0  ;;  %v5148_v12 = vsel %vm175_vm13, %v5115_v18, 0.0 }
 0x613   :  { %v12144_v47 = vpack.c.bf16 %v5234_v10, %v5233_v43  ;;  %v5241_v21 = vmax.f32 %v5209_v23, 0.0  ;;  %v5181_v0 = vadd.f32 %v5114_v57, %v4816_v52  ;;  %v5180_v16 = vadd.f32 %v5148_v12, %v13478_v55 }
 0x614   :  { %v12146_v14 = vpack.c.bf16 %v5264_v28, %v5263_v46  ;;  %v12148_v39 = vpack.c.bf16 %v5262_v56, %v5261_v30  ;;  %v5092_v38 = vrot.slane %v12076_v62, 4  ;;  %v4848_v62 = vadd.f32 %v12048_v27, %v13479_v33 }
 0x615   :  { %7892 = vmatprep.mubr.msk.bf16.mxu1 %vm1111_vm4, %v12144_v47  ;;  %7932 = vmatprep.mubr.msk.bf16.mxu0 %vm1111_vm4, %v12144_v47  ;;  %v5218_v29 = vadd.f32 %v11930_v11, %v5181_v0  ;;  %v5217_v20 = vadd.f32 %v11930_v11, %v5180_v16 }
 0x616   :  { %7893 = vmatmul.mubr.msk.bf16.vlgmr.msra.gmra.mxu1 %vm1111_vm4, %v11960_v54  ;;  %7933 = vmatmul.mubr.msk.bf16.vlgmr.msra.gmra.mxu0 %vm1111_vm4, %v11960_v54  ;;  %v5107_v9 = vsel %vm2427_vm11, %v5091_v40, %v5092_v38  ;;  %v5106_v51 = vsel %vm2427_vm11, %v5092_v38, %v5093_v4 }
 0x617   :  { %7965 = vmatpush3.bf16.msra.mxu1 %v11843_v49  ;;  %7896 = vmatprep.mubr.msk.bf16.mxu1 %vm1111_vm4, %v11987_v48  ;;  %v5269_v49 = vpack.c.bf16 %v5242_v50, %v5241_v21  ;;  %v5250_v26 = vmax.f32 %v5218_v29, 0.0  ;;  %v5249_v32 = vmax.f32 %v5217_v20, 0.0  ;;  %v5156_v40 = vsel %vm183_vm14, %v5107_v9, 0.0 }
 0x618   :  { %7936 = vmatprep.mubr.msk.bf16.mxu0 %vm1111_vm4, %v11987_v48  ;;  %7966 = vmatprep.subr.bf16.mxu1 %v8091_v24  ;;  %v5189_v25 = vadd.f32 %v5106_v51, %v4848_v62  ;;  %v5188_v6 = vadd.f32 %v5156_v40, %v12026_v37 }
 0x619   :  { %v5273_v63 = vpack.c.bf16 %v5250_v26, %v5249_v32 }
 0x61a   :  { %v5226_v4 = vadd.f32 %v11930_v11, %v5189_v25  ;;  %v5225_v27 = vadd.f32 %v11930_v11, %v5188_v6  ;;  %v8094_v25 = vld [vmem:[#allocation2 + $0x278] sm:$0xff]  }
 0x61b   :  { %7967 = vmatpush3.bf16.msra.mxu1 %v8091_v24  ;;  %v8095_v6 = vld [vmem:[#allocation2 + $0x238] sm:$0xff]   ;;  %7337 = vmatprep.subr.bf16.mxu0 %v8094_v25 }
 0x61c   :  { %7968 = vmatprep.subr.bf16.mxu1 %v8092_v1  ;;  %v5258_v15 = vmax.f32 %v5226_v4, 0.0  ;;  %v5257_v34 = vmax.f32 %v5225_v27, 0.0  ;;  %v8096_v4 = vld [vmem:[#allocation2 + $0x270] sm:$0xff]   ;;  %7338 = vmatpush3.bf16.msra.mxu0 %v8095_v6  ;;  %v8103_v6 = vld [vmem:[#allocation2 + $0x218] sm:$0xff]  }
 0x61d   :  { %7339 = vmatprep.subr.bf16.mxu0 %v8096_v4 }
 0x61e   :  { %7897 = vmatmul.mubr.msk.bf16.gmra.mxu1 %vm1111_vm4, %v11985_v42  ;;  %7937 = vmatmul.mubr.msk.bf16.gmra.mxu0 %vm1111_vm4, %v11985_v42  ;;  %v5277_v45 = vpack.c.bf16 %v5258_v15, %v5257_v34 }
 0x61f   :  { %7900 = vmatprep.mubr.msk.bf16.mxu1 %vm1111_vm4, %v5269_v49  ;;  %7940 = vmatprep.mubr.msk.bf16.mxu0 %vm1111_vm4, %v5269_v49 }
 0x620   :  { %7969 = vmatpush3.bf16.msra.mxu1 %v8092_v1 }
 0x621   :  { %7970 = vmatprep.subr.bf16.mxu1 %v8093_v17 }
 0x624   :  { %7971 = vmatpush3.bf16.msra.mxu1 %v8093_v17 }
 0x626   :  { %7901 = vmatmul.mubr.msk.bf16.gmra.mxu1 %vm1111_vm4, %v12016_v53  ;;  %7941 = vmatmul.mubr.msk.bf16.gmra.mxu0 %vm1111_vm4, %v12016_v53 }
 0x627   :  { %7904 = vmatprep.mubr.msk.bf16.mxu1 %vm1111_vm4, %v12041_v7  ;;  %7944 = vmatprep.mubr.msk.bf16.mxu0 %vm1111_vm4, %v12041_v7 }
 0x62e   :  { %7905 = vmatmul.mubr.msk.bf16.gmra.mxu1 %vm1111_vm4, %v12039_v59  ;;  %7945 = vmatmul.mubr.msk.bf16.gmra.mxu0 %vm1111_vm4, %v12039_v59 }
 0x62f   :  { %7908 = vmatprep.mubr.msk.bf16.mxu1 %vm1111_vm4, %v5273_v63  ;;  %7948 = vmatprep.mubr.msk.bf16.mxu0 %vm1111_vm4, %v5273_v63 }
 0x636   :  { %7909 = vmatmul.mubr.msk.bf16.gmra.mxu1 %vm1111_vm4, %v12068_v35  ;;  %7949 = vmatmul.mubr.msk.bf16.gmra.mxu0 %vm1111_vm4, %v12068_v35 }
 0x637   :  { %7912 = vmatprep.mubr.msk.bf16.mxu1 %vm1111_vm4, %v12095_v44  ;;  %7952 = vmatprep.mubr.msk.bf16.mxu0 %vm1111_vm4, %v12095_v44 }
 0x63e   :  { %7913 = vmatmul.mubr.msk.bf16.gmra.mxu1 %vm1111_vm4, %v12093_v60  ;;  %7953 = vmatmul.mubr.msk.bf16.gmra.mxu0 %vm1111_vm4, %v12093_v60 }
 0x63f   :  { %7916 = vmatprep.mubr.msk.bf16.mxu1 %vm1111_vm4, %v5277_v45  ;;  %7956 = vmatprep.mubr.msk.bf16.mxu0 %vm1111_vm4, %v5277_v45 }
 0x646   :  { %7917 = vmatmul.mubr.msk.bf16.gmra.mxu1 %vm1111_vm4, %v12121_v61  ;;  %7957 = vmatmul.mubr.msk.bf16.gmra.mxu0 %vm1111_vm4, %v12121_v61 }
 0x647   :  { %7920 = vmatprep.mubr.msk.bf16.mxu1 %vm1111_vm4, %v12148_v39  ;;  %7960 = vmatprep.mubr.msk.bf16.mxu0 %vm1111_vm4, %v12148_v39 }
 0x64e   :  { %7921 = vmatmul.mubr.msk.bf16.gmra.mxu1 %vm1111_vm4, %v12146_v14  ;;  %7961 = vmatmul.mubr.msk.bf16.gmra.mxu0 %vm1111_vm4, %v12146_v14 }
 0x64f   :  { %7972 = vmatprep.mubr.msk.bf16.mxu1 %vm1111_vm4, %v12144_v47 }
 0x656   :  { %7973 = vmatmul.mubr.msk.bf16.vlgmr.msra.gmra.mxu1 %vm1111_vm4, %v11960_v54 }
 0x657   :  { %7976 = vmatprep.mubr.msk.bf16.mxu1 %vm1111_vm4, %v11987_v48 }
 0x65e   :  { %7977 = vmatmul.mubr.msk.bf16.gmra.mxu1 %vm1111_vm4, %v11985_v42 }
 0x65f   :  { %7980 = vmatprep.mubr.msk.bf16.mxu1 %vm1111_vm4, %v5269_v49 }
 0x666   :  { %7981 = vmatmul.mubr.msk.bf16.gmra.mxu1 %vm1111_vm4, %v12016_v53 }
 0x667   :  { %7984 = vmatprep.mubr.msk.bf16.mxu1 %vm1111_vm4, %v12041_v7 }
 0x66e   :  { %7985 = vmatmul.mubr.msk.bf16.gmra.mxu1 %vm1111_vm4, %v12039_v59 }
 0x66f   :  { %7988 = vmatprep.mubr.msk.bf16.mxu1 %vm1111_vm4, %v5273_v63 }
 0x676   :  { %7989 = vmatmul.mubr.msk.bf16.gmra.mxu1 %vm1111_vm4, %v12068_v35 }
 0x677   :  { %7992 = vmatprep.mubr.msk.bf16.mxu1 %vm1111_vm4, %v12095_v44 }
 0x67e   :  { %7993 = vmatmul.mubr.msk.bf16.gmra.mxu1 %vm1111_vm4, %v12093_v60 }
 0x67f   :  { %7996 = vmatprep.mubr.msk.bf16.mxu1 %vm1111_vm4, %v5277_v45 }
 0x686   :  { %7997 = vmatmul.mubr.msk.bf16.gmra.mxu1 %vm1111_vm4, %v12121_v61 }
 0x687   :  { %8000 = vmatprep.mubr.msk.bf16.mxu1 %vm1111_vm4, %v12148_v39 }
 0x68e   :  { %8001 = vmatmul.mubr.msk.bf16.gmra.mxu1 %vm1111_vm4, %v12146_v14 }
 0x6d6   :  { %v12272_v11 = vpop.f32.mrf.mxu1  ;;  %v12274_v54 = vpop.f32.mrf.mxu0 }
 0x6d8   :  { %v5403_v42 = vpop.f32.mrf.mxu1  ;;  %v12276_v48 = vpop.f32.mrf.mxu0 }
 0x6d9   :  { %13481 = vst [vmem:[#allocation54_spill] sm:$0xff] %v12276_v48  ;;  %v8108_v48 = vld [vmem:[#allocation2 + $0x240] sm:$0xff]  }
 0x6da   :  { %v7895_v53 = vpop.f32.mrf.mxu1  ;;  %v12278_v37 = vpop.f32.mrf.mxu0 }
 0x6dc   :  { %v12280_v59 = vpop.f32.mrf.mxu1  ;;  %v5623_v7 = vpop.f32.mrf.mxu0 }
 0x6dd   :  { %v12282_v35 = vadd.f32 %v5623_v7, %v5403_v42  ;;  %v8097_v42 = vld [vmem:[#allocation2 + $0x230] sm:$0xff]   ;;  %v8098_v7 = vld [vmem:[#allocation2 + $0x268] sm:$0xff]  }
 0x6de   :  { %v12284_v60 = vpop.f32.mrf.mxu1  ;;  %v12286_v44 = vpop.f32.mrf.mxu0  ;;  %7340 = vmatpush3.bf16.msra.mxu0 %v8097_v42 }
 0x6df   :  { %7341 = vmatprep.subr.bf16.mxu0 %v8098_v7  ;;  %v8105_v7 = vld [vmem:[#allocation2 + $0x210] sm:$0xff]  }
 0x6e0   :  { %v5419_v61 = vpop.f32.mrf.mxu1  ;;  %v5636_v5 = vpop.f32.mrf.mxu0 }
 0x6e1   :  { %v12288_v10 = vadd.f32 %v7895_v53, %v5636_v5 }
 0x6e2   :  { %v7899_v22 = vpop.f32.mrf.mxu1  ;;  %v12290_v43 = vpop.f32.mrf.mxu0 }
 0x6e4   :  { %v12292_v30 = vpop.f32.mrf.mxu1  ;;  %v5639_v28 = vpop.f32.mrf.mxu0 }
 0x6e5   :  { %v12294_v56 = vadd.f32 %v5639_v28, %v5419_v61 }
 0x6e6   :  { %v12296_v46 = vpop.f32.mrf.mxu1  ;;  %v12298_v19 = vpop.f32.mrf.mxu0 }
 0x6e8   :  { %v5435_v47 = vpop.f32.mrf.mxu1  ;;  %v12300_v14 = vpop.f32.mrf.mxu0 }
 0x6ea   :  { %v7903_v24 = vpop.f32.mrf.mxu1  ;;  %v12302_v39 = vpop.f32.mrf.mxu0 }
 0x6ec   :  { %v12304_v36 = vpop.f32.mrf.mxu1  ;;  %v5655_v23 = vpop.f32.mrf.mxu0 }
 0x6ed   :  { %v12306_v1 = vadd.f32 %v5655_v23, %v5435_v47  ;;  %v8099_v47 = vld [vmem:[#allocation2 + $0x228] sm:$0xff]  }
 0x6ee   :  { %v12308_v50 = vpop.f32.mrf.mxu1  ;;  %v12310_v2 = vpop.f32.mrf.mxu0  ;;  %7342 = vmatpush3.bf16.msra.mxu0 %v8099_v47 }
 0x6f0   :  { %v5451_v21 = vpop.f32.mrf.mxu1  ;;  %v5668_v18 = vpop.f32.mrf.mxu0 }
 0x6f1   :  { %v12312_v49 = vadd.f32 %v7903_v24, %v5668_v18  ;;  %v8100_v24 = vld [vmem:[#allocation2 + $0x260] sm:$0xff]  }
 0x6f2   :  { %v7907_v17 = vpop.f32.mrf.mxu1  ;;  %v12314_v57 = vpop.f32.mrf.mxu0  ;;  %7343 = vmatprep.subr.bf16.mxu0 %v8100_v24 }
 0x6f4   :  { %v12316_v13 = vpop.f32.mrf.mxu1  ;;  %v5671_v52 = vpop.f32.mrf.mxu0 }
 0x6f5   :  { %v12318_v12 = vadd.f32 %v5671_v52, %v5451_v21  ;;  %v8101_v52 = vld [vmem:[#allocation2 + $0x220] sm:$0xff]  }
 0x6f6   :  { %v12320_v0 = vpop.f32.mrf.mxu1  ;;  %v12322_v55 = vpop.f32.mrf.mxu0  ;;  %7344 = vmatpush3.bf16.msra.mxu0 %v8101_v52 }
 0x6f8   :  { %v5467_v16 = vpop.f32.mrf.mxu1  ;;  %v12324_v29 = vpop.f32.mrf.mxu0 }
 0x6fa   :  { %v7911_v20 = vpop.f32.mrf.mxu1  ;;  %v12326_v26 = vpop.f32.mrf.mxu0 }
 0x6fc   :  { %v12328_v38 = vpop.f32.mrf.mxu1  ;;  %v5687_v32 = vpop.f32.mrf.mxu0 }
 0x6fd   :  { %v12330_v9 = vadd.f32 %v5687_v32, %v5467_v16 }
 0x6fe   :  { %v12332_v63 = vpop.f32.mrf.mxu1  ;;  %v12334_v51 = vpop.f32.mrf.mxu0 }
 0x700   :  { %v5483_v33 = vpop.f32.mrf.mxu1  ;;  %v5700_v62 = vpop.f32.mrf.mxu0 }
 0x701   :  { %v12336_v40 = vadd.f32 %v7911_v20, %v5700_v62  ;;  %v8102_v20 = vld [vmem:[#allocation2 + $0x258] sm:$0xff]  }
 0x702   :  { %v7915_v27 = vpop.f32.mrf.mxu1  ;;  %v12338_v15 = vpop.f32.mrf.mxu0  ;;  %7345 = vmatprep.subr.bf16.mxu0 %v8102_v20  ;;  %v5632_v20 = vadd.f32 %v12278_v37, %v12272_v11  ;;  %v5648_v11 = vadd.f32 %v12290_v43, %v12284_v60  ;;  %v5645_v37 = vadd.f32 %v12286_v44, %v12292_v30  ;;  %v12404_v44 = vadd.f32 %v12310_v2, %v12316_v13 }
 0x703   :  { %v8104_v27 = vld [vmem:[#allocation2 + $0x250] sm:$0xff]   ;;  %7346 = vmatpush3.bf16.msra.mxu0 %v8103_v6  ;;  %v5629_v6 = vadd.f32 %v12274_v54, %v12280_v59  ;;  %v12386_v54 = vadd.f32 %v12302_v39, %v12296_v46  ;;  %v12410_v39 = vadd.f32 %v12326_v26, %v12320_v0 }
 0x704   :  { %v12340_v34 = vpop.f32.mrf.mxu1  ;;  %v5703_v45 = vpop.f32.mrf.mxu0  ;;  %7347 = vmatprep.subr.bf16.mxu0 %v8104_v27 }
 0x705   :  { %v12342_v53 = vadd.f32 %v5703_v45, %v5483_v33 }
 0x706   :  { %v12344_v61 = vpop.f32.mrf.mxu1  ;;  %v12346_v5 = vpop.f32.mrf.mxu0 }
 0x707   :  { %7348 = vmatpush3.bf16.msra.mxu0 %v8105_v7 }
 0x708   :  { %v5499_v22 = vpop.f32.mrf.mxu1  ;;  %v12348_v28 = vpop.f32.mrf.mxu0 }
 0x70a   :  { %v7919_v23 = vpop.f32.mrf.mxu1  ;;  %v12350_v21 = vpop.f32.mrf.mxu0 }
 0x70c   :  { %v12352_v18 = vpop.f32.mrf.mxu1  ;;  %v5719_v17 = vpop.f32.mrf.mxu0 }
 0x70d   :  { %v12354_v16 = vadd.f32 %v5719_v17, %v5499_v22  ;;  %v8106_v22 = vld [vmem:[#allocation2 + $0x248] sm:$0xff]  }
 0x70e   :  { %v12356_v32 = vpop.f32.mrf.mxu1  ;;  %v12358_v33 = vpop.f32.mrf.mxu0  ;;  %v8107_v17 = vld [vmem:[#allocation2 + $0x208] sm:$0xff]   ;;  %7349 = vmatprep.subr.bf16.mxu0 %v8106_v22 }
 0x70f   :  { %7350 = vmatpush3.bf16.msra.mxu0 %v8107_v17  ;;  %v12378_v22 = vld [vmem:[%s12789_s2 + $0xd] ss:$0 sm:$0xff] }
 0x710   :  { %v12360_v62 = vpop.f32.mrf.mxu1  ;;  %v5732_v25 = vpop.f32.mrf.mxu0  ;;  %7351 = vmatprep.subr.bf16.mxu0 %v8108_v48 }
 0x711   :  { %v12362_v4 = vadd.f32 %v7919_v23, %v5732_v25 }
 0x712   :  { %v7923_v45 = vpop.f32.mrf.mxu1 }
 0x713   :  { %v8109_v45 = vld [vmem:[#allocation2 + $0x200] sm:$0xff]  }
 0x714   :  { %v12364_v42 = vpop.f32.mrf.mxu1  ;;  %7352 = vmatpush3.bf16.msra.mxu0 %v8109_v45 }
 0x716   :  { %v7974_v47 = vpop.f32.mrf.mxu1 }
 0x717   :  { %v5942_v31 = vrot.slane %v7974_v47, 4 }
 0x718   :  { %v12366_v24 = vpop.f32.mrf.mxu1 }
 0x719   :  { %v5940_v27 = vrot.slane %v12366_v24, 4 }
 0x71a   :  { %v7975_v52 = vpop.f32.mrf.mxu1 }
 0x71b   :  { %v5943_v23 = vrot.slane %v7975_v52, 4  ;;  %v12390_v52 = vadd.f32 %v12298_v19, %v12304_v36  ;;  %v12418_v36 = vadd.f32 %v12338_v15, %v12332_v63 }
 0x71c   :  { %v5816_v25 = vpop.f32.mrf.mxu1 }
 0x71d   :  { %v6000_v7 = vsel %vm2427_vm11, %v5942_v31, %v5943_v23  ;;  %v5941_v47 = vrot.slane %v5816_v25, 4  ;;  %v12394_v25 = vadd.f32 %v12314_v57, %v12308_v50  ;;  %v7963_v50 = vpop.f32.mrf.mxu0 }
 0x71e   :  { %v6039_v59 = vadd.f32 %v6000_v7, %v5632_v20  ;;  %v7978_v17 = vpop.f32.mrf.mxu1  ;;  %v13482_v20 = vld [vmem:[#allocation28_spill] sm:$0xff] }
 0x71f   :  { %v6001_v48 = vsel %vm2427_vm11, %v5941_v47, %v5942_v31  ;;  %v6002_v60 = vsel %vm2427_vm11, %v5940_v27, %v5941_v47  ;;  %v12414_v31 = vadd.f32 %v12322_v55, %v12328_v38  ;;  %v12428_v55 = vadd.f32 %v12350_v21, %v12344_v61  ;;  %v5735_v21 = vpop.f32.mrf.mxu0 }
 0x720   :  { %v6076_v43 = vadd.f32 %v12378_v22, %v6039_v59  ;;  %v6037_v30 = vadd.f32 %v6002_v60, %v12282_v35  ;;  %v6038_v46 = vadd.f32 %v6001_v48, %v5629_v6  ;;  %v5829_v19 = vpop.f32.mrf.mxu1  ;;  %v12422_v35 = vadd.f32 %v12334_v51, %v12340_v34  ;;  %v13484_v60 = vld [vmem:[#allocation31_spill] sm:$0xff] }
 0x721   :  { %v5944_v2 = vrot.slane %v5829_v19, 4  ;;  %v5946_v38 = vrot.slane %v7978_v17, 4  ;;  %v13483_v45 = vmax.f32 %v13482_v20, 0.0  ;;  %v12437_v59 = vadd.f32 %v12346_v5, %v12352_v18 }
 0x722   :  { %v6108_v57 = vmax.f32 %v6076_v43, 0.0  ;;  %v6074_v13 = vadd.f32 %v12378_v22, %v6037_v30  ;;  %v6075_v0 = vadd.f32 %v12378_v22, %v6038_v46  ;;  %v7979_v26 = vpop.f32.mrf.mxu1  ;;  %v12440_v61 = vadd.f32 %v7963_v50, %v12356_v32  ;;  %v13486_v46 = vld [vmem:[#allocation21_spill] sm:$0xff] }
 0x723   :  { %v5999_v63 = vsel %vm2427_vm11, %v5943_v23, %v5944_v2  ;;  %v5947_v15 = vrot.slane %v7979_v26, 4  ;;  %v13485_v43 = vmax.f32 %v13484_v60, 0.0  ;;  %v13487_v19 = vmax.f32 %v13486_v46, 0.0 }
 0x724   :  { %v6140_v6 = vadd.f32 %v6108_v57, %v13483_v45  ;;  %v6106_v51 = vmax.f32 %v6074_v13, 0.0  ;;  %v6107_v34 = vmax.f32 %v6075_v0, 0.0  ;;  %v6040_v7 = vadd.f32 %v5999_v63, %v12288_v10  ;;  %v5832_v47 = vpop.f32.mrf.mxu1 }
 0x725   :  { %v5996_v23 = vsel %vm2427_vm11, %v5946_v38, %v5947_v15  ;;  %v5945_v17 = vrot.slane %v5832_v47, 4  ;;  %v12451_v5 = vadd.f32 %v12358_v33, %v12364_v42  ;;  %v12458_v0 = vadd.f32 %v5735_v21, %v12360_v62 }
 0x726   :  { %v6172_v48 = vmax.f32 %v6140_v6, 0.0  ;;  %v6138_v30 = vadd.f32 %v6106_v51, %v13485_v43  ;;  %v6139_v10 = vadd.f32 %v6107_v34, %v13487_v19  ;;  %v6077_v57 = vadd.f32 %v12378_v22, %v6040_v7  ;;  %v7982_v13 = vpop.f32.mrf.mxu1  ;;  %v13488_v34 = vld [vmem:[#allocation18_spill] sm:$0xff]  ;;  %v13490_v19 = vld [vmem:[#allocation45_spill] sm:$0xff] }
 0x727   :  { %v6043_v18 = vadd.f32 %v5996_v23, %v5648_v11  ;;  %v5997_v32 = vsel %vm2427_vm11, %v5945_v17, %v5946_v38  ;;  %v5998_v50 = vsel %vm2427_vm11, %v5944_v2, %v5945_v17  ;;  %v13489_v7 = vmax.f32 %v13488_v34, 0.0 }
 0x728   :  { %v6170_v26 = vmax.f32 %v6138_v30, 0.0  ;;  %v6171_v63 = vmax.f32 %v6139_v10, 0.0  ;;  %v6109_v20 = vmax.f32 %v6077_v57, 0.0  ;;  %v5845_v45 = vpop.f32.mrf.mxu1  ;;  %v6041_v51 = vadd.f32 %v5998_v50, %v12294_v56 }
 0x729   :  { %v6080_v6 = vadd.f32 %v12378_v22, %v6043_v18  ;;  %v6042_v33 = vadd.f32 %v5997_v32, %v5645_v37  ;;  %v5948_v42 = vrot.slane %v5845_v45, 4  ;;  %v6238_v11 = vsel %vm1111_vm4, %v6172_v48, -inf  ;;  %v13492_v45 = vld [vmem:[#allocation26_spill] sm:$0xff] }
 0x72a   :  { %v6237_v38 = vsel %vm1111_vm4, %v6171_v63, -inf  ;;  %v6141_v2 = vadd.f32 %v6109_v20, %v13489_v7  ;;  %v5950_v47 = vrot.slane %v7982_v13, 4  ;;  %v7983_v62 = vpop.f32.mrf.mxu1  ;;  %v6078_v17 = vadd.f32 %v12378_v22, %v6041_v51 }
 0x72b   :  { %v12466_v21 = vmax.f32 %v6237_v38, %v6238_v11  ;;  %v6112_v23 = vmax.f32 %v6080_v6, 0.0  ;;  %v6079_v60 = vadd.f32 %v12378_v22, %v6042_v33  ;;  %v12471_v56 = vsel %vm1111_vm4, %v6170_v26, -inf  ;;  %v13494_v33 = vld [vmem:[#allocation30_spill] sm:$0xff] }
 0x72c   :  { %v6173_v37 = vmax.f32 %v6141_v2, 0.0  ;;  %v5995_v48 = vsel %vm2427_vm11, %v5947_v15, %v5948_v42  ;;  %v5951_v43 = vrot.slane %v7983_v62, 4  ;;  %v5848_v30 = vpop.f32.mrf.mxu1  ;;  %v13491_v10 = vmax.f32 %v13490_v19, 0.0 }
 0x72d   :  { %v6240_v46 = vrot.slane %v12466_v21, 4  ;;  %v6110_v13 = vmax.f32 %v6078_v17, 0.0  ;;  %v6111_v18 = vmax.f32 %v6079_v60, 0.0  ;;  %v6012_v50 = vsel %vm167_vm12, %v5995_v48, 0.0 }
 0x72e   :  { %v6144_v57 = vadd.f32 %v6112_v23, %v13491_v10  ;;  %v6273_v32 = vsel %vm1111_vm4, %v6173_v37, -inf  ;;  %v5992_v26 = vsel %vm2427_vm11, %v5950_v47, %v5951_v43  ;;  %v5949_v63 = vrot.slane %v5848_v30, 4  ;;  %v7986_v20 = vpop.f32.mrf.mxu1 }
 0x72f   :  { %v13493_v6 = vmax.f32 %v13492_v45, 0.0  ;;  %v13495_v11 = vmax.f32 %v13494_v33, 0.0  ;;  %v6044_v34 = vadd.f32 %v6012_v50, %v12300_v14  ;;  %v6047_v7 = vadd.f32 %v5992_v26, %v12386_v54 }
 0x730   :  { %v6176_v15 = vmax.f32 %v6144_v57, 0.0  ;;  %v5993_v41 = vsel %vm2427_vm11, %v5949_v63, %v5950_v47  ;;  %v5994_v2 = vsel %vm2427_vm11, %v5948_v42, %v5949_v63  ;;  %v5954_v62 = vrot.slane %v7986_v20, 4  ;;  %v5861_v23 = vpop.f32.mrf.mxu1 }
 0x731   :  { %v6142_v51 = vadd.f32 %v6110_v13, %v13493_v6  ;;  %v6143_v38 = vadd.f32 %v6111_v18, %v13495_v11  ;;  %v6081_v48 = vadd.f32 %v12378_v22, %v6044_v34  ;;  %v6084_v30 = vadd.f32 %v12378_v22, %v6047_v7  ;;  %v13498_v11 = vld [vmem:[#allocation23_spill] sm:$0xff] }
 0x732   :  { %v6310_v17 = vsel %vm1111_vm4, %v6176_v15, -inf  ;;  %v6045_v14 = vadd.f32 %v5994_v2, %v12306_v1  ;;  %v6046_v54 = vadd.f32 %v5993_v41, %v12390_v52  ;;  %v5952_v19 = vrot.slane %v5861_v23, 4  ;;  %v12498_v10 = vpop.f32.mrf.mxu1  ;;  %v13496_v1 = vld [vmem:[#allocation29_spill] sm:$0xff] }
 0x733   :  { %v6174_v60 = vmax.f32 %v6142_v51, 0.0  ;;  %v6175_v37 = vmax.f32 %v6143_v38, 0.0  ;;  %v6113_v57 = vmax.f32 %v6081_v48, 0.0  ;;  %v5955_v13 = vrot.slane %v12498_v10, 4  ;;  %v13500_v48 = vld [vmem:[#allocation16_spill] sm:$0xff] }
 0x734   :  { %v6116_v26 = vmax.f32 %v6084_v30, 0.0  ;;  %v6082_v63 = vadd.f32 %v12378_v22, %v6045_v14  ;;  %v5864_v20 = vpop.f32.mrf.mxu1  ;;  %v13497_v15 = vmax.f32 %v13496_v1, 0.0  ;;  %v6083_v45 = vadd.f32 %v12378_v22, %v6046_v54 }
 0x735   :  { %v6274_v47 = vsel %vm1111_vm4, %v6174_v60, -inf  ;;  %v6309_v42 = vsel %vm1111_vm4, %v6175_v37, -inf  ;;  %v5991_v6 = vsel %vm2427_vm11, %v5951_v43, %v5952_v19  ;;  %v5988_v51 = vsel %vm2427_vm11, %v5954_v62, %v5955_v13 }
 0x736   :  { %v6275_v18 = vmax.f32 %v6273_v32, %v6274_v47  ;;  %v12503_v50 = vmax.f32 %v6309_v42, %v6310_v17  ;;  %v6145_v52 = vadd.f32 %v6113_v57, %v13497_v15  ;;  %v13499_v38 = vmax.f32 %v13498_v11, 0.0  ;;  %v12516_v41 = vpop.f32.mrf.mxu1  ;;  %v13502_v42 = vld [vmem:[#allocation36_spill] sm:$0xff] }
 0x737   :  { %v6114_v7 = vmax.f32 %v6082_v63, 0.0  ;;  %v6115_v23 = vmax.f32 %v6083_v45, 0.0  ;;  %v6048_v17 = vadd.f32 %v5991_v6, %v12312_v49  ;;  %v6051_v60 = vadd.f32 %v5988_v51, %v12394_v25 }
 0x738   :  { %v6276_v33 = vrot.slane %v6275_v18, 4  ;;  %v6312_v32 = vrot.slane %v12503_v50, 4  ;;  %v6148_v34 = vadd.f32 %v6116_v26, %v13499_v38  ;;  %v6177_v2 = vmax.f32 %v6145_v52, 0.0  ;;  %v5877_v10 = vpop.f32.mrf.mxu1 }
 0x739   :  { %v13501_v30 = vmax.f32 %v13500_v48, 0.0  ;;  %v5953_v54 = vrot.slane %v5864_v20, 4  ;;  %v13503_v57 = vmax.f32 %v13502_v42, 0.0  ;;  %v6085_v63 = vadd.f32 %v12378_v22, %v6048_v17 }
 0x73a   :  { %v12520_v37 = vmax.f32 %v6275_v18, %v6276_v33  ;;  %v6180_v43 = vmax.f32 %v6148_v34, 0.0  ;;  %v6210_v47 = vsel %vm1111_vm4, %v6177_v2, -inf  ;;  %v6088_v1 = vadd.f32 %v12378_v22, %v6051_v60  ;;  %v12533_v52 = vpop.f32.mrf.mxu1 }
 0x73b   :  { %v6146_v14 = vadd.f32 %v6114_v7, %v13501_v30  ;;  %v6147_v26 = vadd.f32 %v6115_v23, %v13503_v57  ;;  %v5989_v15 = vsel %vm2427_vm11, %v5953_v54, %v5954_v62  ;;  %v6117_v45 = vmax.f32 %v6085_v63, 0.0  ;;  %v13504_v23 = vld [vmem:[#allocation48_spill] sm:$0xff] }
 0x73c   :  { %v6278_v49 = vrot.slane %v12520_v37, 2  ;;  %v6247_v25 = vsel %vm1111_vm4, %v6180_v43, -inf  ;;  %v6120_v6 = vmax.f32 %v6088_v1, 0.0  ;;  %v5990_v51 = vsel %vm2427_vm11, %v5952_v19, %v5953_v54  ;;  %v5880_v7 = vpop.f32.mrf.mxu1  ;;  %v13506_v43 = vld [vmem:[#allocation27_spill] sm:$0xff] }
 0x73d   :  { %v6178_v18 = vmax.f32 %v6146_v14, 0.0  ;;  %v6179_v20 = vmax.f32 %v6147_v26, 0.0  ;;  %v6049_v11 = vadd.f32 %v5990_v51, %v12318_v12  ;;  %v6050_v38 = vadd.f32 %v5989_v15, %v12404_v44 }
 0x73e   :  { %v5958_v34 = vrot.slane %v12516_v41, 4  ;;  %v13505_v17 = vmax.f32 %v13504_v23, 0.0  ;;  %v13507_v48 = vmax.f32 %v13506_v43, 0.0  ;;  %v5956_v54 = vrot.slane %v5877_v10, 4  ;;  %v12550_v44 = vpop.f32.mrf.mxu1 }
 0x73f   :  { %v6211_v33 = vsel %vm1111_vm4, %v6178_v18, -inf  ;;  %v6246_v62 = vsel %vm1111_vm4, %v6179_v20, -inf  ;;  %v6086_v19 = vadd.f32 %v12378_v22, %v6049_v11  ;;  %v6087_v12 = vadd.f32 %v12378_v22, %v6050_v38 }
 0x740   :  { %v6212_v2 = vmax.f32 %v6210_v47, %v6211_v33  ;;  %v6149_v60 = vadd.f32 %v6117_v45, %v13505_v17  ;;  %v6152_v30 = vadd.f32 %v6120_v6, %v13507_v48  ;;  %v12546_v14 = vmax.f32 %v6246_v62, %v6247_v25  ;;  %v12556_v18 = vpop.f32.mrf.mxu1  ;;  %v13508_v6 = vld [vmem:[#allocation19_spill] sm:$0xff] }
 0x741   :  { %v5959_v57 = vrot.slane %v12533_v52, 4  ;;  %v6118_v63 = vmax.f32 %v6086_v19, 0.0  ;;  %v6119_v1 = vmax.f32 %v6087_v12, 0.0  ;;  %v5987_v25 = vsel %vm2427_vm11, %v5955_v13, %v5956_v54  ;;  %v13510_v33 = vld [vmem:[#allocation39_spill] sm:$0xff] }
 0x742   :  { %v6213_v41 = vrot.slane %v6212_v2, 4  ;;  %v6181_v42 = vmax.f32 %v6149_v60, 0.0  ;;  %v6184_v47 = vmax.f32 %v6152_v30, 0.0  ;;  %v6249_v26 = vrot.slane %v12546_v14, 4  ;;  %v12569_v23 = vpop.f32.mrf.mxu1 }
 0x743   :  { %v6020_v45 = vsel %vm175_vm13, %v5987_v25, 0.0  ;;  %v13509_v51 = vmax.f32 %v13508_v6, 0.0  ;;  %v13511_v11 = vmax.f32 %v13510_v33, 0.0  ;;  %v5984_v13 = vsel %vm2427_vm11, %v5958_v34, %v5959_v57  ;;  %v13512_v6 = vld [vmem:[#allocation47_spill] sm:$0xff] }
 0x744   :  { %v6214_v15 = vmax.f32 %v6212_v2, %v6213_v41  ;;  %v6282_v20 = vsel %vm1111_vm4, %v6181_v42, -inf  ;;  %v6319_v10 = vsel %vm1111_vm4, %v6184_v47, -inf  ;;  %v6052_v62 = vadd.f32 %v6020_v45, %v12324_v29  ;;  %v5896_v12 = vpop.f32.mrf.mxu1 }
 0x745   :  { %v6150_v52 = vadd.f32 %v6118_v63, %v13509_v51  ;;  %v6151_v38 = vadd.f32 %v6119_v1, %v13511_v11  ;;  %v6055_v17 = vadd.f32 %v5984_v13, %v12410_v39  ;;  %v5957_v60 = vrot.slane %v5880_v7, 4 }
 0x746   :  { %v6215_v2 = vrot.slane %v6214_v15, 2  ;;  %v5962_v8 = vrot.slane %v12550_v44, 4  ;;  %v6089_v30 = vadd.f32 %v12378_v22, %v6052_v62  ;;  %v5960_v19 = vrot.slane %v12556_v18, 4  ;;  %v12585_v1 = vpop.f32.mrf.mxu1 }
 0x747   :  { %v6182_v43 = vmax.f32 %v6150_v52, 0.0  ;;  %v6183_v48 = vmax.f32 %v6151_v38, 0.0  ;;  %v6092_v29 = vadd.f32 %v12378_v22, %v6055_v17  ;;  %v5985_v42 = vsel %vm2427_vm11, %v5957_v60, %v5958_v34 }
 0x748   :  { %v12575_v41 = vmax.f32 %v6214_v15, %v6215_v2  ;;  %v5986_v39 = vsel %vm2427_vm11, %v5956_v54, %v5957_v60  ;;  %v6121_v47 = vmax.f32 %v6089_v30, 0.0  ;;  %v6054_v45 = vadd.f32 %v5985_v42, %v12414_v31  ;;  %v12596_v11 = vpop.f32.mrf.mxu1  ;;  %v13516_v42 = vld [vmem:[#allocation53_spill] sm:$0xff] }
 0x749   :  { %v6283_v7 = vsel %vm1111_vm4, %v6182_v43, -inf  ;;  %v6318_v44 = vsel %vm1111_vm4, %v6183_v48, -inf  ;;  %v6053_v63 = vadd.f32 %v5986_v39, %v12330_v9  ;;  %v6124_v15 = vmax.f32 %v6092_v29, 0.0 }
 0x74a   :  { %v6284_v25 = vmax.f32 %v6282_v20, %v6283_v7  ;;  %v12587_v18 = vmax.f32 %v6318_v44, %v6319_v10  ;;  %v13513_v34 = vmax.f32 %v13512_v6, 0.0  ;;  %v5983_v52 = vsel %vm2427_vm11, %v5959_v57, %v5960_v19  ;;  %v13514_v10 = vld [vmem:[#allocation37_spill] sm:$0xff]  ;;  %v12605_v57 = vpop.f32.mrf.mxu1 }
 0x74b   :  { %v6090_v54 = vadd.f32 %v12378_v22, %v6053_v63  ;;  %v5963_v33 = vrot.slane %v12569_v23, 4  ;;  %v13515_v38 = vmax.f32 %v13514_v10, 0.0  ;;  %v6091_v31 = vadd.f32 %v12378_v22, %v6054_v45  ;;  %v13518_v45 = vld [vmem:[#allocation50_spill] sm:$0xff] }
 0x74c   :  { %v6153_v51 = vadd.f32 %v6121_v47, %v13513_v34  ;;  %v6285_v9 = vrot.slane %v6284_v25, 4  ;;  %v6321_v20 = vrot.slane %v12587_v18, 4  ;;  %v6056_v17 = vadd.f32 %v5983_v52, %v12336_v40  ;;  %v5912_v40 = vpop.f32.mrf.mxu1 }
 0x74d   :  { %v6156_v62 = vadd.f32 %v6124_v15, %v13515_v38  ;;  %v6122_v2 = vmax.f32 %v6090_v54, 0.0  ;;  %v5980_v60 = vsel %vm2427_vm11, %v5962_v8, %v5963_v33  ;;  %v6123_v48 = vmax.f32 %v6091_v31, 0.0 }
 0x74e   :  { %v6185_v13 = vmax.f32 %v6153_v51, 0.0  ;;  %v12607_v23 = vmax.f32 %v6284_v25, %v6285_v9  ;;  %v6059_v30 = vadd.f32 %v5980_v60, %v12418_v36  ;;  %v13517_v39 = vmax.f32 %v13516_v42, 0.0  ;;  %v12623_v9 = vpop.f32.mrf.mxu1 }
 0x74f   :  { %v6188_v43 = vmax.f32 %v6156_v62, 0.0  ;;  %v6093_v44 = vadd.f32 %v12378_v22, %v6056_v17  ;;  %v5961_v47 = vrot.slane %v5896_v12, 4  ;;  %v13519_v25 = vmax.f32 %v13518_v45, 0.0 }
 0x750   :  { %v6219_v29 = vsel %vm1111_vm4, %v6185_v13, -inf  ;;  %v6154_v7 = vadd.f32 %v6122_v2, %v13517_v39  ;;  %v6287_v63 = vrot.slane %v12607_v23, 2  ;;  %v6096_v34 = vadd.f32 %v12378_v22, %v6059_v30  ;;  %v13520_v13 = vld [vmem:[#allocation44_spill] sm:$0xff] }
 0x751   :  { %v6256_v15 = vsel %vm1111_vm4, %v6188_v43, -inf  ;;  %v6155_v6 = vadd.f32 %v6123_v48, %v13519_v25  ;;  %v6125_v36 = vmax.f32 %v6093_v44, 0.0  ;;  %v5981_v54 = vsel %vm2427_vm11, %v5961_v47, %v5962_v8  ;;  %v13522_v48 = vld [vmem:[#allocation46_spill] sm:$0xff] }
 0x752   :  { %v6186_v51 = vmax.f32 %v6154_v7, 0.0  ;;  %v5982_v52 = vsel %vm2427_vm11, %v5960_v19, %v5961_v47  ;;  %v6128_v10 = vmax.f32 %v6096_v34, 0.0  ;;  %v6058_v62 = vadd.f32 %v5981_v54, %v12422_v35  ;;  %v12641_v47 = vpop.f32.mrf.mxu1 }
 0x753   :  { %v6187_v12 = vmax.f32 %v6155_v6, 0.0  ;;  %v6057_v38 = vadd.f32 %v5982_v52, %v12342_v53  ;;  %v13521_v2 = vmax.f32 %v13520_v13, 0.0  ;;  %v5966_v60 = vrot.slane %v12585_v1, 4 }
 0x754   :  { %v6220_v31 = vsel %vm1111_vm4, %v6186_v51, -inf  ;;  %v5964_v8 = vrot.slane %v12596_v11, 4  ;;  %v13523_v30 = vmax.f32 %v13522_v48, 0.0  ;;  %v6095_v7 = vadd.f32 %v12378_v22, %v6058_v62  ;;  %v8003_v13 = vpop.f32.mrf.mxu1 }
 0x755   :  { %v6157_v17 = vadd.f32 %v6125_v36, %v13521_v2  ;;  %v6221_v43 = vmax.f32 %v6219_v29, %v6220_v31  ;;  %v6255_v19 = vsel %vm1111_vm4, %v6187_v12, -inf  ;;  %v6094_v39 = vadd.f32 %v12378_v22, %v6057_v38 }
 0x756   :  { %v6160_v42 = vadd.f32 %v6128_v10, %v13523_v30  ;;  %v12636_v53 = vmax.f32 %v6255_v19, %v6256_v15  ;;  %v5979_v44 = vsel %vm2427_vm11, %v5963_v33, %v5964_v8  ;;  %v6127_v6 = vmax.f32 %v6095_v7, 0.0  ;;  %v13524_v33 = vld [vmem:[#allocation38_spill] sm:$0xff] }
 0x757   :  { %v6189_v35 = vmax.f32 %v6157_v17, 0.0  ;;  %v6222_v1 = vrot.slane %v6221_v43, 4  ;;  %v6126_v29 = vmax.f32 %v6094_v39, 0.0  ;;  %v6028_v45 = vsel %vm183_vm14, %v5979_v44, 0.0  ;;  %v13526_v10 = vld [vmem:[#allocation42_spill] sm:$0xff] }
 0x758   :  { %v6192_v11 = vmax.f32 %v6160_v42, 0.0  ;;  %v6060_v15 = vadd.f32 %v6028_v45, %v12348_v28  ;;  %v5967_v34 = vrot.slane %v12605_v57, 4  ;;  %v13525_v54 = vmax.f32 %v13524_v33, 0.0 }
 0x759   :  { %v6291_v25 = vsel %vm1111_vm4, %v6189_v35, -inf  ;;  %v12648_v51 = vmax.f32 %v6221_v43, %v6222_v1  ;;  %v5965_v12 = vrot.slane %v5912_v40, 4  ;;  %v13527_v38 = vmax.f32 %v13526_v10, 0.0  ;;  %v5928_v10 = vpop.f32.mrf.mxu1 }
 0x75a   :  { %v6328_v36 = vsel %vm1111_vm4, %v6192_v11, -inf  ;;  %v6158_v52 = vadd.f32 %v6126_v29, %v13525_v54  ;;  %v6097_v3 = vadd.f32 %v12378_v22, %v6060_v15  ;;  %v5976_v31 = vsel %vm2427_vm11, %v5966_v60, %v5967_v34  ;;  %v13530_v15 = vld [vmem:[#allocation33_spill] sm:$0xff] }
 0x75b   :  { %v6159_v62 = vadd.f32 %v6127_v6, %v13527_v38  ;;  %v5970_v28 = vrot.slane %v12623_v9, 4  ;;  %v6063_v2 = vadd.f32 %v5976_v31, %v12428_v55  ;;  %v5977_v17 = vsel %vm2427_vm11, %v5965_v12, %v5966_v60  ;;  %v13528_v60 = vld [vmem:[#allocation41_spill] sm:$0xff] }
 0x75c   :  { %v6190_v57 = vmax.f32 %v6158_v52, 0.0  ;;  %v5978_v40 = vsel %vm2427_vm11, %v5964_v8, %v5965_v12  ;;  %v6129_v19 = vmax.f32 %v6097_v3, 0.0  ;;  %v6062_v30 = vadd.f32 %v5977_v17, %v12437_v59 }
 0x75d   :  { %v6191_v43 = vmax.f32 %v6159_v62, 0.0  ;;  %v6061_v48 = vadd.f32 %v5978_v40, %v12354_v16  ;;  %v6100_v9 = vadd.f32 %v12378_v22, %v6063_v2  ;;  %v5968_v39 = vrot.slane %v12641_v47, 4  ;;  %v13532_v62 = vld [vmem:[#allocation49_spill] sm:$0xff] }
 0x75e   :  { %v6292_v42 = vsel %vm1111_vm4, %v6190_v57, -inf  ;;  %v5971_v35 = vrot.slane %v8003_v13, 4  ;;  %v13529_v44 = vmax.f32 %v13528_v60, 0.0  ;;  %v6099_v59 = vadd.f32 %v12378_v22, %v6062_v30  ;;  %v13534_v57 = vld [vmem:[#allocation40_spill] sm:$0xff] }
 0x75f   :  { %v6293_v55 = vmax.f32 %v6291_v25, %v6292_v42  ;;  %v6327_v7 = vsel %vm1111_vm4, %v6191_v43, -inf  ;;  %v6098_v8 = vadd.f32 %v12378_v22, %v6061_v48  ;;  %v6132_v16 = vmax.f32 %v6100_v9, 0.0  ;;  %v13537_v48 = vld [vmem:[#allocation54_spill] sm:$0xff] }
 0x760   :  { %v6161_v1 = vadd.f32 %v6129_v19, %v13529_v44  ;;  %v12673_v11 = vmax.f32 %v6327_v7, %v6328_v36  ;;  %v5975_v29 = vsel %vm2427_vm11, %v5967_v34, %v5968_v39  ;;  %v13531_v33 = vmax.f32 %v13530_v15, 0.0  ;;  %v13538_v44 = vld [vmem:[#allocation51_spill] sm:$0xff] }
 0x761   :  { %v6294_v45 = vrot.slane %v6293_v55, 4  ;;  %v6130_v47 = vmax.f32 %v6098_v8, 0.0  ;;  %v6064_v25 = vadd.f32 %v5975_v29, %v12362_v4  ;;  %v6131_v52 = vmax.f32 %v6099_v59, 0.0 }
 0x762   :  { %v6193_v6 = vmax.f32 %v6161_v1, 0.0  ;;  %v6164_v54 = vadd.f32 %v6132_v16, %v13531_v33  ;;  %v5972_v12 = vsel %vm2427_vm11, %v5970_v28, %v5971_v35  ;;  %v6003_v36 = vsel %vm2427_vm11, %v5971_v35, %v5940_v27  ;;  %v13540_v33 = vld [vmem:[#allocation13_spill] sm:$0xff] }
 0x763   :  { %v12687_v38 = vmax.f32 %v6293_v55, %v6294_v45  ;;  %v13533_v3 = vmax.f32 %v13532_v62, 0.0  ;;  %v6101_v31 = vadd.f32 %v12378_v22, %v6064_v25  ;;  %v13535_v2 = vmax.f32 %v13534_v57, 0.0 }
 0x764   :  { %v6228_v34 = vsel %vm1111_vm4, %v6193_v6, -inf  ;;  %v6196_v13 = vmax.f32 %v6164_v54, 0.0  ;;  %v6004_v24 = vsel %vm159_vm15, %v6003_v36, 0.0  ;;  %v6067_v43 = vadd.f32 %v5972_v12, %v12440_v61 }
 0x765   :  { %v6162_v4 = vadd.f32 %v6130_v47, %v13533_v3  ;;  %v6163_v17 = vadd.f32 %v6131_v52, %v13535_v2  ;;  %v6133_v19 = vmax.f32 %v6101_v31, 0.0  ;;  %v6036_v30 = vadd.f32 %v6004_v24, %v13537_v48 }
 0x766   :  { %v5969_v42 = vrot.slane %v5928_v10, 4  ;;  %v6265_v9 = vsel %vm1111_vm4, %v6196_v13, -inf  ;;  %v6104_v55 = vadd.f32 %v12378_v22, %v6067_v43  ;;  %v6241_v7 = vmax.f32 %v12466_v21, %v6240_v46  ;;  %v13544_v43 = vld [vmem:[#allocation52_spill] sm:$0xff] }
 0x767   :  { %v6194_v27 = vmax.f32 %v6162_v4, 0.0  ;;  %v6195_v35 = vmax.f32 %v6163_v17, 0.0  ;;  %v13539_v1 = vmax.f32 %v13538_v44, 0.0  ;;  %v6073_v61 = vadd.f32 %v12378_v22, %v6036_v30 }
 0x768   :  { %v5973_v16 = vsel %vm2427_vm11, %v5969_v42, %v5970_v28  ;;  %v6136_v45 = vmax.f32 %v6104_v55, 0.0  ;;  %v5974_v6 = vsel %vm2427_vm11, %v5968_v39, %v5969_v42  ;;  %v13541_v54 = vmax.f32 %v13540_v33, 0.0 }
 0x769   :  { %v6229_v60 = vsel %vm1111_vm4, %v6194_v27, -inf  ;;  %v6165_v8 = vadd.f32 %v6133_v19, %v13539_v1  ;;  %v6264_v29 = vsel %vm1111_vm4, %v6195_v35, -inf  ;;  %v6105_v21 = vmax.f32 %v6073_v61, 0.0  ;;  %v13546_v19 = vld [vmem:[#allocation55_spill] sm:$0xff] }
 0x76a   :  { %v12710_v59 = vmax.f32 %v6228_v34, %v6229_v60  ;;  %v6065_v46 = vadd.f32 %v5974_v6, %v12458_v0  ;;  %v6066_v25 = vadd.f32 %v5973_v16, %v12451_v5  ;;  %v6168_v52 = vadd.f32 %v6136_v45, %v13541_v54 }
 0x76b   :  { %v6197_v47 = vmax.f32 %v6165_v8, 0.0  ;;  %v6242_v28 = vrot.slane %v6241_v7, 2  ;;  %v6250_v12 = vmax.f32 %v12546_v14, %v6249_v26  ;;  %v13543_v39 = vmax.f32 %v13542_v58, 0.0 }
 0x76c   :  { %v6231_v15 = vrot.slane %v12710_v59, 4  ;;  %v6102_v34 = vadd.f32 %v12378_v22, %v6065_v46  ;;  %v6103_v0 = vadd.f32 %v12378_v22, %v6066_v25  ;;  %v6200_v5 = vmax.f32 %v6168_v52, 0.0 }
 0x76d   :  { %v6300_v36 = vsel %vm1111_vm4, %v6197_v47, -inf  ;;  %v6137_v10 = vadd.f32 %v6105_v21, %v13543_v39  ;;  %v6243_v62 = vmax.f32 %v6241_v7, %v6242_v28  ;;  %v6251_v3 = vrot.slane %v6250_v12, 2 }
 0x76e   :  { %v6258_v4 = vrot.slane %v12636_v53, 4  ;;  %v6134_v13 = vmax.f32 %v6102_v34, 0.0  ;;  %v6135_v57 = vmax.f32 %v6103_v0, 0.0  ;;  %v6266_v2 = vmax.f32 %v6264_v29, %v6265_v9 }
 0x76f   :  { %v6169_v31 = vmax.f32 %v6137_v10, 0.0  ;;  %v6337_v14 = vsel %vm1111_vm4, %v6200_v5, -inf  ;;  %v6244_v26 = vrot.slane %v6243_v62, 1  ;;  %v6252_v17 = vmax.f32 %v6250_v12, %v6251_v3 }
 0x770   :  { %v6259_v40 = vmax.f32 %v12636_v53, %v6258_v4  ;;  %v13545_v22 = vmax.f32 %v13544_v43, 0.0  ;;  %v13547_v48 = vmax.f32 %v13546_v19, 0.0  ;;  %v6267_v42 = vrot.slane %v6266_v2, 4 }
 0x771   :  { %v6201_v24 = vsel %vm1111_vm4, %v6169_v31, -inf  ;;  %v6245_v9 = vmax.f32 %v6243_v62, %v6244_v26  ;;  %v6253_v55 = vrot.slane %v6252_v17, 1  ;;  %v6313_v53 = vmax.f32 %v12503_v50, %v6312_v32 }
 0x772   :  { %v6166_v27 = vadd.f32 %v6134_v13, %v13545_v22  ;;  %v6167_v30 = vadd.f32 %v6135_v57, %v13547_v48  ;;  %v6203_v35 = vmax.f32 %v6201_v24, %v12471_v56  ;;  %v6260_v7 = vrot.slane %v6259_v40, 2 }
 0x773   :  { %v6268_v1 = vmax.f32 %v6266_v2, %v6267_v42  ;;  %v6254_v61 = vmax.f32 %v6252_v17, %v6253_v55  ;;  %v6322_v29 = vmax.f32 %v12587_v18, %v6321_v20  ;;  %v6314_v47 = vrot.slane %v6313_v53, 2 }
 0x774   :  { %v6198_v60 = vmax.f32 %v6166_v27, 0.0  ;;  %v6199_v44 = vmax.f32 %v6167_v30, 0.0  ;;  %v6204_v8 = vrot.slane %v6203_v35, 4  ;;  %v6261_v16 = vmax.f32 %v6259_v40, %v6260_v7 }
 0x775   :  { %v6269_v6 = vrot.slane %v6268_v1, 2  ;;  %v6323_v33 = vrot.slane %v6322_v29, 2  ;;  %v6315_v52 = vmax.f32 %v6313_v53, %v6314_v47  ;;  %v6330_v50 = vrot.slane %v12673_v11, 4 }
 0x776   :  { %v6301_v56 = vsel %vm1111_vm4, %v6198_v60, -inf  ;;  %v6336_v45 = vsel %vm1111_vm4, %v6199_v44, -inf  ;;  %v6205_v21 = vmax.f32 %v6203_v35, %v6204_v8  ;;  %v6262_v25 = vrot.slane %v6261_v16, 1 }
 0x777   :  { %v6302_v46 = vmax.f32 %v6300_v36, %v6301_v56  ;;  %v6270_v54 = vmax.f32 %v6268_v1, %v6269_v6  ;;  %v6338_v32 = vmax.f32 %v6336_v45, %v6337_v14  ;;  %v6324_v39 = vmax.f32 %v6322_v29, %v6323_v33 }
 0x778   :  { %v6206_v28 = vrot.slane %v6205_v21, 2  ;;  %v6263_v58 = vmax.f32 %v6261_v16, %v6262_v25  ;;  %v6316_v20 = vrot.slane %v6315_v52, 1  ;;  %v6331_v10 = vmax.f32 %v12673_v11, %v6330_v50 }
 0x779   :  { %v6303_v12 = vrot.slane %v6302_v46, 4  ;;  %v6271_v18 = vrot.slane %v6270_v54, 1  ;;  %v6339_v34 = vrot.slane %v6338_v32, 4  ;;  %v6325_v0 = vrot.slane %v6324_v39, 1 }
 0x77a   :  { %v6360_v5 = vsel %vm6349_vm0, %v6254_v61, %v6245_v9  ;;  %v6207_v36 = vmax.f32 %v6205_v21, %v6206_v28  ;;  %v6217_v62 = vrot.slane %v12575_v41, 1  ;;  %v6317_v4 = vmax.f32 %v6315_v52, %v6316_v20 }
 0x77b   :  { %v6272_v3 = vmax.f32 %v6270_v54, %v6271_v18  ;;  %v6332_v31 = vrot.slane %v6331_v10, 2  ;;  %v6340_v13 = vmax.f32 %v6338_v32, %v6339_v34  ;;  %v6326_v57 = vmax.f32 %v6324_v39, %v6325_v0  ;;  %v8111_v54 = vld [vmem:[#allocation2 + $0x290] sm:$0xff]   ;;  %v8113_v39 = vld [vmem:[#allocation2 + $0x280] sm:$0xff]  }
 0x77c   :  { %v6361_v2 = vsel %vm6351_vm1, %v6263_v58, %v6360_v5  ;;  %v6208_v14 = vrot.slane %v6207_v36, 1  ;;  %v6218_v26 = vmax.f32 %v12575_v41, %v6217_v62  ;;  %v6224_v24 = vrot.slane %v12648_v51, 2 }
 0x77d   :  { %v6333_v17 = vmax.f32 %v6331_v10, %v6332_v31  ;;  %v6341_v40 = vrot.slane %v6340_v13, 2  ;;  %v6362_v11 = vsel %vm6353_vm2, %v6272_v3, %v6361_v2  ;;  %v6378_v43 = vsel %vm6349_vm0, %v6326_v57, %v6317_v4  ;;  %v6994_v3 = vld [vmem:[%s12789_s2 + $0xe] ss:$0 sm:$0xff] }
 0x77e   :  { %v6209_v22 = vmax.f32 %v6207_v36, %v6208_v14  ;;  %v6232_v27 = vmax.f32 %v12710_v59, %v6231_v15  ;;  %v6279_v19 = vmax.f32 %v12520_v37, %v6278_v49  ;;  %v6225_v41 = vmax.f32 %v12648_v51, %v6224_v24  ;;  %v8110_v51 = vld [vmem:[#allocation2 + $0x298] sm:$0xff]  }
 0x77f   :  { %v6334_v48 = vrot.slane %v6333_v17, 1  ;;  %v6342_v30 = vmax.f32 %v6340_v13, %v6341_v40  ;;  %v6288_v42 = vmax.f32 %v12607_v23, %v6287_v63  ;;  %v6296_v7 = vrot.slane %v12687_v38, 2 }
 0x780   :  { %v6233_v35 = vrot.slane %v6232_v27, 2  ;;  %v6350_v9 = vsel %vm6349_vm0, %v6218_v26, %v6209_v22  ;;  %v6280_v55 = vrot.slane %v6279_v19, 1  ;;  %v6226_v15 = vrot.slane %v6225_v41, 1 }
 0x781   :  { %v6335_v60 = vmax.f32 %v6333_v17, %v6334_v48  ;;  %v6343_v59 = vrot.slane %v6342_v30, 1  ;;  %v6289_v44 = vrot.slane %v6288_v42, 1  ;;  %v6297_v49 = vmax.f32 %v12687_v38, %v6296_v7  ;;  %v7011_v17 = vld [vmem:[%s12789_s2 + $0xf] ss:$0 sm:$0xff] }
 0x782   :  { %v6234_v1 = vmax.f32 %v6232_v27, %v6233_v35  ;;  %v6281_v37 = vmax.f32 %v6279_v19, %v6280_v55  ;;  %v6304_v53 = vmax.f32 %v6302_v46, %v6303_v12  ;;  %v6227_v23 = vmax.f32 %v6225_v41, %v6226_v15  ;;  %v8112_v12 = vld [vmem:[#allocation2 + $0x288] sm:$0xff]  }
 0x783   :  { %v6344_v8 = vmax.f32 %v6342_v30, %v6343_v59  ;;  %v6379_v61 = vsel %vm6351_vm1, %v6335_v60, %v6378_v43  ;;  %v6290_v63 = vmax.f32 %v6288_v42, %v6289_v44  ;;  %v6298_v29 = vrot.slane %v6297_v49, 1 }
 0x784   :  { %v6235_v16 = vrot.slane %v6234_v1, 1  ;;  %v6305_v56 = vrot.slane %v6304_v53, 2  ;;  %v6352_v6 = vsel %vm6351_vm1, %v6227_v23, %v6350_v9  ;;  %v8162_v21 = vmov 0.0  }
 0x785   :  { %v6380_v45 = vsel %vm6353_vm2, %v6344_v8, %v6379_v61  ;;  %v6370_v47 = vsel %vm6349_vm0, %v6290_v63, %v6281_v37  ;;  %8004 = vmatprep.subr.bf16.mxu1 %v8162_v21  ;;  %v6299_v46 = vmax.f32 %v6297_v49, %v6298_v29  ;;  %8012 = vmatprep.mubr.msk.bf16.mxu1 %vm8163_vm3, %v8162_v21 }
 0x786   :  { %v8025_v25 = vpack.i.bf16 %v6362_v11, %v6380_v45  ;;  %v6236_v38 = vmax.f32 %v6234_v1, %v6235_v16  ;;  %v6306_v33 = vmax.f32 %v6304_v53, %v6305_v56  ;;  %8005 = vmatpush3.bf16.msra.mxu1 %v8110_v51 }
 0x787   :  { %8006 = vmatprep.subr.bf16.mxu1 %v8162_v21  ;;  %v6371_v32 = vsel %vm6351_vm1, %v6299_v46, %v6370_v47 }
 0x788   :  { %8026 = vrot.lane.b32.xlu0 %v8025_v25, %s8159_s15  ;;  %v6354_v52 = vsel %vm6353_vm2, %v6236_v38, %v6352_v6  ;;  %v6307_v50 = vrot.slane %v6306_v33, 1 }
 0x78a   :  { %v6308_v28 = vmax.f32 %v6306_v33, %v6307_v50  ;;  %8007 = vmatpush3.bf16.msra.mxu1 %v8111_v54 }
 0x78b   :  { %8008 = vmatprep.subr.bf16.mxu1 %v8162_v21 }
 0x78c   :  { %v6372_v58 = vsel %vm6353_vm2, %v6308_v28, %v6371_v32 }
 0x78e   :  { %8009 = vmatpush3.bf16.msra.mxu1 %v8112_v12 }
 0x78f   :  { %8010 = vmatprep.subr.bf16.mxu1 %v8162_v21 }
 0x792   :  { %8011 = vmatpush3.bf16.msra.mxu1 %v8113_v39 }
 0x7fa   :  { %v8027_v18 = vpop.permute.xlu0 %8026 }
 0x7fb   :  { %v8029_v20 = vunpack.i.h.bf16 %v8027_v18  ;;  %v8028_v10 = vunpack.i.l.bf16 %v8027_v18 }
 0x7fd   :  { %v6384_v34 = vsel %vm1111_vm4, %v6354_v52, %v8029_v20  ;;  %v6385_v0 = vsel %vm1111_vm4, %v6372_v58, %v8028_v10 }
 0x7fe   :  { %v6386_v5 = vpack.c.bf16 %v6384_v34, %v6384_v34  ;;  %v6387_v36 = vpack.c.bf16 %v6385_v0, %v6385_v0 }
 0x800   :  { %6553 = vmatprep.mubr.bf16.mxu0 %v6387_v36 }
 0x801   :  { %6554 = vmatmul.mubr.bf16.vlgmr.msra.gmra.mxu0 %v6386_v5 }
 0x8c1   :  { %v7353_v62 = vpop.f32.mrf.mxu0 }
 0x8c3   :  { %v7354_v4 = vpop.f32.mrf.mxu0 }
 0x8c4   :  { %v7355_v31 = vadd.f32 %v7354_v4, %v7353_v62 }
 0x8c5   :  { %v7356_v13 = vpop.f32.mrf.mxu0 }
 0x8c6   :  { %v6556_v57 = vadd.f32 %v7355_v31, %v6994_v3 }
 0x8c7   :  { %v7357_v2 = vpop.f32.mrf.mxu0 }
 0x8c8   :  { %v6561_v14 = vmax.f32 %v6556_v57, 0.0 }
 0x8ca   :  { %v6562_v26 = vpack.c.bf16 %v6561_v14, %v6561_v14 }
 0x8cc   :  { %8013 = vmatmul.mubr.msk.bf16.vlgmr.msra.gmra.mxu1 %vm1111_vm4, %v6562_v26 }
 0x98c   :  { %v6637_v40 = vpop.f32.mrf.mxu1 }
 0x98d   :  { %v6638_v11 = vadd.f32 %v7011_v17, %v6637_v40 }
 0x98e   :  { %v8014_v24 = vpop.f32.mrf.mxu1 }
 0x98f   :  { %6644 = vst.msk [vmem:[#allocation5] sm:$0xf] %vm6643_vm5, %v6638_v11 }
 0x990   :  { %v6640_v43 = vpop.f32.mrf.mxu1 }
 0x991   :  { %8145 = shalt.err (!%p8142_p9)
}
 0x992   :  { %6654 = dma.vmem_to_hbm [thread:$0]  %s6652_s0, 64, %s12790_s3, [#allocation4]   ;;  %v8015_v22 = vpop.f32.mrf.mxu1 }
 0x993   :  { %8156 = dma.done.wait [#allocation4], 64  }
 0x994   :  { %8157 = vsyncadd [#allocation4], 4294967232 }
 0x995   :  { %6658 = vsyncpa [#allocation3], 1 }
 0x996   :  { %6659 = vsyncpa [#allocation4], 1 }

</bundles_post_ra>
